<compile_context>
chip_gen: v6e
topology: v6e:2x2x1
jax: 0.10.0
libtpu: 0.0.40
codegen_flags: <defaults>
</compile_context>

<pallas_src>
import functools

import jax
import jax.numpy as jnp
from jax import lax
from jax.experimental import pallas as pl
from jax.experimental.pallas import tpu as pltpu


_VMEM_SPEC = pl.BlockSpec(memory_space=pltpu.MemorySpace.VMEM)


def _round_up(x, m):
    return (x + m - 1) // m * m


# ----------------------------------------------------------------------------
# Fused decoder kernel: all GRU layers + Linear head in one pallas_call
# ----------------------------------------------------------------------------
def decoder_kernel(x_ref, wih0_ref, wih_ref, whh_ref, bih_ref, bhn_ref,
                   fcw_ref, fcb_ref, out_ref, seq_ref):
    """Shapes (lane dims padded to 128, batch padded to 8):

    x_ref    : (Bp, D0p)           latent (same vector reused every timestep)
    wih0_ref : (D0p, 3Hp)          layer-0 input->hidden weights, gates [r|z|n]
    wih_ref  : (max(L-1,1), Hp, 3Hp)  layers 1..L-1 input->hidden weights
    whh_ref  : (L, Hp, 3Hp)        hidden->hidden weights (no bias, see bih)
    bih_ref  : (L, 1, 3Hp)         b_ih with b_hr/b_hz folded in; n-slot = b_in
    bhn_ref  : (L, 1, Hp)          b_hn only (must stay inside the r* term)
    fcw_ref  : (Hp, Op)            FC head weight
    fcb_ref  : (1, Op)
    out_ref  : (T*Bp, Op)          time-major rows: row t*Bp + b  <-  y[b, t, :]
    seq_ref  : (T*Bp, Hp) scratch  current layer's hidden sequence (time-major)
    """
    Bp = x_ref.shape[0]
    L, Hp, _ = whh_ref.shape
    T = seq_ref.shape[0] // Bp
    f32 = jnp.float32
    wdt = whh_ref.dtype  # f32 or bf16; MXU operands cast to it, accum stays f32

    for l in range(L):
        # ---- hoisted input->hidden matmul (outside the recurrence) ----------
        if l == 0:
            # Same latent at every timestep -> ONE (Bp, D0) x (D0, 3Hp) matmul.
            gi0 = (jnp.dot(x_ref[...].astype(wdt), wih0_ref[...],
                           preferred_element_type=f32) + bih_ref[0])
        else:
            # All T steps at once from the previous layer's seq scratch.
            # (Value is snapshotted before this layer overwrites seq_ref.)
            gi_all = (jnp.dot(seq_ref[...].astype(wdt), wih_ref[l - 1],
                              preferred_element_type=f32) + bih_ref[l])

        # Hoist the b_hn broadcast out of the T loop (no broadcast CSE in JAX).
        bhn_b = jnp.broadcast_to(bhn_ref[l], (Bp, Hp))

        # ---- recurrence: only h @ Whh is on the serial chain ----------------
        # TODO(synk): for large T switch to lax.fori_loop(unroll=k) over the
        # seq scratch to bound live ranges; at T=8 full unroll is optimal.
        h = None
        for t in range(T):
            gi = gi0 if l == 0 else gi_all[t * Bp:(t + 1) * Bp, :]
            if t == 0:
                # h0 == 0  =>  h @ Whh == 0: skip the matmul entirely.
                r = jax.nn.sigmoid(gi[:, 0 * Hp:1 * Hp])
                z = jax.nn.sigmoid(gi[:, 1 * Hp:2 * Hp])
                n = jnp.tanh(gi[:, 2 * Hp:3 * Hp] + r * bhn_b)
                h = (1.0 - z) * n
            else:
                gh = jnp.dot(h.astype(wdt), whh_ref[l],
                             preferred_element_type=f32)
                r = jax.nn.sigmoid(gi[:, 0 * Hp:1 * Hp] + gh[:, 0 * Hp:1 * Hp])
                z = jax.nn.sigmoid(gi[:, 1 * Hp:2 * Hp] + gh[:, 1 * Hp:2 * Hp])
                n = jnp.tanh(gi[:, 2 * Hp:3 * Hp]
                             + r * (gh[:, 2 * Hp:3 * Hp] + bhn_b))
                h = (1.0 - z) * n + z * h
            # Dense (Bp, Hp) tile store into the time-major scratch.
            seq_ref[t * Bp:(t + 1) * Bp, :] = h

    # ---- FC head, hoisted out of the recurrence: one matmul, one dense store.
    y = (jnp.dot(seq_ref[...].astype(wdt), fcw_ref[...],
                 preferred_element_type=f32) + fcb_ref[...])
    out_ref[...] = y.astype(out_ref.dtype)


# ----------------------------------------------------------------------------
# Wrapper
# ----------------------------------------------------------------------------
def rnn_decoder_forward(x, packed, *, seq_len, input_size):
    """x: (..., latent_dim) -> (B, seq_len, input_size), like the PyTorch module."""
    latent_dim = x.shape[-1]
    x2 = x.reshape(-1, latent_dim).astype(jnp.float32)   # == reshape(-1, 1, D)
    B = x2.shape[0]
    Bp = _round_up(B, 8)                                  # sublane-dense batch
    D0p = packed["wih0"].shape[0]
    Hp = packed["whh"].shape[1]
    Op = packed["fcw"].shape[-1]

    x_pad = jnp.zeros((Bp, D0p), jnp.float32).at[:B, :latent_dim].set(x2)

    out2 = pl.pallas_call(
        decoder_kernel,
        out_shape=jax.ShapeDtypeStruct((seq_len * Bp, Op), jnp.float32),
        in_specs=[_VMEM_SPEC] * 8,
        out_specs=_VMEM_SPEC,
        scratch_shapes=[pltpu.VMEM((seq_len * Bp, Hp), jnp.float32)],
        compiler_params=pltpu.CompilerParams(
            vmem_limit_bytes=32 * 1024 * 1024),
    )(x_pad, packed["wih0"], packed["wih"], packed["whh"], packed["bih"],
      packed["bhn"], packed["fcw"], packed["fcb"])

    # Free reshape (time-major rows t*Bp + b) + cheap transpose + tiny slice.
    y = out2.reshape(seq_len, Bp, Op)
    y = jnp.transpose(y, (1, 0, 2))
    return y[:B, :, :input_size]
    # TODO(synk): for B >= 16 add a leading batch grid axis with
    # dimension_semantics=("parallel",...) to shard across v7x's 2 TensorCores.
    # TODO(synk): for large H/L (weights > ~32 MiB) move wih/whh to
    # memory_space=pl.ANY and double-buffer per-layer weight DMA so layer l+1's
    # weights stream in under layer l's recurrence (v7x has only 64 MiB VMEM).


# ----------------------------------------------------------------------------
# Parameter init (PyTorch-shaped) and packing into the padded kernel layout
# ----------------------------------------------------------------------------
def init_params(key, latent_dim, hidden_size, rnn_layers, input_size):
    """PyTorch-style shapes: wih (3H, Din), whh (3H, H), biases (3H,); fc (O, H)."""
    H = hidden_size
    k = 1.0 / jnp.sqrt(jnp.float32(H))
    gru = []
    for l in range(rnn_layers):
        din = latent_dim if l == 0 else H
        key, k1, k2, k3, k4 = jax.random.split(key, 5)
        gru.append(dict(
            wih=jax.random.uniform(k1, (3 * H, din), jnp.float32, -k, k),
            whh=jax.random.uniform(k2, (3 * H, H), jnp.float32, -k, k),
            bih=jax.random.uniform(k3, (3 * H,), jnp.float32, -k, k),
            bhh=jax.random.uniform(k4, (3 * H,), jnp.float32, -k, k),
        ))
    key, k5, k6 = jax.random.split(key, 3)
    fc_w = jax.random.uniform(k5, (input_size, H), jnp.float32, -k, k)
    fc_b = jax.random.uniform(k6, (input_size,), jnp.float32, -k, k)
    return dict(gru=gru, fc_w=fc_w, fc_b=fc_b)


def pack_params(params, latent_dim, hidden_size, input_size,
                weight_dtype=jnp.float32):
    """Concat gates [r|z|n], transpose to (in, out), zero-pad lanes to 128,
    fold b_hr/b_hz into bih, keep b_hn separate.  weight_dtype=jnp.bfloat16 is
    recommended on v6e/v7x for larger H (MXU-native, half the footprint)."""
    H, O = hidden_size, input_size
    L = len(params["gru"])
    Hp = _round_up(H, 128)
    Op = _round_up(O, 128)
    D0p = _round_up(latent_dim, 8)
    G3 = 3 * Hp

    wih0 = jnp.zeros((D0p, G3), jnp.float32)
    wih = jnp.zeros((max(L - 1, 1), Hp, G3), jnp.float32)
    whh = jnp.zeros((L, Hp, G3), jnp.float32)
    bih = jnp.zeros((L, 1, G3), jnp.float32)
    bhn = jnp.zeros((L, 1, Hp), jnp.float32)
    for l, layer in enumerate(params["gru"]):
        din = layer["wih"].shape[1]
        for g in range(3):  # [r, z, n]
            col = slice(g * Hp, g * Hp + H)
            w_i = layer["wih"][g * H:(g + 1) * H, :].T      # (din, H)
            w_h = layer["whh"][g * H:(g + 1) * H, :].T      # (H, H)
            b_i = layer["bih"][g * H:(g + 1) * H]
            b_h = layer["bhh"][g * H:(g + 1) * H]
            if l == 0:
                wih0 = wih0.at[:din, col].set(w_i)
            else:
                wih = wih.at[l - 1, :H, col].set(w_i)
            whh = whh.at[l, :H, col].set(w_h)
            if g < 2:
                bih = bih.at[l, 0, col].set(b_i + b_h)      # fold b_hr / b_hz
            else:
                bih = bih.at[l, 0, col].set(b_i)
                bhn = bhn.at[l, 0, :H].set(b_h)             # stays in r* term

    fcw = jnp.zeros((Hp, Op), jnp.float32).at[:H, :O].set(params["fc_w"].T)
    fcb = jnp.zeros((1, Op), jnp.float32).at[0, :O].set(params["fc_b"])
    return dict(
        wih0=wih0.astype(weight_dtype), wih=wih.astype(weight_dtype),
        whh=whh.astype(weight_dtype), fcw=fcw.astype(weight_dtype),
        bih=bih, bhn=bhn, fcb=fcb)


# ----------------------------------------------------------------------------
# Pure-JAX reference (PyTorch semantics) for the numerical sanity check
# ----------------------------------------------------------------------------
def ref_forward(x, params, seq_len):
    latent_dim = x.shape[-1]
    x2 = x.reshape(-1, latent_dim).astype(jnp.float32)
    B = x2.shape[0]
    H = params["gru"][0]["whh"].shape[1]
    seq = jnp.broadcast_to(x2[None], (seq_len, B, latent_dim))  # time-major

    for layer in params["gru"]:
        wih, whh = layer["wih"], layer["whh"]
        bih, bhh = layer["bih"], layer["bhh"]

        def step(h, x_t):
            gi = x_t @ wih.T + bih
            gh = h @ whh.T + bhh
            r = jax.nn.sigmoid(gi[:, :H] + gh[:, :H])
            z = jax.nn.sigmoid(gi[:, H:2 * H] + gh[:, H:2 * H])
            n = jnp.tanh(gi[:, 2 * H:] + r * gh[:, 2 * H:])
            h_new = (1.0 - z) * n + z * h
            return h_new, h_new

        _, seq = lax.scan(step, jnp.zeros((B, H), jnp.float32), seq)

    h_btf = jnp.transpose(seq, (1, 0, 2))
    return h_btf @ params["fc_w"].T + params["fc_b"]


# ----------------------------------------------------------------------------
if __name__ == "__main__":
    # Small, module-consistent shapes.
    latent_dim, hidden_size, rnn_layers, input_size, seq_len = 8, 32, 3, 2, 8
    batch = 2

    key = jax.random.PRNGKey(0)
    key, kx = jax.random.split(key)
    params = init_params(key, latent_dim, hidden_size, rnn_layers, input_size)
    packed = pack_params(params, latent_dim, hidden_size, input_size)
    x = jax.random.normal(kx, (batch, latent_dim), jnp.float32)

    fwd = jax.jit(functools.partial(rnn_decoder_forward,
                                    seq_len=seq_len, input_size=input_size))
    out = jax.block_until_ready(fwd(x, packed))
    assert out.shape == (batch, seq_len, input_size), out.shape

    ref = jax.block_until_ready(ref_forward(x, params, seq_len))
    max_err = float(jnp.max(jnp.abs(out - ref)))
    assert max_err < 5e-3, f"mismatch vs reference: {max_err}"

    print("KERNEL_OK")
</pallas_src>

<mosaic_0001>
module attributes {stable_mosaic.version = 11 : i64} {
  func.func @decoder_kernel(%arg0: memref<8x8xf32, #tpu.memory_space<vmem>>, %arg1: memref<8x384xf32, #tpu.memory_space<vmem>>, %arg2: memref<2x128x384xf32, #tpu.memory_space<vmem>>, %arg3: memref<3x128x384xf32, #tpu.memory_space<vmem>>, %arg4: memref<3x1x384xf32, #tpu.memory_space<vmem>>, %arg5: memref<3x1x128xf32, #tpu.memory_space<vmem>>, %arg6: memref<128x128xf32, #tpu.memory_space<vmem>>, %arg7: memref<1x128xf32, #tpu.memory_space<vmem>>, %arg8: memref<64x128xf32, #tpu.memory_space<vmem>>, %arg9: memref<64x128xf32, #tpu.memory_space<vmem>>) attributes {dimension_semantics = [], scalar_prefetch = 0 : i64, scratch_operands = 1 : i64, tpu.core_type = #tpu.core_type<tc>} {
    %c0 = arith.constant 0 : index
    %c0_0 = arith.constant 0 : index
    %0 = vector.load %arg0[%c0, %c0_0] : memref<8x8xf32, #tpu.memory_space<vmem>>, vector<8x8xf32>
    %c0_1 = arith.constant 0 : index
    %c0_2 = arith.constant 0 : index
    %1 = vector.load %arg1[%c0_1, %c0_2] : memref<8x384xf32, #tpu.memory_space<vmem>>, vector<8x384xf32>
    %cst = arith.constant dense<0.000000e+00> : vector<8x384xf32>
    %2 = tpu.matmul %0, %1, %cst {dimension_numbers = #tpu.dot_dimension_numbers<[1], [0], [0], [1], [0, 0, 1, 1], [], []>} : vector<8x8xf32>, vector<8x384xf32>, vector<8x384xf32> -> vector<8x384xf32>
    %c0_3 = arith.constant 0 : index
    %c0_4 = arith.constant 0 : index
    %c0_5 = arith.constant 0 : index
    %3 = vector.load %arg4[%c0_3, %c0_4, %c0_5] : memref<3x1x384xf32, #tpu.memory_space<vmem>>, vector<1x1x384xf32>
    %4 = vector.shape_cast %3 : vector<1x1x384xf32> to vector<1x384xf32>
    %5 = vector.broadcast %4 : vector<1x384xf32> to vector<8x384xf32>
    %6 = arith.addf %2, %5 : vector<8x384xf32>
    %c0_6 = arith.constant 0 : index
    %c0_7 = arith.constant 0 : index
    %c0_8 = arith.constant 0 : index
    %7 = vector.load %arg5[%c0_6, %c0_7, %c0_8] : memref<3x1x128xf32, #tpu.memory_space<vmem>>, vector<1x1x128xf32>
    %8 = vector.shape_cast %7 : vector<1x1x128xf32> to vector<1x128xf32>
    %9 = vector.shape_cast %8 : vector<1x128xf32> to vector<1x128xf32>
    %10 = vector.broadcast %9 : vector<1x128xf32> to vector<8x128xf32>
    %11 = vector.extract_strided_slice %6 {offsets = [0, 0], sizes = [8, 128], strides = [1, 1]} : vector<8x384xf32> to vector<8x128xf32>
    %12 = arith.negf %11 : vector<8x128xf32>
    %13 = math.exp %12 : vector<8x128xf32>
    %cst_9 = arith.constant 1.000000e+00 : f32
    %14 = vector.broadcast %cst_9 : f32 to vector<8x128xf32>
    %15 = arith.addf %14, %13 : vector<8x128xf32>
    %16 = arith.divf %14, %15 : vector<8x128xf32>
    %17 = vector.extract_strided_slice %6 {offsets = [0, 128], sizes = [8, 128], strides = [1, 1]} : vector<8x384xf32> to vector<8x128xf32>
    %18 = arith.negf %17 : vector<8x128xf32>
    %19 = math.exp %18 : vector<8x128xf32>
    %cst_10 = arith.constant 1.000000e+00 : f32
    %20 = vector.broadcast %cst_10 : f32 to vector<8x128xf32>
    %21 = arith.addf %20, %19 : vector<8x128xf32>
    %22 = arith.divf %20, %21 : vector<8x128xf32>
    %23 = vector.extract_strided_slice %6 {offsets = [0, 256], sizes = [8, 128], strides = [1, 1]} : vector<8x384xf32> to vector<8x128xf32>
    %24 = arith.mulf %16, %10 : vector<8x128xf32>
    %25 = arith.addf %23, %24 : vector<8x128xf32>
    %26 = math.tanh %25 : vector<8x128xf32>
    %cst_11 = arith.constant 1.000000e+00 : f32
    %27 = vector.broadcast %cst_11 : f32 to vector<8x128xf32>
    %28 = arith.subf %27, %22 : vector<8x128xf32>
    %29 = arith.mulf %28, %26 : vector<8x128xf32>
    %c0_12 = arith.constant 0 : index
    %c0_13 = arith.constant 0 : index
    %30 = vector.load %arg9[%c0_12, %c0_13] : memref<64x128xf32, #tpu.memory_space<vmem>>, vector<8x128xf32>
    tpu.vector_store %arg9[%c0_12, %c0_13], %29 {strides = array<i32>} : memref<64x128xf32, #tpu.memory_space<vmem>>, vector<8x128xf32>,
    %c0_14 = arith.constant 0 : index
    %c0_15 = arith.constant 0 : index
    %c0_16 = arith.constant 0 : index
    %31 = vector.load %arg3[%c0_14, %c0_15, %c0_16] : memref<3x128x384xf32, #tpu.memory_space<vmem>>, vector<1x128x384xf32>
    %32 = vector.shape_cast %31 : vector<1x128x384xf32> to vector<128x384xf32>
    %cst_17 = arith.constant dense<0.000000e+00> : vector<8x384xf32>
    %33 = tpu.matmul %29, %32, %cst_17 {dimension_numbers = #tpu.dot_dimension_numbers<[1], [0], [0], [1], [0, 0, 1, 1], [], []>} : vector<8x128xf32>, vector<128x384xf32>, vector<8x384xf32> -> vector<8x384xf32>
    %34 = vector.extract_strided_slice %6 {offsets = [0, 0], sizes = [8, 128], strides = [1, 1]} : vector<8x384xf32> to vector<8x128xf32>
    %35 = vector.extract_strided_slice %33 {offsets = [0, 0], sizes = [8, 128], strides = [1, 1]} : vector<8x384xf32> to vector<8x128xf32>
    %36 = arith.addf %34, %35 : vector<8x128xf32>
    %37 = arith.negf %36 : vector<8x128xf32>
    %38 = math.exp %37 : vector<8x128xf32>
    %cst_18 = arith.constant 1.000000e+00 : f32
    %39 = vector.broadcast %cst_18 : f32 to vector<8x128xf32>
    %40 = arith.addf %39, %38 : vector<8x128xf32>
    %41 = arith.divf %39, %40 : vector<8x128xf32>
    %42 = vector.extract_strided_slice %6 {offsets = [0, 128], sizes = [8, 128], strides = [1, 1]} : vector<8x384xf32> to vector<8x128xf32>
    %43 = vector.extract_strided_slice %33 {offsets = [0, 128], sizes = [8, 128], strides = [1, 1]} : vector<8x384xf32> to vector<8x128xf32>
    %44 = arith.addf %42, %43 : vector<8x128xf32>
    %45 = arith.negf %44 : vector<8x128xf32>
    %46 = math.exp %45 : vector<8x128xf32>
    %cst_19 = arith.constant 1.000000e+00 : f32
    %47 = vector.broadcast %cst_19 : f32 to vector<8x128xf32>
    %48 = arith.addf %47, %46 : vector<8x128xf32>
    %49 = arith.divf %47, %48 : vector<8x128xf32>
    %50 = vector.extract_strided_slice %6 {offsets = [0, 256], sizes = [8, 128], strides = [1, 1]} : vector<8x384xf32> to vector<8x128xf32>
    %51 = vector.extract_strided_slice %33 {offsets = [0, 256], sizes = [8, 128], strides = [1, 1]} : vector<8x384xf32> to vector<8x128xf32>
    %52 = arith.addf %51, %10 : vector<8x128xf32>
    %53 = arith.mulf %41, %52 : vector<8x128xf32>
    %54 = arith.addf %50, %53 : vector<8x128xf32>
    %55 = math.tanh %54 : vector<8x128xf32>
    %cst_20 = arith.constant 1.000000e+00 : f32
    %56 = vector.broadcast %cst_20 : f32 to vector<8x128xf32>
    %57 = arith.subf %56, %49 : vector<8x128xf32>
    %58 = arith.mulf %57, %55 : vector<8x128xf32>
    %59 = arith.mulf %49, %29 : vector<8x128xf32>
    %60 = arith.addf %58, %59 : vector<8x128xf32>
    %c8 = arith.constant 8 : index
    %c0_21 = arith.constant 0 : index
    %61 = vector.load %arg9[%c8, %c0_21] : memref<64x128xf32, #tpu.memory_space<vmem>>, vector<8x128xf32>
    tpu.vector_store %arg9[%c8, %c0_21], %60 {strides = array<i32>} : memref<64x128xf32, #tpu.memory_space<vmem>>, vector<8x128xf32>,
    %c0_22 = arith.constant 0 : index
    %c0_23 = arith.constant 0 : index
    %c0_24 = arith.constant 0 : index
    %62 = vector.load %arg3[%c0_22, %c0_23, %c0_24] : memref<3x128x384xf32, #tpu.memory_space<vmem>>, vector<1x128x384xf32>
    %63 = vector.shape_cast %62 : vector<1x128x384xf32> to vector<128x384xf32>
    %cst_25 = arith.constant dense<0.000000e+00> : vector<8x384xf32>
    %64 = tpu.matmul %60, %63, %cst_25 {dimension_numbers = #tpu.dot_dimension_numbers<[1], [0], [0], [1], [0, 0, 1, 1], [], []>} : vector<8x128xf32>, vector<128x384xf32>, vector<8x384xf32> -> vector<8x384xf32>
    %65 = vector.extract_strided_slice %6 {offsets = [0, 0], sizes = [8, 128], strides = [1, 1]} : vector<8x384xf32> to vector<8x128xf32>
    %66 = vector.extract_strided_slice %64 {offsets = [0, 0], sizes = [8, 128], strides = [1, 1]} : vector<8x384xf32> to vector<8x128xf32>
    %67 = arith.addf %65, %66 : vector<8x128xf32>
    %68 = arith.negf %67 : vector<8x128xf32>
    %69 = math.exp %68 : vector<8x128xf32>
    %cst_26 = arith.constant 1.000000e+00 : f32
    %70 = vector.broadcast %cst_26 : f32 to vector<8x128xf32>
    %71 = arith.addf %70, %69 : vector<8x128xf32>
    %72 = arith.divf %70, %71 : vector<8x128xf32>
    %73 = vector.extract_strided_slice %6 {offsets = [0, 128], sizes = [8, 128], strides = [1, 1]} : vector<8x384xf32> to vector<8x128xf32>
    %74 = vector.extract_strided_slice %64 {offsets = [0, 128], sizes = [8, 128], strides = [1, 1]} : vector<8x384xf32> to vector<8x128xf32>
    %75 = arith.addf %73, %74 : vector<8x128xf32>
    %76 = arith.negf %75 : vector<8x128xf32>
    %77 = math.exp %76 : vector<8x128xf32>
    %cst_27 = arith.constant 1.000000e+00 : f32
    %78 = vector.broadcast %cst_27 : f32 to vector<8x128xf32>
    %79 = arith.addf %78, %77 : vector<8x128xf32>
    %80 = arith.divf %78, %79 : vector<8x128xf32>
    %81 = vector.extract_strided_slice %6 {offsets = [0, 256], sizes = [8, 128], strides = [1, 1]} : vector<8x384xf32> to vector<8x128xf32>
    %82 = vector.extract_strided_slice %64 {offsets = [0, 256], sizes = [8, 128], strides = [1, 1]} : vector<8x384xf32> to vector<8x128xf32>
    %83 = arith.addf %82, %10 : vector<8x128xf32>
    %84 = arith.mulf %72, %83 : vector<8x128xf32>
    %85 = arith.addf %81, %84 : vector<8x128xf32>
    %86 = math.tanh %85 : vector<8x128xf32>
    %cst_28 = arith.constant 1.000000e+00 : f32
    %87 = vector.broadcast %cst_28 : f32 to vector<8x128xf32>
    %88 = arith.subf %87, %80 : vector<8x128xf32>
    %89 = arith.mulf %88, %86 : vector<8x128xf32>
    %90 = arith.mulf %80, %60 : vector<8x128xf32>
    %91 = arith.addf %89, %90 : vector<8x128xf32>
    %c16 = arith.constant 16 : index
    %c0_29 = arith.constant 0 : index
    %92 = vector.load %arg9[%c16, %c0_29] : memref<64x128xf32, #tpu.memory_space<vmem>>, vector<8x128xf32>
    tpu.vector_store %arg9[%c16, %c0_29], %91 {strides = array<i32>} : memref<64x128xf32, #tpu.memory_space<vmem>>, vector<8x128xf32>,
    %c0_30 = arith.constant 0 : index
    %c0_31 = arith.constant 0 : index
    %c0_32 = arith.constant 0 : index
    %93 = vector.load %arg3[%c0_30, %c0_31, %c0_32] : memref<3x128x384xf32, #tpu.memory_space<vmem>>, vector<1x128x384xf32>
    %94 = vector.shape_cast %93 : vector<1x128x384xf32> to vector<128x384xf32>
    %cst_33 = arith.constant dense<0.000000e+00> : vector<8x384xf32>
    %95 = tpu.matmul %91, %94, %cst_33 {dimension_numbers = #tpu.dot_dimension_numbers<[1], [0], [0], [1], [0, 0, 1, 1], [], []>} : vector<8x128xf32>, vector<128x384xf32>, vector<8x384xf32> -> vector<8x384xf32>
    %96 = vector.extract_strided_slice %6 {offsets = [0, 0], sizes = [8, 128], strides = [1, 1]} : vector<8x384xf32> to vector<8x128xf32>
    %97 = vector.extract_strided_slice %95 {offsets = [0, 0], sizes = [8, 128], strides = [1, 1]} : vector<8x384xf32> to vector<8x128xf32>
    %98 = arith.addf %96, %97 : vector<8x128xf32>
    %99 = arith.negf %98 : vector<8x128xf32>
    %100 = math.exp %99 : vector<8x128xf32>
    %cst_34 = arith.constant 1.000000e+00 : f32
    %101 = vector.broadcast %cst_34 : f32 to vector<8x128xf32>
    %102 = arith.addf %101, %100 : vector<8x128xf32>
    %103 = arith.divf %101, %102 : vector<8x128xf32>
    %104 = vector.extract_strided_slice %6 {offsets = [0, 128], sizes = [8, 128], strides = [1, 1]} : vector<8x384xf32> to vector<8x128xf32>
    %105 = vector.extract_strided_slice %95 {offsets = [0, 128], sizes = [8, 128], strides = [1, 1]} : vector<8x384xf32> to vector<8x128xf32>
    %106 = arith.addf %104, %105 : vector<8x128xf32>
    %107 = arith.negf %106 : vector<8x128xf32>
    %108 = math.exp %107 : vector<8x128xf32>
    %cst_35 = arith.constant 1.000000e+00 : f32
    %109 = vector.broadcast %cst_35 : f32 to vector<8x128xf32>
    %110 = arith.addf %109, %108 : vector<8x128xf32>
    %111 = arith.divf %109, %110 : vector<8x128xf32>
    %112 = vector.extract_strided_slice %6 {offsets = [0, 256], sizes = [8, 128], strides = [1, 1]} : vector<8x384xf32> to vector<8x128xf32>
    %113 = vector.extract_strided_slice %95 {offsets = [0, 256], sizes = [8, 128], strides = [1, 1]} : vector<8x384xf32> to vector<8x128xf32>
    %114 = arith.addf %113, %10 : vector<8x128xf32>
    %115 = arith.mulf %103, %114 : vector<8x128xf32>
    %116 = arith.addf %112, %115 : vector<8x128xf32>
    %117 = math.tanh %116 : vector<8x128xf32>
    %cst_36 = arith.constant 1.000000e+00 : f32
    %118 = vector.broadcast %cst_36 : f32 to vector<8x128xf32>
    %119 = arith.subf %118, %111 : vector<8x128xf32>
    %120 = arith.mulf %119, %117 : vector<8x128xf32>
    %121 = arith.mulf %111, %91 : vector<8x128xf32>
    %122 = arith.addf %120, %121 : vector<8x128xf32>
    %c24 = arith.constant 24 : index
    %c0_37 = arith.constant 0 : index
    %123 = vector.load %arg9[%c24, %c0_37] : memref<64x128xf32, #tpu.memory_space<vmem>>, vector<8x128xf32>
    tpu.vector_store %arg9[%c24, %c0_37], %122 {strides = array<i32>} : memref<64x128xf32, #tpu.memory_space<vmem>>, vector<8x128xf32>,
    %c0_38 = arith.constant 0 : index
    %c0_39 = arith.constant 0 : index
    %c0_40 = arith.constant 0 : index
    %124 = vector.load %arg3[%c0_38, %c0_39, %c0_40] : memref<3x128x384xf32, #tpu.memory_space<vmem>>, vector<1x128x384xf32>
    %125 = vector.shape_cast %124 : vector<1x128x384xf32> to vector<128x384xf32>
    %cst_41 = arith.constant dense<0.000000e+00> : vector<8x384xf32>
    %126 = tpu.matmul %122, %125, %cst_41 {dimension_numbers = #tpu.dot_dimension_numbers<[1], [0], [0], [1], [0, 0, 1, 1], [], []>} : vector<8x128xf32>, vector<128x384xf32>, vector<8x384xf32> -> vector<8x384xf32>
    %127 = vector.extract_strided_slice %6 {offsets = [0, 0], sizes = [8, 128], strides = [1, 1]} : vector<8x384xf32> to vector<8x128xf32>
    %128 = vector.extract_strided_slice %126 {offsets = [0, 0], sizes = [8, 128], strides = [1, 1]} : vector<8x384xf32> to vector<8x128xf32>
    %129 = arith.addf %127, %128 : vector<8x128xf32>
    %130 = arith.negf %129 : vector<8x128xf32>
    %131 = math.exp %130 : vector<8x128xf32>
    %cst_42 = arith.constant 1.000000e+00 : f32
    %132 = vector.broadcast %cst_42 : f32 to vector<8x128xf32>
    %133 = arith.addf %132, %131 : vector<8x128xf32>
    %134 = arith.divf %132, %133 : vector<8x128xf32>
    %135 = vector.extract_strided_slice %6 {offsets = [0, 128], sizes = [8, 128], strides = [1, 1]} : vector<8x384xf32> to vector<8x128xf32>
    %136 = vector.extract_strided_slice %126 {offsets = [0, 128], sizes = [8, 128], strides = [1, 1]} : vector<8x384xf32> to vector<8x128xf32>
    %137 = arith.addf %135, %136 : vector<8x128xf32>
    %138 = arith.negf %137 : vector<8x128xf32>
    %139 = math.exp %138 : vector<8x128xf32>
    %cst_43 = arith.constant 1.000000e+00 : f32
    %140 = vector.broadcast %cst_43 : f32 to vector<8x128xf32>
    %141 = arith.addf %140, %139 : vector<8x128xf32>
    %142 = arith.divf %140, %141 : vector<8x128xf32>
    %143 = vector.extract_strided_slice %6 {offsets = [0, 256], sizes = [8, 128], strides = [1, 1]} : vector<8x384xf32> to vector<8x128xf32>
    %144 = vector.extract_strided_slice %126 {offsets = [0, 256], sizes = [8, 128], strides = [1, 1]} : vector<8x384xf32> to vector<8x128xf32>
    %145 = arith.addf %144, %10 : vector<8x128xf32>
    %146 = arith.mulf %134, %145 : vector<8x128xf32>
    %147 = arith.addf %143, %146 : vector<8x128xf32>
    %148 = math.tanh %147 : vector<8x128xf32>
    %cst_44 = arith.constant 1.000000e+00 : f32
    %149 = vector.broadcast %cst_44 : f32 to vector<8x128xf32>
    %150 = arith.subf %149, %142 : vector<8x128xf32>
    %151 = arith.mulf %150, %148 : vector<8x128xf32>
    %152 = arith.mulf %142, %122 : vector<8x128xf32>
    %153 = arith.addf %151, %152 : vector<8x128xf32>
    %c32 = arith.constant 32 : index
    %c0_45 = arith.constant 0 : index
    %154 = vector.load %arg9[%c32, %c0_45] : memref<64x128xf32, #tpu.memory_space<vmem>>, vector<8x128xf32>
    tpu.vector_store %arg9[%c32, %c0_45], %153 {strides = array<i32>} : memref<64x128xf32, #tpu.memory_space<vmem>>, vector<8x128xf32>,
    %c0_46 = arith.constant 0 : index
    %c0_47 = arith.constant 0 : index
    %c0_48 = arith.constant 0 : index
    %155 = vector.load %arg3[%c0_46, %c0_47, %c0_48] : memref<3x128x384xf32, #tpu.memory_space<vmem>>, vector<1x128x384xf32>
    %156 = vector.shape_cast %155 : vector<1x128x384xf32> to vector<128x384xf32>
    %cst_49 = arith.constant dense<0.000000e+00> : vector<8x384xf32>
    %157 = tpu.matmul %153, %156, %cst_49 {dimension_numbers = #tpu.dot_dimension_numbers<[1], [0], [0], [1], [0, 0, 1, 1], [], []>} : vector<8x128xf32>, vector<128x384xf32>, vector<8x384xf32> -> vector<8x384xf32>
    %158 = vector.extract_strided_slice %6 {offsets = [0, 0], sizes = [8, 128], strides = [1, 1]} : vector<8x384xf32> to vector<8x128xf32>
    %159 = vector.extract_strided_slice %157 {offsets = [0, 0], sizes = [8, 128], strides = [1, 1]} : vector<8x384xf32> to vector<8x128xf32>
    %160 = arith.addf %158, %159 : vector<8x128xf32>
    %161 = arith.negf %160 : vector<8x128xf32>
    %162 = math.exp %161 : vector<8x128xf32>
    %cst_50 = arith.constant 1.000000e+00 : f32
    %163 = vector.broadcast %cst_50 : f32 to vector<8x128xf32>
    %164 = arith.addf %163, %162 : vector<8x128xf32>
    %165 = arith.divf %163, %164 : vector<8x128xf32>
    %166 = vector.extract_strided_slice %6 {offsets = [0, 128], sizes = [8, 128], strides = [1, 1]} : vector<8x384xf32> to vector<8x128xf32>
    %167 = vector.extract_strided_slice %157 {offsets = [0, 128], sizes = [8, 128], strides = [1, 1]} : vector<8x384xf32> to vector<8x128xf32>
    %168 = arith.addf %166, %167 : vector<8x128xf32>
    %169 = arith.negf %168 : vector<8x128xf32>
    %170 = math.exp %169 : vector<8x128xf32>
    %cst_51 = arith.constant 1.000000e+00 : f32
    %171 = vector.broadcast %cst_51 : f32 to vector<8x128xf32>
    %172 = arith.addf %171, %170 : vector<8x128xf32>
    %173 = arith.divf %171, %172 : vector<8x128xf32>
    %174 = vector.extract_strided_slice %6 {offsets = [0, 256], sizes = [8, 128], strides = [1, 1]} : vector<8x384xf32> to vector<8x128xf32>
    %175 = vector.extract_strided_slice %157 {offsets = [0, 256], sizes = [8, 128], strides = [1, 1]} : vector<8x384xf32> to vector<8x128xf32>
    %176 = arith.addf %175, %10 : vector<8x128xf32>
    %177 = arith.mulf %165, %176 : vector<8x128xf32>
    %178 = arith.addf %174, %177 : vector<8x128xf32>
    %179 = math.tanh %178 : vector<8x128xf32>
    %cst_52 = arith.constant 1.000000e+00 : f32
    %180 = vector.broadcast %cst_52 : f32 to vector<8x128xf32>
    %181 = arith.subf %180, %173 : vector<8x128xf32>
    %182 = arith.mulf %181, %179 : vector<8x128xf32>
    %183 = arith.mulf %173, %153 : vector<8x128xf32>
    %184 = arith.addf %182, %183 : vector<8x128xf32>
    %c40 = arith.constant 40 : index
    %c0_53 = arith.constant 0 : index
    %185 = vector.load %arg9[%c40, %c0_53] : memref<64x128xf32, #tpu.memory_space<vmem>>, vector<8x128xf32>
    tpu.vector_store %arg9[%c40, %c0_53], %184 {strides = array<i32>} : memref<64x128xf32, #tpu.memory_space<vmem>>, vector<8x128xf32>,
    %c0_54 = arith.constant 0 : index
    %c0_55 = arith.constant 0 : index
    %c0_56 = arith.constant 0 : index
    %186 = vector.load %arg3[%c0_54, %c0_55, %c0_56] : memref<3x128x384xf32, #tpu.memory_space<vmem>>, vector<1x128x384xf32>
    %187 = vector.shape_cast %186 : vector<1x128x384xf32> to vector<128x384xf32>
    %cst_57 = arith.constant dense<0.000000e+00> : vector<8x384xf32>
    %188 = tpu.matmul %184, %187, %cst_57 {dimension_numbers = #tpu.dot_dimension_numbers<[1], [0], [0], [1], [0, 0, 1, 1], [], []>} : vector<8x128xf32>, vector<128x384xf32>, vector<8x384xf32> -> vector<8x384xf32>
    %189 = vector.extract_strided_slice %6 {offsets = [0, 0], sizes = [8, 128], strides = [1, 1]} : vector<8x384xf32> to vector<8x128xf32>
    %190 = vector.extract_strided_slice %188 {offsets = [0, 0], sizes = [8, 128], strides = [1, 1]} : vector<8x384xf32> to vector<8x128xf32>
    %191 = arith.addf %189, %190 : vector<8x128xf32>
    %192 = arith.negf %191 : vector<8x128xf32>
    %193 = math.exp %192 : vector<8x128xf32>
    %cst_58 = arith.constant 1.000000e+00 : f32
    %194 = vector.broadcast %cst_58 : f32 to vector<8x128xf32>
    %195 = arith.addf %194, %193 : vector<8x128xf32>
    %196 = arith.divf %194, %195 : vector<8x128xf32>
    %197 = vector.extract_strided_slice %6 {offsets = [0, 128], sizes = [8, 128], strides = [1, 1]} : vector<8x384xf32> to vector<8x128xf32>
    %198 = vector.extract_strided_slice %188 {offsets = [0, 128], sizes = [8, 128], strides = [1, 1]} : vector<8x384xf32> to vector<8x128xf32>
    %199 = arith.addf %197, %198 : vector<8x128xf32>
    %200 = arith.negf %199 : vector<8x128xf32>
    %201 = math.exp %200 : vector<8x128xf32>
    %cst_59 = arith.constant 1.000000e+00 : f32
    %202 = vector.broadcast %cst_59 : f32 to vector<8x128xf32>
    %203 = arith.addf %202, %201 : vector<8x128xf32>
    %204 = arith.divf %202, %203 : vector<8x128xf32>
    %205 = vector.extract_strided_slice %6 {offsets = [0, 256], sizes = [8, 128], strides = [1, 1]} : vector<8x384xf32> to vector<8x128xf32>
    %206 = vector.extract_strided_slice %188 {offsets = [0, 256], sizes = [8, 128], strides = [1, 1]} : vector<8x384xf32> to vector<8x128xf32>
    %207 = arith.addf %206, %10 : vector<8x128xf32>
    %208 = arith.mulf %196, %207 : vector<8x128xf32>
    %209 = arith.addf %205, %208 : vector<8x128xf32>
    %210 = math.tanh %209 : vector<8x128xf32>
    %cst_60 = arith.constant 1.000000e+00 : f32
    %211 = vector.broadcast %cst_60 : f32 to vector<8x128xf32>
    %212 = arith.subf %211, %204 : vector<8x128xf32>
    %213 = arith.mulf %212, %210 : vector<8x128xf32>
    %214 = arith.mulf %204, %184 : vector<8x128xf32>
    %215 = arith.addf %213, %214 : vector<8x128xf32>
    %c48 = arith.constant 48 : index
    %c0_61 = arith.constant 0 : index
    %216 = vector.load %arg9[%c48, %c0_61] : memref<64x128xf32, #tpu.memory_space<vmem>>, vector<8x128xf32>
    tpu.vector_store %arg9[%c48, %c0_61], %215 {strides = array<i32>} : memref<64x128xf32, #tpu.memory_space<vmem>>, vector<8x128xf32>,
    %c0_62 = arith.constant 0 : index
    %c0_63 = arith.constant 0 : index
    %c0_64 = arith.constant 0 : index
    %217 = vector.load %arg3[%c0_62, %c0_63, %c0_64] : memref<3x128x384xf32, #tpu.memory_space<vmem>>, vector<1x128x384xf32>
    %218 = vector.shape_cast %217 : vector<1x128x384xf32> to vector<128x384xf32>
    %cst_65 = arith.constant dense<0.000000e+00> : vector<8x384xf32>
    %219 = tpu.matmul %215, %218, %cst_65 {dimension_numbers = #tpu.dot_dimension_numbers<[1], [0], [0], [1], [0, 0, 1, 1], [], []>} : vector<8x128xf32>, vector<128x384xf32>, vector<8x384xf32> -> vector<8x384xf32>
    %220 = vector.extract_strided_slice %6 {offsets = [0, 0], sizes = [8, 128], strides = [1, 1]} : vector<8x384xf32> to vector<8x128xf32>
    %221 = vector.extract_strided_slice %219 {offsets = [0, 0], sizes = [8, 128], strides = [1, 1]} : vector<8x384xf32> to vector<8x128xf32>
    %222 = arith.addf %220, %221 : vector<8x128xf32>
    %223 = arith.negf %222 : vector<8x128xf32>
    %224 = math.exp %223 : vector<8x128xf32>
    %cst_66 = arith.constant 1.000000e+00 : f32
    %225 = vector.broadcast %cst_66 : f32 to vector<8x128xf32>
    %226 = arith.addf %225, %224 : vector<8x128xf32>
    %227 = arith.divf %225, %226 : vector<8x128xf32>
    %228 = vector.extract_strided_slice %6 {offsets = [0, 128], sizes = [8, 128], strides = [1, 1]} : vector<8x384xf32> to vector<8x128xf32>
    %229 = vector.extract_strided_slice %219 {offsets = [0, 128], sizes = [8, 128], strides = [1, 1]} : vector<8x384xf32> to vector<8x128xf32>
    %230 = arith.addf %228, %229 : vector<8x128xf32>
    %231 = arith.negf %230 : vector<8x128xf32>
    %232 = math.exp %231 : vector<8x128xf32>
    %cst_67 = arith.constant 1.000000e+00 : f32
    %233 = vector.broadcast %cst_67 : f32 to vector<8x128xf32>
    %234 = arith.addf %233, %232 : vector<8x128xf32>
    %235 = arith.divf %233, %234 : vector<8x128xf32>
    %236 = vector.extract_strided_slice %6 {offsets = [0, 256], sizes = [8, 128], strides = [1, 1]} : vector<8x384xf32> to vector<8x128xf32>
    %237 = vector.extract_strided_slice %219 {offsets = [0, 256], sizes = [8, 128], strides = [1, 1]} : vector<8x384xf32> to vector<8x128xf32>
    %238 = arith.addf %237, %10 : vector<8x128xf32>
    %239 = arith.mulf %227, %238 : vector<8x128xf32>
    %240 = arith.addf %236, %239 : vector<8x128xf32>
    %241 = math.tanh %240 : vector<8x128xf32>
    %cst_68 = arith.constant 1.000000e+00 : f32
    %242 = vector.broadcast %cst_68 : f32 to vector<8x128xf32>
    %243 = arith.subf %242, %235 : vector<8x128xf32>
    %244 = arith.mulf %243, %241 : vector<8x128xf32>
    %245 = arith.mulf %235, %215 : vector<8x128xf32>
    %246 = arith.addf %244, %245 : vector<8x128xf32>
    %c56 = arith.constant 56 : index
    %c0_69 = arith.constant 0 : index
    %247 = vector.load %arg9[%c56, %c0_69] : memref<64x128xf32, #tpu.memory_space<vmem>>, vector<8x128xf32>
    tpu.vector_store %arg9[%c56, %c0_69], %246 {strides = array<i32>} : memref<64x128xf32, #tpu.memory_space<vmem>>, vector<8x128xf32>,
    %c0_70 = arith.constant 0 : index
    %c0_71 = arith.constant 0 : index
    %248 = vector.load %arg9[%c0_70, %c0_71] : memref<64x128xf32, #tpu.memory_space<vmem>>, vector<64x128xf32>
    %c0_72 = arith.constant 0 : index
    %c0_73 = arith.constant 0 : index
    %c0_74 = arith.constant 0 : index
    %249 = vector.load %arg2[%c0_72, %c0_73, %c0_74] : memref<2x128x384xf32, #tpu.memory_space<vmem>>, vector<1x128x384xf32>
    %250 = vector.shape_cast %249 : vector<1x128x384xf32> to vector<128x384xf32>
    %cst_75 = arith.constant dense<0.000000e+00> : vector<64x384xf32>
    %251 = tpu.matmul %248, %250, %cst_75 {dimension_numbers = #tpu.dot_dimension_numbers<[1], [0], [0], [1], [0, 0, 1, 1], [], []>} : vector<64x128xf32>, vector<128x384xf32>, vector<64x384xf32> -> vector<64x384xf32>
    %c1 = arith.constant 1 : index
    %c0_76 = arith.constant 0 : index
    %c0_77 = arith.constant 0 : index
    %252 = vector.load %arg4[%c1, %c0_76, %c0_77] : memref<3x1x384xf32, #tpu.memory_space<vmem>>, vector<1x1x384xf32>
    %253 = vector.shape_cast %252 : vector<1x1x384xf32> to vector<1x384xf32>
    %254 = vector.broadcast %253 : vector<1x384xf32> to vector<64x384xf32>
    %255 = arith.addf %251, %254 : vector<64x384xf32>
    %c1_78 = arith.constant 1 : index
    %c0_79 = arith.constant 0 : index
    %c0_80 = arith.constant 0 : index
    %256 = vector.load %arg5[%c1_78, %c0_79, %c0_80] : memref<3x1x128xf32, #tpu.memory_space<vmem>>, vector<1x1x128xf32>
    %257 = vector.shape_cast %256 : vector<1x1x128xf32> to vector<1x128xf32>
    %258 = vector.shape_cast %257 : vector<1x128xf32> to vector<1x128xf32>
    %259 = vector.broadcast %258 : vector<1x128xf32> to vector<8x128xf32>
    %260 = vector.extract_strided_slice %255 {offsets = [0, 0], sizes = [8, 384], strides = [1, 1]} : vector<64x384xf32> to vector<8x384xf32>
    %261 = vector.extract_strided_slice %260 {offsets = [0, 0], sizes = [8, 128], strides = [1, 1]} : vector<8x384xf32> to vector<8x128xf32>
    %262 = arith.negf %261 : vector<8x128xf32>
    %263 = math.exp %262 : vector<8x128xf32>
    %cst_81 = arith.constant 1.000000e+00 : f32
    %264 = vector.broadcast %cst_81 : f32 to vector<8x128xf32>
    %265 = arith.addf %264, %263 : vector<8x128xf32>
    %266 = arith.divf %264, %265 : vector<8x128xf32>
    %267 = vector.extract_strided_slice %260 {offsets = [0, 128], sizes = [8, 128], strides = [1, 1]} : vector<8x384xf32> to vector<8x128xf32>
    %268 = arith.negf %267 : vector<8x128xf32>
    %269 = math.exp %268 : vector<8x128xf32>
    %cst_82 = arith.constant 1.000000e+00 : f32
    %270 = vector.broadcast %cst_82 : f32 to vector<8x128xf32>
    %271 = arith.addf %270, %269 : vector<8x128xf32>
    %272 = arith.divf %270, %271 : vector<8x128xf32>
    %273 = vector.extract_strided_slice %260 {offsets = [0, 256], sizes = [8, 128], strides = [1, 1]} : vector<8x384xf32> to vector<8x128xf32>
    %274 = arith.mulf %266, %259 : vector<8x128xf32>
    %275 = arith.addf %273, %274 : vector<8x128xf32>
    %276 = math.tanh %275 : vector<8x128xf32>
    %cst_83 = arith.constant 1.000000e+00 : f32
    %277 = vector.broadcast %cst_83 : f32 to vector<8x128xf32>
    %278 = arith.subf %277, %272 : vector<8x128xf32>
    %279 = arith.mulf %278, %276 : vector<8x128xf32>
    %c0_84 = arith.constant 0 : index
    %c0_85 = arith.constant 0 : index
    %280 = vector.load %arg9[%c0_84, %c0_85] : memref<64x128xf32, #tpu.memory_space<vmem>>, vector<8x128xf32>
    tpu.vector_store %arg9[%c0_84, %c0_85], %279 {strides = array<i32>} : memref<64x128xf32, #tpu.memory_space<vmem>>, vector<8x128xf32>,
    %281 = vector.extract_strided_slice %255 {offsets = [8, 0], sizes = [8, 384], strides = [1, 1]} : vector<64x384xf32> to vector<8x384xf32>
    %c1_86 = arith.constant 1 : index
    %c0_87 = arith.constant 0 : index
    %c0_88 = arith.constant 0 : index
    %282 = vector.load %arg3[%c1_86, %c0_87, %c0_88] : memref<3x128x384xf32, #tpu.memory_space<vmem>>, vector<1x128x384xf32>
    %283 = vector.shape_cast %282 : vector<1x128x384xf32> to vector<128x384xf32>
    %cst_89 = arith.constant dense<0.000000e+00> : vector<8x384xf32>
    %284 = tpu.matmul %279, %283, %cst_89 {dimension_numbers = #tpu.dot_dimension_numbers<[1], [0], [0], [1], [0, 0, 1, 1], [], []>} : vector<8x128xf32>, vector<128x384xf32>, vector<8x384xf32> -> vector<8x384xf32>
    %285 = vector.extract_strided_slice %281 {offsets = [0, 0], sizes = [8, 128], strides = [1, 1]} : vector<8x384xf32> to vector<8x128xf32>
    %286 = vector.extract_strided_slice %284 {offsets = [0, 0], sizes = [8, 128], strides = [1, 1]} : vector<8x384xf32> to vector<8x128xf32>
    %287 = arith.addf %285, %286 : vector<8x128xf32>
    %288 = arith.negf %287 : vector<8x128xf32>
    %289 = math.exp %288 : vector<8x128xf32>
    %cst_90 = arith.constant 1.000000e+00 : f32
    %290 = vector.broadcast %cst_90 : f32 to vector<8x128xf32>
    %291 = arith.addf %290, %289 : vector<8x128xf32>
    %292 = arith.divf %290, %291 : vector<8x128xf32>
    %293 = vector.extract_strided_slice %281 {offsets = [0, 128], sizes = [8, 128], strides = [1, 1]} : vector<8x384xf32> to vector<8x128xf32>
    %294 = vector.extract_strided_slice %284 {offsets = [0, 128], sizes = [8, 128], strides = [1, 1]} : vector<8x384xf32> to vector<8x128xf32>
    %295 = arith.addf %293, %294 : vector<8x128xf32>
    %296 = arith.negf %295 : vector<8x128xf32>
    %297 = math.exp %296 : vector<8x128xf32>
    %cst_91 = arith.constant 1.000000e+00 : f32
    %298 = vector.broadcast %cst_91 : f32 to vector<8x128xf32>
    %299 = arith.addf %298, %297 : vector<8x128xf32>
    %300 = arith.divf %298, %299 : vector<8x128xf32>
    %301 = vector.extract_strided_slice %281 {offsets = [0, 256], sizes = [8, 128], strides = [1, 1]} : vector<8x384xf32> to vector<8x128xf32>
    %302 = vector.extract_strided_slice %284 {offsets = [0, 256], sizes = [8, 128], strides = [1, 1]} : vector<8x384xf32> to vector<8x128xf32>
    %303 = arith.addf %302, %259 : vector<8x128xf32>
    %304 = arith.mulf %292, %303 : vector<8x128xf32>
    %305 = arith.addf %301, %304 : vector<8x128xf32>
    %306 = math.tanh %305 : vector<8x128xf32>
    %cst_92 = arith.constant 1.000000e+00 : f32
    %307 = vector.broadcast %cst_92 : f32 to vector<8x128xf32>
    %308 = arith.subf %307, %300 : vector<8x128xf32>
    %309 = arith.mulf %308, %306 : vector<8x128xf32>
    %310 = arith.mulf %300, %279 : vector<8x128xf32>
    %311 = arith.addf %309, %310 : vector<8x128xf32>
    %c8_93 = arith.constant 8 : index
    %c0_94 = arith.constant 0 : index
    %312 = vector.load %arg9[%c8_93, %c0_94] : memref<64x128xf32, #tpu.memory_space<vmem>>, vector<8x128xf32>
    tpu.vector_store %arg9[%c8_93, %c0_94], %311 {strides = array<i32>} : memref<64x128xf32, #tpu.memory_space<vmem>>, vector<8x128xf32>,
    %313 = vector.extract_strided_slice %255 {offsets = [16, 0], sizes = [8, 384], strides = [1, 1]} : vector<64x384xf32> to vector<8x384xf32>
    %c1_95 = arith.constant 1 : index
    %c0_96 = arith.constant 0 : index
    %c0_97 = arith.constant 0 : index
    %314 = vector.load %arg3[%c1_95, %c0_96, %c0_97] : memref<3x128x384xf32, #tpu.memory_space<vmem>>, vector<1x128x384xf32>
    %315 = vector.shape_cast %314 : vector<1x128x384xf32> to vector<128x384xf32>
    %cst_98 = arith.constant dense<0.000000e+00> : vector<8x384xf32>
    %316 = tpu.matmul %311, %315, %cst_98 {dimension_numbers = #tpu.dot_dimension_numbers<[1], [0], [0], [1], [0, 0, 1, 1], [], []>} : vector<8x128xf32>, vector<128x384xf32>, vector<8x384xf32> -> vector<8x384xf32>
    %317 = vector.extract_strided_slice %313 {offsets = [0, 0], sizes = [8, 128], strides = [1, 1]} : vector<8x384xf32> to vector<8x128xf32>
    %318 = vector.extract_strided_slice %316 {offsets = [0, 0], sizes = [8, 128], strides = [1, 1]} : vector<8x384xf32> to vector<8x128xf32>
    %319 = arith.addf %317, %318 : vector<8x128xf32>
    %320 = arith.negf %319 : vector<8x128xf32>
    %321 = math.exp %320 : vector<8x128xf32>
    %cst_99 = arith.constant 1.000000e+00 : f32
    %322 = vector.broadcast %cst_99 : f32 to vector<8x128xf32>
    %323 = arith.addf %322, %321 : vector<8x128xf32>
    %324 = arith.divf %322, %323 : vector<8x128xf32>
    %325 = vector.extract_strided_slice %313 {offsets = [0, 128], sizes = [8, 128], strides = [1, 1]} : vector<8x384xf32> to vector<8x128xf32>
    %326 = vector.extract_strided_slice %316 {offsets = [0, 128], sizes = [8, 128], strides = [1, 1]} : vector<8x384xf32> to vector<8x128xf32>
    %327 = arith.addf %325, %326 : vector<8x128xf32>
    %328 = arith.negf %327 : vector<8x128xf32>
    %329 = math.exp %328 : vector<8x128xf32>
    %cst_100 = arith.constant 1.000000e+00 : f32
    %330 = vector.broadcast %cst_100 : f32 to vector<8x128xf32>
    %331 = arith.addf %330, %329 : vector<8x128xf32>
    %332 = arith.divf %330, %331 : vector<8x128xf32>
    %333 = vector.extract_strided_slice %313 {offsets = [0, 256], sizes = [8, 128], strides = [1, 1]} : vector<8x384xf32> to vector<8x128xf32>
    %334 = vector.extract_strided_slice %316 {offsets = [0, 256], sizes = [8, 128], strides = [1, 1]} : vector<8x384xf32> to vector<8x128xf32>
    %335 = arith.addf %334, %259 : vector<8x128xf32>
    %336 = arith.mulf %324, %335 : vector<8x128xf32>
    %337 = arith.addf %333, %336 : vector<8x128xf32>
    %338 = math.tanh %337 : vector<8x128xf32>
    %cst_101 = arith.constant 1.000000e+00 : f32
    %339 = vector.broadcast %cst_101 : f32 to vector<8x128xf32>
    %340 = arith.subf %339, %332 : vector<8x128xf32>
    %341 = arith.mulf %340, %338 : vector<8x128xf32>
    %342 = arith.mulf %332, %311 : vector<8x128xf32>
    %343 = arith.addf %341, %342 : vector<8x128xf32>
    %c16_102 = arith.constant 16 : index
    %c0_103 = arith.constant 0 : index
    %344 = vector.load %arg9[%c16_102, %c0_103] : memref<64x128xf32, #tpu.memory_space<vmem>>, vector<8x128xf32>
    tpu.vector_store %arg9[%c16_102, %c0_103], %343 {strides = array<i32>} : memref<64x128xf32, #tpu.memory_space<vmem>>, vector<8x128xf32>,
    %345 = vector.extract_strided_slice %255 {offsets = [24, 0], sizes = [8, 384], strides = [1, 1]} : vector<64x384xf32> to vector<8x384xf32>
    %c1_104 = arith.constant 1 : index
    %c0_105 = arith.constant 0 : index
    %c0_106 = arith.constant 0 : index
    %346 = vector.load %arg3[%c1_104, %c0_105, %c0_106] : memref<3x128x384xf32, #tpu.memory_space<vmem>>, vector<1x128x384xf32>
    %347 = vector.shape_cast %346 : vector<1x128x384xf32> to vector<128x384xf32>
    %cst_107 = arith.constant dense<0.000000e+00> : vector<8x384xf32>
    %348 = tpu.matmul %343, %347, %cst_107 {dimension_numbers = #tpu.dot_dimension_numbers<[1], [0], [0], [1], [0, 0, 1, 1], [], []>} : vector<8x128xf32>, vector<128x384xf32>, vector<8x384xf32> -> vector<8x384xf32>
    %349 = vector.extract_strided_slice %345 {offsets = [0, 0], sizes = [8, 128], strides = [1, 1]} : vector<8x384xf32> to vector<8x128xf32>
    %350 = vector.extract_strided_slice %348 {offsets = [0, 0], sizes = [8, 128], strides = [1, 1]} : vector<8x384xf32> to vector<8x128xf32>
    %351 = arith.addf %349, %350 : vector<8x128xf32>
    %352 = arith.negf %351 : vector<8x128xf32>
    %353 = math.exp %352 : vector<8x128xf32>
    %cst_108 = arith.constant 1.000000e+00 : f32
    %354 = vector.broadcast %cst_108 : f32 to vector<8x128xf32>
    %355 = arith.addf %354, %353 : vector<8x128xf32>
    %356 = arith.divf %354, %355 : vector<8x128xf32>
    %357 = vector.extract_strided_slice %345 {offsets = [0, 128], sizes = [8, 128], strides = [1, 1]} : vector<8x384xf32> to vector<8x128xf32>
    %358 = vector.extract_strided_slice %348 {offsets = [0, 128], sizes = [8, 128], strides = [1, 1]} : vector<8x384xf32> to vector<8x128xf32>
    %359 = arith.addf %357, %358 : vector<8x128xf32>
    %360 = arith.negf %359 : vector<8x128xf32>
    %361 = math.exp %360 : vector<8x128xf32>
    %cst_109 = arith.constant 1.000000e+00 : f32
    %362 = vector.broadcast %cst_109 : f32 to vector<8x128xf32>
    %363 = arith.addf %362, %361 : vector<8x128xf32>
    %364 = arith.divf %362, %363 : vector<8x128xf32>
    %365 = vector.extract_strided_slice %345 {offsets = [0, 256], sizes = [8, 128], strides = [1, 1]} : vector<8x384xf32> to vector<8x128xf32>
    %366 = vector.extract_strided_slice %348 {offsets = [0, 256], sizes = [8, 128], strides = [1, 1]} : vector<8x384xf32> to vector<8x128xf32>
    %367 = arith.addf %366, %259 : vector<8x128xf32>
    %368 = arith.mulf %356, %367 : vector<8x128xf32>
    %369 = arith.addf %365, %368 : vector<8x128xf32>
    %370 = math.tanh %369 : vector<8x128xf32>
    %cst_110 = arith.constant 1.000000e+00 : f32
    %371 = vector.broadcast %cst_110 : f32 to vector<8x128xf32>
    %372 = arith.subf %371, %364 : vector<8x128xf32>
    %373 = arith.mulf %372, %370 : vector<8x128xf32>
    %374 = arith.mulf %364, %343 : vector<8x128xf32>
    %375 = arith.addf %373, %374 : vector<8x128xf32>
    %c24_111 = arith.constant 24 : index
    %c0_112 = arith.constant 0 : index
    %376 = vector.load %arg9[%c24_111, %c0_112] : memref<64x128xf32, #tpu.memory_space<vmem>>, vector<8x128xf32>
    tpu.vector_store %arg9[%c24_111, %c0_112], %375 {strides = array<i32>} : memref<64x128xf32, #tpu.memory_space<vmem>>, vector<8x128xf32>,
    %377 = vector.extract_strided_slice %255 {offsets = [32, 0], sizes = [8, 384], strides = [1, 1]} : vector<64x384xf32> to vector<8x384xf32>
    %c1_113 = arith.constant 1 : index
    %c0_114 = arith.constant 0 : index
    %c0_115 = arith.constant 0 : index
    %378 = vector.load %arg3[%c1_113, %c0_114, %c0_115] : memref<3x128x384xf32, #tpu.memory_space<vmem>>, vector<1x128x384xf32>
    %379 = vector.shape_cast %378 : vector<1x128x384xf32> to vector<128x384xf32>
    %cst_116 = arith.constant dense<0.000000e+00> : vector<8x384xf32>
    %380 = tpu.matmul %375, %379, %cst_116 {dimension_numbers = #tpu.dot_dimension_numbers<[1], [0], [0], [1], [0, 0, 1, 1], [], []>} : vector<8x128xf32>, vector<128x384xf32>, vector<8x384xf32> -> vector<8x384xf32>
    %381 = vector.extract_strided_slice %377 {offsets = [0, 0], sizes = [8, 128], strides = [1, 1]} : vector<8x384xf32> to vector<8x128xf32>
    %382 = vector.extract_strided_slice %380 {offsets = [0, 0], sizes = [8, 128], strides = [1, 1]} : vector<8x384xf32> to vector<8x128xf32>
    %383 = arith.addf %381, %382 : vector<8x128xf32>
    %384 = arith.negf %383 : vector<8x128xf32>
    %385 = math.exp %384 : vector<8x128xf32>
    %cst_117 = arith.constant 1.000000e+00 : f32
    %386 = vector.broadcast %cst_117 : f32 to vector<8x128xf32>
    %387 = arith.addf %386, %385 : vector<8x128xf32>
    %388 = arith.divf %386, %387 : vector<8x128xf32>
    %389 = vector.extract_strided_slice %377 {offsets = [0, 128], sizes = [8, 128], strides = [1, 1]} : vector<8x384xf32> to vector<8x128xf32>
    %390 = vector.extract_strided_slice %380 {offsets = [0, 128], sizes = [8, 128], strides = [1, 1]} : vector<8x384xf32> to vector<8x128xf32>
    %391 = arith.addf %389, %390 : vector<8x128xf32>
    %392 = arith.negf %391 : vector<8x128xf32>
    %393 = math.exp %392 : vector<8x128xf32>
    %cst_118 = arith.constant 1.000000e+00 : f32
    %394 = vector.broadcast %cst_118 : f32 to vector<8x128xf32>
    %395 = arith.addf %394, %393 : vector<8x128xf32>
    %396 = arith.divf %394, %395 : vector<8x128xf32>
    %397 = vector.extract_strided_slice %377 {offsets = [0, 256], sizes = [8, 128], strides = [1, 1]} : vector<8x384xf32> to vector<8x128xf32>
    %398 = vector.extract_strided_slice %380 {offsets = [0, 256], sizes = [8, 128], strides = [1, 1]} : vector<8x384xf32> to vector<8x128xf32>
    %399 = arith.addf %398, %259 : vector<8x128xf32>
    %400 = arith.mulf %388, %399 : vector<8x128xf32>
    %401 = arith.addf %397, %400 : vector<8x128xf32>
    %402 = math.tanh %401 : vector<8x128xf32>
    %cst_119 = arith.constant 1.000000e+00 : f32
    %403 = vector.broadcast %cst_119 : f32 to vector<8x128xf32>
    %404 = arith.subf %403, %396 : vector<8x128xf32>
    %405 = arith.mulf %404, %402 : vector<8x128xf32>
    %406 = arith.mulf %396, %375 : vector<8x128xf32>
    %407 = arith.addf %405, %406 : vector<8x128xf32>
    %c32_120 = arith.constant 32 : index
    %c0_121 = arith.constant 0 : index
    %408 = vector.load %arg9[%c32_120, %c0_121] : memref<64x128xf32, #tpu.memory_space<vmem>>, vector<8x128xf32>
    tpu.vector_store %arg9[%c32_120, %c0_121], %407 {strides = array<i32>} : memref<64x128xf32, #tpu.memory_space<vmem>>, vector<8x128xf32>,
    %409 = vector.extract_strided_slice %255 {offsets = [40, 0], sizes = [8, 384], strides = [1, 1]} : vector<64x384xf32> to vector<8x384xf32>
    %c1_122 = arith.constant 1 : index
    %c0_123 = arith.constant 0 : index
    %c0_124 = arith.constant 0 : index
    %410 = vector.load %arg3[%c1_122, %c0_123, %c0_124] : memref<3x128x384xf32, #tpu.memory_space<vmem>>, vector<1x128x384xf32>
    %411 = vector.shape_cast %410 : vector<1x128x384xf32> to vector<128x384xf32>
    %cst_125 = arith.constant dense<0.000000e+00> : vector<8x384xf32>
    %412 = tpu.matmul %407, %411, %cst_125 {dimension_numbers = #tpu.dot_dimension_numbers<[1], [0], [0], [1], [0, 0, 1, 1], [], []>} : vector<8x128xf32>, vector<128x384xf32>, vector<8x384xf32> -> vector<8x384xf32>
    %413 = vector.extract_strided_slice %409 {offsets = [0, 0], sizes = [8, 128], strides = [1, 1]} : vector<8x384xf32> to vector<8x128xf32>
    %414 = vector.extract_strided_slice %412 {offsets = [0, 0], sizes = [8, 128], strides = [1, 1]} : vector<8x384xf32> to vector<8x128xf32>
    %415 = arith.addf %413, %414 : vector<8x128xf32>
    %416 = arith.negf %415 : vector<8x128xf32>
    %417 = math.exp %416 : vector<8x128xf32>
    %cst_126 = arith.constant 1.000000e+00 : f32
    %418 = vector.broadcast %cst_126 : f32 to vector<8x128xf32>
    %419 = arith.addf %418, %417 : vector<8x128xf32>
    %420 = arith.divf %418, %419 : vector<8x128xf32>
    %421 = vector.extract_strided_slice %409 {offsets = [0, 128], sizes = [8, 128], strides = [1, 1]} : vector<8x384xf32> to vector<8x128xf32>
    %422 = vector.extract_strided_slice %412 {offsets = [0, 128], sizes = [8, 128], strides = [1, 1]} : vector<8x384xf32> to vector<8x128xf32>
    %423 = arith.addf %421, %422 : vector<8x128xf32>
    %424 = arith.negf %423 : vector<8x128xf32>
    %425 = math.exp %424 : vector<8x128xf32>
    %cst_127 = arith.constant 1.000000e+00 : f32
    %426 = vector.broadcast %cst_127 : f32 to vector<8x128xf32>
    %427 = arith.addf %426, %425 : vector<8x128xf32>
    %428 = arith.divf %426, %427 : vector<8x128xf32>
    %429 = vector.extract_strided_slice %409 {offsets = [0, 256], sizes = [8, 128], strides = [1, 1]} : vector<8x384xf32> to vector<8x128xf32>
    %430 = vector.extract_strided_slice %412 {offsets = [0, 256], sizes = [8, 128], strides = [1, 1]} : vector<8x384xf32> to vector<8x128xf32>
    %431 = arith.addf %430, %259 : vector<8x128xf32>
    %432 = arith.mulf %420, %431 : vector<8x128xf32>
    %433 = arith.addf %429, %432 : vector<8x128xf32>
    %434 = math.tanh %433 : vector<8x128xf32>
    %cst_128 = arith.constant 1.000000e+00 : f32
    %435 = vector.broadcast %cst_128 : f32 to vector<8x128xf32>
    %436 = arith.subf %435, %428 : vector<8x128xf32>
    %437 = arith.mulf %436, %434 : vector<8x128xf32>
    %438 = arith.mulf %428, %407 : vector<8x128xf32>
    %439 = arith.addf %437, %438 : vector<8x128xf32>
    %c40_129 = arith.constant 40 : index
    %c0_130 = arith.constant 0 : index
    %440 = vector.load %arg9[%c40_129, %c0_130] : memref<64x128xf32, #tpu.memory_space<vmem>>, vector<8x128xf32>
    tpu.vector_store %arg9[%c40_129, %c0_130], %439 {strides = array<i32>} : memref<64x128xf32, #tpu.memory_space<vmem>>, vector<8x128xf32>,
    %441 = vector.extract_strided_slice %255 {offsets = [48, 0], sizes = [8, 384], strides = [1, 1]} : vector<64x384xf32> to vector<8x384xf32>
    %c1_131 = arith.constant 1 : index
    %c0_132 = arith.constant 0 : index
    %c0_133 = arith.constant 0 : index
    %442 = vector.load %arg3[%c1_131, %c0_132, %c0_133] : memref<3x128x384xf32, #tpu.memory_space<vmem>>, vector<1x128x384xf32>
    %443 = vector.shape_cast %442 : vector<1x128x384xf32> to vector<128x384xf32>
    %cst_134 = arith.constant dense<0.000000e+00> : vector<8x384xf32>
    %444 = tpu.matmul %439, %443, %cst_134 {dimension_numbers = #tpu.dot_dimension_numbers<[1], [0], [0], [1], [0, 0, 1, 1], [], []>} : vector<8x128xf32>, vector<128x384xf32>, vector<8x384xf32> -> vector<8x384xf32>
    %445 = vector.extract_strided_slice %441 {offsets = [0, 0], sizes = [8, 128], strides = [1, 1]} : vector<8x384xf32> to vector<8x128xf32>
    %446 = vector.extract_strided_slice %444 {offsets = [0, 0], sizes = [8, 128], strides = [1, 1]} : vector<8x384xf32> to vector<8x128xf32>
    %447 = arith.addf %445, %446 : vector<8x128xf32>
    %448 = arith.negf %447 : vector<8x128xf32>
    %449 = math.exp %448 : vector<8x128xf32>
    %cst_135 = arith.constant 1.000000e+00 : f32
    %450 = vector.broadcast %cst_135 : f32 to vector<8x128xf32>
    %451 = arith.addf %450, %449 : vector<8x128xf32>
    %452 = arith.divf %450, %451 : vector<8x128xf32>
    %453 = vector.extract_strided_slice %441 {offsets = [0, 128], sizes = [8, 128], strides = [1, 1]} : vector<8x384xf32> to vector<8x128xf32>
    %454 = vector.extract_strided_slice %444 {offsets = [0, 128], sizes = [8, 128], strides = [1, 1]} : vector<8x384xf32> to vector<8x128xf32>
    %455 = arith.addf %453, %454 : vector<8x128xf32>
    %456 = arith.negf %455 : vector<8x128xf32>
    %457 = math.exp %456 : vector<8x128xf32>
    %cst_136 = arith.constant 1.000000e+00 : f32
    %458 = vector.broadcast %cst_136 : f32 to vector<8x128xf32>
    %459 = arith.addf %458, %457 : vector<8x128xf32>
    %460 = arith.divf %458, %459 : vector<8x128xf32>
    %461 = vector.extract_strided_slice %441 {offsets = [0, 256], sizes = [8, 128], strides = [1, 1]} : vector<8x384xf32> to vector<8x128xf32>
    %462 = vector.extract_strided_slice %444 {offsets = [0, 256], sizes = [8, 128], strides = [1, 1]} : vector<8x384xf32> to vector<8x128xf32>
    %463 = arith.addf %462, %259 : vector<8x128xf32>
    %464 = arith.mulf %452, %463 : vector<8x128xf32>
    %465 = arith.addf %461, %464 : vector<8x128xf32>
    %466 = math.tanh %465 : vector<8x128xf32>
    %cst_137 = arith.constant 1.000000e+00 : f32
    %467 = vector.broadcast %cst_137 : f32 to vector<8x128xf32>
    %468 = arith.subf %467, %460 : vector<8x128xf32>
    %469 = arith.mulf %468, %466 : vector<8x128xf32>
    %470 = arith.mulf %460, %439 : vector<8x128xf32>
    %471 = arith.addf %469, %470 : vector<8x128xf32>
    %c48_138 = arith.constant 48 : index
    %c0_139 = arith.constant 0 : index
    %472 = vector.load %arg9[%c48_138, %c0_139] : memref<64x128xf32, #tpu.memory_space<vmem>>, vector<8x128xf32>
    tpu.vector_store %arg9[%c48_138, %c0_139], %471 {strides = array<i32>} : memref<64x128xf32, #tpu.memory_space<vmem>>, vector<8x128xf32>,
    %473 = vector.extract_strided_slice %255 {offsets = [56, 0], sizes = [8, 384], strides = [1, 1]} : vector<64x384xf32> to vector<8x384xf32>
    %c1_140 = arith.constant 1 : index
    %c0_141 = arith.constant 0 : index
    %c0_142 = arith.constant 0 : index
    %474 = vector.load %arg3[%c1_140, %c0_141, %c0_142] : memref<3x128x384xf32, #tpu.memory_space<vmem>>, vector<1x128x384xf32>
    %475 = vector.shape_cast %474 : vector<1x128x384xf32> to vector<128x384xf32>
    %cst_143 = arith.constant dense<0.000000e+00> : vector<8x384xf32>
    %476 = tpu.matmul %471, %475, %cst_143 {dimension_numbers = #tpu.dot_dimension_numbers<[1], [0], [0], [1], [0, 0, 1, 1], [], []>} : vector<8x128xf32>, vector<128x384xf32>, vector<8x384xf32> -> vector<8x384xf32>
    %477 = vector.extract_strided_slice %473 {offsets = [0, 0], sizes = [8, 128], strides = [1, 1]} : vector<8x384xf32> to vector<8x128xf32>
    %478 = vector.extract_strided_slice %476 {offsets = [0, 0], sizes = [8, 128], strides = [1, 1]} : vector<8x384xf32> to vector<8x128xf32>
    %479 = arith.addf %477, %478 : vector<8x128xf32>
    %480 = arith.negf %479 : vector<8x128xf32>
    %481 = math.exp %480 : vector<8x128xf32>
    %cst_144 = arith.constant 1.000000e+00 : f32
    %482 = vector.broadcast %cst_144 : f32 to vector<8x128xf32>
    %483 = arith.addf %482, %481 : vector<8x128xf32>
    %484 = arith.divf %482, %483 : vector<8x128xf32>
    %485 = vector.extract_strided_slice %473 {offsets = [0, 128], sizes = [8, 128], strides = [1, 1]} : vector<8x384xf32> to vector<8x128xf32>
    %486 = vector.extract_strided_slice %476 {offsets = [0, 128], sizes = [8, 128], strides = [1, 1]} : vector<8x384xf32> to vector<8x128xf32>
    %487 = arith.addf %485, %486 : vector<8x128xf32>
    %488 = arith.negf %487 : vector<8x128xf32>
    %489 = math.exp %488 : vector<8x128xf32>
    %cst_145 = arith.constant 1.000000e+00 : f32
    %490 = vector.broadcast %cst_145 : f32 to vector<8x128xf32>
    %491 = arith.addf %490, %489 : vector<8x128xf32>
    %492 = arith.divf %490, %491 : vector<8x128xf32>
    %493 = vector.extract_strided_slice %473 {offsets = [0, 256], sizes = [8, 128], strides = [1, 1]} : vector<8x384xf32> to vector<8x128xf32>
    %494 = vector.extract_strided_slice %476 {offsets = [0, 256], sizes = [8, 128], strides = [1, 1]} : vector<8x384xf32> to vector<8x128xf32>
    %495 = arith.addf %494, %259 : vector<8x128xf32>
    %496 = arith.mulf %484, %495 : vector<8x128xf32>
    %497 = arith.addf %493, %496 : vector<8x128xf32>
    %498 = math.tanh %497 : vector<8x128xf32>
    %cst_146 = arith.constant 1.000000e+00 : f32
    %499 = vector.broadcast %cst_146 : f32 to vector<8x128xf32>
    %500 = arith.subf %499, %492 : vector<8x128xf32>
    %501 = arith.mulf %500, %498 : vector<8x128xf32>
    %502 = arith.mulf %492, %471 : vector<8x128xf32>
    %503 = arith.addf %501, %502 : vector<8x128xf32>
    %c56_147 = arith.constant 56 : index
    %c0_148 = arith.constant 0 : index
    %504 = vector.load %arg9[%c56_147, %c0_148] : memref<64x128xf32, #tpu.memory_space<vmem>>, vector<8x128xf32>
    tpu.vector_store %arg9[%c56_147, %c0_148], %503 {strides = array<i32>} : memref<64x128xf32, #tpu.memory_space<vmem>>, vector<8x128xf32>,
    %c0_149 = arith.constant 0 : index
    %c0_150 = arith.constant 0 : index
    %505 = vector.load %arg9[%c0_149, %c0_150] : memref<64x128xf32, #tpu.memory_space<vmem>>, vector<64x128xf32>
    %c1_151 = arith.constant 1 : index
    %c0_152 = arith.constant 0 : index
    %c0_153 = arith.constant 0 : index
    %506 = vector.load %arg2[%c1_151, %c0_152, %c0_153] : memref<2x128x384xf32, #tpu.memory_space<vmem>>, vector<1x128x384xf32>
    %507 = vector.shape_cast %506 : vector<1x128x384xf32> to vector<128x384xf32>
    %cst_154 = arith.constant dense<0.000000e+00> : vector<64x384xf32>
    %508 = tpu.matmul %505, %507, %cst_154 {dimension_numbers = #tpu.dot_dimension_numbers<[1], [0], [0], [1], [0, 0, 1, 1], [], []>} : vector<64x128xf32>, vector<128x384xf32>, vector<64x384xf32> -> vector<64x384xf32>
    %c2 = arith.constant 2 : index
    %c0_155 = arith.constant 0 : index
    %c0_156 = arith.constant 0 : index
    %509 = vector.load %arg4[%c2, %c0_155, %c0_156] : memref<3x1x384xf32, #tpu.memory_space<vmem>>, vector<1x1x384xf32>
    %510 = vector.shape_cast %509 : vector<1x1x384xf32> to vector<1x384xf32>
    %511 = vector.broadcast %510 : vector<1x384xf32> to vector<64x384xf32>
    %512 = arith.addf %508, %511 : vector<64x384xf32>
    %c2_157 = arith.constant 2 : index
    %c0_158 = arith.constant 0 : index
    %c0_159 = arith.constant 0 : index
    %513 = vector.load %arg5[%c2_157, %c0_158, %c0_159] : memref<3x1x128xf32, #tpu.memory_space<vmem>>, vector<1x1x128xf32>
    %514 = vector.shape_cast %513 : vector<1x1x128xf32> to vector<1x128xf32>
    %515 = vector.shape_cast %514 : vector<1x128xf32> to vector<1x128xf32>
    %516 = vector.broadcast %515 : vector<1x128xf32> to vector<8x128xf32>
    %517 = vector.extract_strided_slice %512 {offsets = [0, 0], sizes = [8, 384], strides = [1, 1]} : vector<64x384xf32> to vector<8x384xf32>
    %518 = vector.extract_strided_slice %517 {offsets = [0, 0], sizes = [8, 128], strides = [1, 1]} : vector<8x384xf32> to vector<8x128xf32>
    %519 = arith.negf %518 : vector<8x128xf32>
    %520 = math.exp %519 : vector<8x128xf32>
    %cst_160 = arith.constant 1.000000e+00 : f32
    %521 = vector.broadcast %cst_160 : f32 to vector<8x128xf32>
    %522 = arith.addf %521, %520 : vector<8x128xf32>
    %523 = arith.divf %521, %522 : vector<8x128xf32>
    %524 = vector.extract_strided_slice %517 {offsets = [0, 128], sizes = [8, 128], strides = [1, 1]} : vector<8x384xf32> to vector<8x128xf32>
    %525 = arith.negf %524 : vector<8x128xf32>
    %526 = math.exp %525 : vector<8x128xf32>
    %cst_161 = arith.constant 1.000000e+00 : f32
    %527 = vector.broadcast %cst_161 : f32 to vector<8x128xf32>
    %528 = arith.addf %527, %526 : vector<8x128xf32>
    %529 = arith.divf %527, %528 : vector<8x128xf32>
    %530 = vector.extract_strided_slice %517 {offsets = [0, 256], sizes = [8, 128], strides = [1, 1]} : vector<8x384xf32> to vector<8x128xf32>
    %531 = arith.mulf %523, %516 : vector<8x128xf32>
    %532 = arith.addf %530, %531 : vector<8x128xf32>
    %533 = math.tanh %532 : vector<8x128xf32>
    %cst_162 = arith.constant 1.000000e+00 : f32
    %534 = vector.broadcast %cst_162 : f32 to vector<8x128xf32>
    %535 = arith.subf %534, %529 : vector<8x128xf32>
    %536 = arith.mulf %535, %533 : vector<8x128xf32>
    %c0_163 = arith.constant 0 : index
    %c0_164 = arith.constant 0 : index
    %537 = vector.load %arg9[%c0_163, %c0_164] : memref<64x128xf32, #tpu.memory_space<vmem>>, vector<8x128xf32>
    tpu.vector_store %arg9[%c0_163, %c0_164], %536 {strides = array<i32>} : memref<64x128xf32, #tpu.memory_space<vmem>>, vector<8x128xf32>,
    %538 = vector.extract_strided_slice %512 {offsets = [8, 0], sizes = [8, 384], strides = [1, 1]} : vector<64x384xf32> to vector<8x384xf32>
    %c2_165 = arith.constant 2 : index
    %c0_166 = arith.constant 0 : index
    %c0_167 = arith.constant 0 : index
    %539 = vector.load %arg3[%c2_165, %c0_166, %c0_167] : memref<3x128x384xf32, #tpu.memory_space<vmem>>, vector<1x128x384xf32>
    %540 = vector.shape_cast %539 : vector<1x128x384xf32> to vector<128x384xf32>
    %cst_168 = arith.constant dense<0.000000e+00> : vector<8x384xf32>
    %541 = tpu.matmul %536, %540, %cst_168 {dimension_numbers = #tpu.dot_dimension_numbers<[1], [0], [0], [1], [0, 0, 1, 1], [], []>} : vector<8x128xf32>, vector<128x384xf32>, vector<8x384xf32> -> vector<8x384xf32>
    %542 = vector.extract_strided_slice %538 {offsets = [0, 0], sizes = [8, 128], strides = [1, 1]} : vector<8x384xf32> to vector<8x128xf32>
    %543 = vector.extract_strided_slice %541 {offsets = [0, 0], sizes = [8, 128], strides = [1, 1]} : vector<8x384xf32> to vector<8x128xf32>
    %544 = arith.addf %542, %543 : vector<8x128xf32>
    %545 = arith.negf %544 : vector<8x128xf32>
    %546 = math.exp %545 : vector<8x128xf32>
    %cst_169 = arith.constant 1.000000e+00 : f32
    %547 = vector.broadcast %cst_169 : f32 to vector<8x128xf32>
    %548 = arith.addf %547, %546 : vector<8x128xf32>
    %549 = arith.divf %547, %548 : vector<8x128xf32>
    %550 = vector.extract_strided_slice %538 {offsets = [0, 128], sizes = [8, 128], strides = [1, 1]} : vector<8x384xf32> to vector<8x128xf32>
    %551 = vector.extract_strided_slice %541 {offsets = [0, 128], sizes = [8, 128], strides = [1, 1]} : vector<8x384xf32> to vector<8x128xf32>
    %552 = arith.addf %550, %551 : vector<8x128xf32>
    %553 = arith.negf %552 : vector<8x128xf32>
    %554 = math.exp %553 : vector<8x128xf32>
    %cst_170 = arith.constant 1.000000e+00 : f32
    %555 = vector.broadcast %cst_170 : f32 to vector<8x128xf32>
    %556 = arith.addf %555, %554 : vector<8x128xf32>
    %557 = arith.divf %555, %556 : vector<8x128xf32>
    %558 = vector.extract_strided_slice %538 {offsets = [0, 256], sizes = [8, 128], strides = [1, 1]} : vector<8x384xf32> to vector<8x128xf32>
    %559 = vector.extract_strided_slice %541 {offsets = [0, 256], sizes = [8, 128], strides = [1, 1]} : vector<8x384xf32> to vector<8x128xf32>
    %560 = arith.addf %559, %516 : vector<8x128xf32>
    %561 = arith.mulf %549, %560 : vector<8x128xf32>
    %562 = arith.addf %558, %561 : vector<8x128xf32>
    %563 = math.tanh %562 : vector<8x128xf32>
    %cst_171 = arith.constant 1.000000e+00 : f32
    %564 = vector.broadcast %cst_171 : f32 to vector<8x128xf32>
    %565 = arith.subf %564, %557 : vector<8x128xf32>
    %566 = arith.mulf %565, %563 : vector<8x128xf32>
    %567 = arith.mulf %557, %536 : vector<8x128xf32>
    %568 = arith.addf %566, %567 : vector<8x128xf32>
    %c8_172 = arith.constant 8 : index
    %c0_173 = arith.constant 0 : index
    %569 = vector.load %arg9[%c8_172, %c0_173] : memref<64x128xf32, #tpu.memory_space<vmem>>, vector<8x128xf32>
    tpu.vector_store %arg9[%c8_172, %c0_173], %568 {strides = array<i32>} : memref<64x128xf32, #tpu.memory_space<vmem>>, vector<8x128xf32>,
    %570 = vector.extract_strided_slice %512 {offsets = [16, 0], sizes = [8, 384], strides = [1, 1]} : vector<64x384xf32> to vector<8x384xf32>
    %c2_174 = arith.constant 2 : index
    %c0_175 = arith.constant 0 : index
    %c0_176 = arith.constant 0 : index
    %571 = vector.load %arg3[%c2_174, %c0_175, %c0_176] : memref<3x128x384xf32, #tpu.memory_space<vmem>>, vector<1x128x384xf32>
    %572 = vector.shape_cast %571 : vector<1x128x384xf32> to vector<128x384xf32>
    %cst_177 = arith.constant dense<0.000000e+00> : vector<8x384xf32>
    %573 = tpu.matmul %568, %572, %cst_177 {dimension_numbers = #tpu.dot_dimension_numbers<[1], [0], [0], [1], [0, 0, 1, 1], [], []>} : vector<8x128xf32>, vector<128x384xf32>, vector<8x384xf32> -> vector<8x384xf32>
    %574 = vector.extract_strided_slice %570 {offsets = [0, 0], sizes = [8, 128], strides = [1, 1]} : vector<8x384xf32> to vector<8x128xf32>
    %575 = vector.extract_strided_slice %573 {offsets = [0, 0], sizes = [8, 128], strides = [1, 1]} : vector<8x384xf32> to vector<8x128xf32>
    %576 = arith.addf %574, %575 : vector<8x128xf32>
    %577 = arith.negf %576 : vector<8x128xf32>
    %578 = math.exp %577 : vector<8x128xf32>
    %cst_178 = arith.constant 1.000000e+00 : f32
    %579 = vector.broadcast %cst_178 : f32 to vector<8x128xf32>
    %580 = arith.addf %579, %578 : vector<8x128xf32>
    %581 = arith.divf %579, %580 : vector<8x128xf32>
    %582 = vector.extract_strided_slice %570 {offsets = [0, 128], sizes = [8, 128], strides = [1, 1]} : vector<8x384xf32> to vector<8x128xf32>
    %583 = vector.extract_strided_slice %573 {offsets = [0, 128], sizes = [8, 128], strides = [1, 1]} : vector<8x384xf32> to vector<8x128xf32>
    %584 = arith.addf %582, %583 : vector<8x128xf32>
    %585 = arith.negf %584 : vector<8x128xf32>
    %586 = math.exp %585 : vector<8x128xf32>
    %cst_179 = arith.constant 1.000000e+00 : f32
    %587 = vector.broadcast %cst_179 : f32 to vector<8x128xf32>
    %588 = arith.addf %587, %586 : vector<8x128xf32>
    %589 = arith.divf %587, %588 : vector<8x128xf32>
    %590 = vector.extract_strided_slice %570 {offsets = [0, 256], sizes = [8, 128], strides = [1, 1]} : vector<8x384xf32> to vector<8x128xf32>
    %591 = vector.extract_strided_slice %573 {offsets = [0, 256], sizes = [8, 128], strides = [1, 1]} : vector<8x384xf32> to vector<8x128xf32>
    %592 = arith.addf %591, %516 : vector<8x128xf32>
    %593 = arith.mulf %581, %592 : vector<8x128xf32>
    %594 = arith.addf %590, %593 : vector<8x128xf32>
    %595 = math.tanh %594 : vector<8x128xf32>
    %cst_180 = arith.constant 1.000000e+00 : f32
    %596 = vector.broadcast %cst_180 : f32 to vector<8x128xf32>
    %597 = arith.subf %596, %589 : vector<8x128xf32>
    %598 = arith.mulf %597, %595 : vector<8x128xf32>
    %599 = arith.mulf %589, %568 : vector<8x128xf32>
    %600 = arith.addf %598, %599 : vector<8x128xf32>
    %c16_181 = arith.constant 16 : index
    %c0_182 = arith.constant 0 : index
    %601 = vector.load %arg9[%c16_181, %c0_182] : memref<64x128xf32, #tpu.memory_space<vmem>>, vector<8x128xf32>
    tpu.vector_store %arg9[%c16_181, %c0_182], %600 {strides = array<i32>} : memref<64x128xf32, #tpu.memory_space<vmem>>, vector<8x128xf32>,
    %602 = vector.extract_strided_slice %512 {offsets = [24, 0], sizes = [8, 384], strides = [1, 1]} : vector<64x384xf32> to vector<8x384xf32>
    %c2_183 = arith.constant 2 : index
    %c0_184 = arith.constant 0 : index
    %c0_185 = arith.constant 0 : index
    %603 = vector.load %arg3[%c2_183, %c0_184, %c0_185] : memref<3x128x384xf32, #tpu.memory_space<vmem>>, vector<1x128x384xf32>
    %604 = vector.shape_cast %603 : vector<1x128x384xf32> to vector<128x384xf32>
    %cst_186 = arith.constant dense<0.000000e+00> : vector<8x384xf32>
    %605 = tpu.matmul %600, %604, %cst_186 {dimension_numbers = #tpu.dot_dimension_numbers<[1], [0], [0], [1], [0, 0, 1, 1], [], []>} : vector<8x128xf32>, vector<128x384xf32>, vector<8x384xf32> -> vector<8x384xf32>
    %606 = vector.extract_strided_slice %602 {offsets = [0, 0], sizes = [8, 128], strides = [1, 1]} : vector<8x384xf32> to vector<8x128xf32>
    %607 = vector.extract_strided_slice %605 {offsets = [0, 0], sizes = [8, 128], strides = [1, 1]} : vector<8x384xf32> to vector<8x128xf32>
    %608 = arith.addf %606, %607 : vector<8x128xf32>
    %609 = arith.negf %608 : vector<8x128xf32>
    %610 = math.exp %609 : vector<8x128xf32>
    %cst_187 = arith.constant 1.000000e+00 : f32
    %611 = vector.broadcast %cst_187 : f32 to vector<8x128xf32>
    %612 = arith.addf %611, %610 : vector<8x128xf32>
    %613 = arith.divf %611, %612 : vector<8x128xf32>
    %614 = vector.extract_strided_slice %602 {offsets = [0, 128], sizes = [8, 128], strides = [1, 1]} : vector<8x384xf32> to vector<8x128xf32>
    %615 = vector.extract_strided_slice %605 {offsets = [0, 128], sizes = [8, 128], strides = [1, 1]} : vector<8x384xf32> to vector<8x128xf32>
    %616 = arith.addf %614, %615 : vector<8x128xf32>
    %617 = arith.negf %616 : vector<8x128xf32>
    %618 = math.exp %617 : vector<8x128xf32>
    %cst_188 = arith.constant 1.000000e+00 : f32
    %619 = vector.broadcast %cst_188 : f32 to vector<8x128xf32>
    %620 = arith.addf %619, %618 : vector<8x128xf32>
    %621 = arith.divf %619, %620 : vector<8x128xf32>
    %622 = vector.extract_strided_slice %602 {offsets = [0, 256], sizes = [8, 128], strides = [1, 1]} : vector<8x384xf32> to vector<8x128xf32>
    %623 = vector.extract_strided_slice %605 {offsets = [0, 256], sizes = [8, 128], strides = [1, 1]} : vector<8x384xf32> to vector<8x128xf32>
    %624 = arith.addf %623, %516 : vector<8x128xf32>
    %625 = arith.mulf %613, %624 : vector<8x128xf32>
    %626 = arith.addf %622, %625 : vector<8x128xf32>
    %627 = math.tanh %626 : vector<8x128xf32>
    %cst_189 = arith.constant 1.000000e+00 : f32
    %628 = vector.broadcast %cst_189 : f32 to vector<8x128xf32>
    %629 = arith.subf %628, %621 : vector<8x128xf32>
    %630 = arith.mulf %629, %627 : vector<8x128xf32>
    %631 = arith.mulf %621, %600 : vector<8x128xf32>
    %632 = arith.addf %630, %631 : vector<8x128xf32>
    %c24_190 = arith.constant 24 : index
    %c0_191 = arith.constant 0 : index
    %633 = vector.load %arg9[%c24_190, %c0_191] : memref<64x128xf32, #tpu.memory_space<vmem>>, vector<8x128xf32>
    tpu.vector_store %arg9[%c24_190, %c0_191], %632 {strides = array<i32>} : memref<64x128xf32, #tpu.memory_space<vmem>>, vector<8x128xf32>,
    %634 = vector.extract_strided_slice %512 {offsets = [32, 0], sizes = [8, 384], strides = [1, 1]} : vector<64x384xf32> to vector<8x384xf32>
    %c2_192 = arith.constant 2 : index
    %c0_193 = arith.constant 0 : index
    %c0_194 = arith.constant 0 : index
    %635 = vector.load %arg3[%c2_192, %c0_193, %c0_194] : memref<3x128x384xf32, #tpu.memory_space<vmem>>, vector<1x128x384xf32>
    %636 = vector.shape_cast %635 : vector<1x128x384xf32> to vector<128x384xf32>
    %cst_195 = arith.constant dense<0.000000e+00> : vector<8x384xf32>
    %637 = tpu.matmul %632, %636, %cst_195 {dimension_numbers = #tpu.dot_dimension_numbers<[1], [0], [0], [1], [0, 0, 1, 1], [], []>} : vector<8x128xf32>, vector<128x384xf32>, vector<8x384xf32> -> vector<8x384xf32>
    %638 = vector.extract_strided_slice %634 {offsets = [0, 0], sizes = [8, 128], strides = [1, 1]} : vector<8x384xf32> to vector<8x128xf32>
    %639 = vector.extract_strided_slice %637 {offsets = [0, 0], sizes = [8, 128], strides = [1, 1]} : vector<8x384xf32> to vector<8x128xf32>
    %640 = arith.addf %638, %639 : vector<8x128xf32>
    %641 = arith.negf %640 : vector<8x128xf32>
    %642 = math.exp %641 : vector<8x128xf32>
    %cst_196 = arith.constant 1.000000e+00 : f32
    %643 = vector.broadcast %cst_196 : f32 to vector<8x128xf32>
    %644 = arith.addf %643, %642 : vector<8x128xf32>
    %645 = arith.divf %643, %644 : vector<8x128xf32>
    %646 = vector.extract_strided_slice %634 {offsets = [0, 128], sizes = [8, 128], strides = [1, 1]} : vector<8x384xf32> to vector<8x128xf32>
    %647 = vector.extract_strided_slice %637 {offsets = [0, 128], sizes = [8, 128], strides = [1, 1]} : vector<8x384xf32> to vector<8x128xf32>
    %648 = arith.addf %646, %647 : vector<8x128xf32>
    %649 = arith.negf %648 : vector<8x128xf32>
    %650 = math.exp %649 : vector<8x128xf32>
    %cst_197 = arith.constant 1.000000e+00 : f32
    %651 = vector.broadcast %cst_197 : f32 to vector<8x128xf32>
    %652 = arith.addf %651, %650 : vector<8x128xf32>
    %653 = arith.divf %651, %652 : vector<8x128xf32>
    %654 = vector.extract_strided_slice %634 {offsets = [0, 256], sizes = [8, 128], strides = [1, 1]} : vector<8x384xf32> to vector<8x128xf32>
    %655 = vector.extract_strided_slice %637 {offsets = [0, 256], sizes = [8, 128], strides = [1, 1]} : vector<8x384xf32> to vector<8x128xf32>
    %656 = arith.addf %655, %516 : vector<8x128xf32>
    %657 = arith.mulf %645, %656 : vector<8x128xf32>
    %658 = arith.addf %654, %657 : vector<8x128xf32>
    %659 = math.tanh %658 : vector<8x128xf32>
    %cst_198 = arith.constant 1.000000e+00 : f32
    %660 = vector.broadcast %cst_198 : f32 to vector<8x128xf32>
    %661 = arith.subf %660, %653 : vector<8x128xf32>
    %662 = arith.mulf %661, %659 : vector<8x128xf32>
    %663 = arith.mulf %653, %632 : vector<8x128xf32>
    %664 = arith.addf %662, %663 : vector<8x128xf32>
    %c32_199 = arith.constant 32 : index
    %c0_200 = arith.constant 0 : index
    %665 = vector.load %arg9[%c32_199, %c0_200] : memref<64x128xf32, #tpu.memory_space<vmem>>, vector<8x128xf32>
    tpu.vector_store %arg9[%c32_199, %c0_200], %664 {strides = array<i32>} : memref<64x128xf32, #tpu.memory_space<vmem>>, vector<8x128xf32>,
    %666 = vector.extract_strided_slice %512 {offsets = [40, 0], sizes = [8, 384], strides = [1, 1]} : vector<64x384xf32> to vector<8x384xf32>
    %c2_201 = arith.constant 2 : index
    %c0_202 = arith.constant 0 : index
    %c0_203 = arith.constant 0 : index
    %667 = vector.load %arg3[%c2_201, %c0_202, %c0_203] : memref<3x128x384xf32, #tpu.memory_space<vmem>>, vector<1x128x384xf32>
    %668 = vector.shape_cast %667 : vector<1x128x384xf32> to vector<128x384xf32>
    %cst_204 = arith.constant dense<0.000000e+00> : vector<8x384xf32>
    %669 = tpu.matmul %664, %668, %cst_204 {dimension_numbers = #tpu.dot_dimension_numbers<[1], [0], [0], [1], [0, 0, 1, 1], [], []>} : vector<8x128xf32>, vector<128x384xf32>, vector<8x384xf32> -> vector<8x384xf32>
    %670 = vector.extract_strided_slice %666 {offsets = [0, 0], sizes = [8, 128], strides = [1, 1]} : vector<8x384xf32> to vector<8x128xf32>
    %671 = vector.extract_strided_slice %669 {offsets = [0, 0], sizes = [8, 128], strides = [1, 1]} : vector<8x384xf32> to vector<8x128xf32>
    %672 = arith.addf %670, %671 : vector<8x128xf32>
    %673 = arith.negf %672 : vector<8x128xf32>
    %674 = math.exp %673 : vector<8x128xf32>
    %cst_205 = arith.constant 1.000000e+00 : f32
    %675 = vector.broadcast %cst_205 : f32 to vector<8x128xf32>
    %676 = arith.addf %675, %674 : vector<8x128xf32>
    %677 = arith.divf %675, %676 : vector<8x128xf32>
    %678 = vector.extract_strided_slice %666 {offsets = [0, 128], sizes = [8, 128], strides = [1, 1]} : vector<8x384xf32> to vector<8x128xf32>
    %679 = vector.extract_strided_slice %669 {offsets = [0, 128], sizes = [8, 128], strides = [1, 1]} : vector<8x384xf32> to vector<8x128xf32>
    %680 = arith.addf %678, %679 : vector<8x128xf32>
    %681 = arith.negf %680 : vector<8x128xf32>
    %682 = math.exp %681 : vector<8x128xf32>
    %cst_206 = arith.constant 1.000000e+00 : f32
    %683 = vector.broadcast %cst_206 : f32 to vector<8x128xf32>
    %684 = arith.addf %683, %682 : vector<8x128xf32>
    %685 = arith.divf %683, %684 : vector<8x128xf32>
    %686 = vector.extract_strided_slice %666 {offsets = [0, 256], sizes = [8, 128], strides = [1, 1]} : vector<8x384xf32> to vector<8x128xf32>
    %687 = vector.extract_strided_slice %669 {offsets = [0, 256], sizes = [8, 128], strides = [1, 1]} : vector<8x384xf32> to vector<8x128xf32>
    %688 = arith.addf %687, %516 : vector<8x128xf32>
    %689 = arith.mulf %677, %688 : vector<8x128xf32>
    %690 = arith.addf %686, %689 : vector<8x128xf32>
    %691 = math.tanh %690 : vector<8x128xf32>
    %cst_207 = arith.constant 1.000000e+00 : f32
    %692 = vector.broadcast %cst_207 : f32 to vector<8x128xf32>
    %693 = arith.subf %692, %685 : vector<8x128xf32>
    %694 = arith.mulf %693, %691 : vector<8x128xf32>
    %695 = arith.mulf %685, %664 : vector<8x128xf32>
    %696 = arith.addf %694, %695 : vector<8x128xf32>
    %c40_208 = arith.constant 40 : index
    %c0_209 = arith.constant 0 : index
    %697 = vector.load %arg9[%c40_208, %c0_209] : memref<64x128xf32, #tpu.memory_space<vmem>>, vector<8x128xf32>
    tpu.vector_store %arg9[%c40_208, %c0_209], %696 {strides = array<i32>} : memref<64x128xf32, #tpu.memory_space<vmem>>, vector<8x128xf32>,
    %698 = vector.extract_strided_slice %512 {offsets = [48, 0], sizes = [8, 384], strides = [1, 1]} : vector<64x384xf32> to vector<8x384xf32>
    %c2_210 = arith.constant 2 : index
    %c0_211 = arith.constant 0 : index
    %c0_212 = arith.constant 0 : index
    %699 = vector.load %arg3[%c2_210, %c0_211, %c0_212] : memref<3x128x384xf32, #tpu.memory_space<vmem>>, vector<1x128x384xf32>
    %700 = vector.shape_cast %699 : vector<1x128x384xf32> to vector<128x384xf32>
    %cst_213 = arith.constant dense<0.000000e+00> : vector<8x384xf32>
    %701 = tpu.matmul %696, %700, %cst_213 {dimension_numbers = #tpu.dot_dimension_numbers<[1], [0], [0], [1], [0, 0, 1, 1], [], []>} : vector<8x128xf32>, vector<128x384xf32>, vector<8x384xf32> -> vector<8x384xf32>
    %702 = vector.extract_strided_slice %698 {offsets = [0, 0], sizes = [8, 128], strides = [1, 1]} : vector<8x384xf32> to vector<8x128xf32>
    %703 = vector.extract_strided_slice %701 {offsets = [0, 0], sizes = [8, 128], strides = [1, 1]} : vector<8x384xf32> to vector<8x128xf32>
    %704 = arith.addf %702, %703 : vector<8x128xf32>
    %705 = arith.negf %704 : vector<8x128xf32>
    %706 = math.exp %705 : vector<8x128xf32>
    %cst_214 = arith.constant 1.000000e+00 : f32
    %707 = vector.broadcast %cst_214 : f32 to vector<8x128xf32>
    %708 = arith.addf %707, %706 : vector<8x128xf32>
    %709 = arith.divf %707, %708 : vector<8x128xf32>
    %710 = vector.extract_strided_slice %698 {offsets = [0, 128], sizes = [8, 128], strides = [1, 1]} : vector<8x384xf32> to vector<8x128xf32>
    %711 = vector.extract_strided_slice %701 {offsets = [0, 128], sizes = [8, 128], strides = [1, 1]} : vector<8x384xf32> to vector<8x128xf32>
    %712 = arith.addf %710, %711 : vector<8x128xf32>
    %713 = arith.negf %712 : vector<8x128xf32>
    %714 = math.exp %713 : vector<8x128xf32>
    %cst_215 = arith.constant 1.000000e+00 : f32
    %715 = vector.broadcast %cst_215 : f32 to vector<8x128xf32>
    %716 = arith.addf %715, %714 : vector<8x128xf32>
    %717 = arith.divf %715, %716 : vector<8x128xf32>
    %718 = vector.extract_strided_slice %698 {offsets = [0, 256], sizes = [8, 128], strides = [1, 1]} : vector<8x384xf32> to vector<8x128xf32>
    %719 = vector.extract_strided_slice %701 {offsets = [0, 256], sizes = [8, 128], strides = [1, 1]} : vector<8x384xf32> to vector<8x128xf32>
    %720 = arith.addf %719, %516 : vector<8x128xf32>
    %721 = arith.mulf %709, %720 : vector<8x128xf32>
    %722 = arith.addf %718, %721 : vector<8x128xf32>
    %723 = math.tanh %722 : vector<8x128xf32>
    %cst_216 = arith.constant 1.000000e+00 : f32
    %724 = vector.broadcast %cst_216 : f32 to vector<8x128xf32>
    %725 = arith.subf %724, %717 : vector<8x128xf32>
    %726 = arith.mulf %725, %723 : vector<8x128xf32>
    %727 = arith.mulf %717, %696 : vector<8x128xf32>
    %728 = arith.addf %726, %727 : vector<8x128xf32>
    %c48_217 = arith.constant 48 : index
    %c0_218 = arith.constant 0 : index
    %729 = vector.load %arg9[%c48_217, %c0_218] : memref<64x128xf32, #tpu.memory_space<vmem>>, vector<8x128xf32>
    tpu.vector_store %arg9[%c48_217, %c0_218], %728 {strides = array<i32>} : memref<64x128xf32, #tpu.memory_space<vmem>>, vector<8x128xf32>,
    %730 = vector.extract_strided_slice %512 {offsets = [56, 0], sizes = [8, 384], strides = [1, 1]} : vector<64x384xf32> to vector<8x384xf32>
    %c2_219 = arith.constant 2 : index
    %c0_220 = arith.constant 0 : index
    %c0_221 = arith.constant 0 : index
    %731 = vector.load %arg3[%c2_219, %c0_220, %c0_221] : memref<3x128x384xf32, #tpu.memory_space<vmem>>, vector<1x128x384xf32>
    %732 = vector.shape_cast %731 : vector<1x128x384xf32> to vector<128x384xf32>
    %cst_222 = arith.constant dense<0.000000e+00> : vector<8x384xf32>
    %733 = tpu.matmul %728, %732, %cst_222 {dimension_numbers = #tpu.dot_dimension_numbers<[1], [0], [0], [1], [0, 0, 1, 1], [], []>} : vector<8x128xf32>, vector<128x384xf32>, vector<8x384xf32> -> vector<8x384xf32>
    %734 = vector.extract_strided_slice %730 {offsets = [0, 0], sizes = [8, 128], strides = [1, 1]} : vector<8x384xf32> to vector<8x128xf32>
    %735 = vector.extract_strided_slice %733 {offsets = [0, 0], sizes = [8, 128], strides = [1, 1]} : vector<8x384xf32> to vector<8x128xf32>
    %736 = arith.addf %734, %735 : vector<8x128xf32>
    %737 = arith.negf %736 : vector<8x128xf32>
    %738 = math.exp %737 : vector<8x128xf32>
    %cst_223 = arith.constant 1.000000e+00 : f32
    %739 = vector.broadcast %cst_223 : f32 to vector<8x128xf32>
    %740 = arith.addf %739, %738 : vector<8x128xf32>
    %741 = arith.divf %739, %740 : vector<8x128xf32>
    %742 = vector.extract_strided_slice %730 {offsets = [0, 128], sizes = [8, 128], strides = [1, 1]} : vector<8x384xf32> to vector<8x128xf32>
    %743 = vector.extract_strided_slice %733 {offsets = [0, 128], sizes = [8, 128], strides = [1, 1]} : vector<8x384xf32> to vector<8x128xf32>
    %744 = arith.addf %742, %743 : vector<8x128xf32>
    %745 = arith.negf %744 : vector<8x128xf32>
    %746 = math.exp %745 : vector<8x128xf32>
    %cst_224 = arith.constant 1.000000e+00 : f32
    %747 = vector.broadcast %cst_224 : f32 to vector<8x128xf32>
    %748 = arith.addf %747, %746 : vector<8x128xf32>
    %749 = arith.divf %747, %748 : vector<8x128xf32>
    %750 = vector.extract_strided_slice %730 {offsets = [0, 256], sizes = [8, 128], strides = [1, 1]} : vector<8x384xf32> to vector<8x128xf32>
    %751 = vector.extract_strided_slice %733 {offsets = [0, 256], sizes = [8, 128], strides = [1, 1]} : vector<8x384xf32> to vector<8x128xf32>
    %752 = arith.addf %751, %516 : vector<8x128xf32>
    %753 = arith.mulf %741, %752 : vector<8x128xf32>
    %754 = arith.addf %750, %753 : vector<8x128xf32>
    %755 = math.tanh %754 : vector<8x128xf32>
    %cst_225 = arith.constant 1.000000e+00 : f32
    %756 = vector.broadcast %cst_225 : f32 to vector<8x128xf32>
    %757 = arith.subf %756, %749 : vector<8x128xf32>
    %758 = arith.mulf %757, %755 : vector<8x128xf32>
    %759 = arith.mulf %749, %728 : vector<8x128xf32>
    %760 = arith.addf %758, %759 : vector<8x128xf32>
    %c56_226 = arith.constant 56 : index
    %c0_227 = arith.constant 0 : index
    %761 = vector.load %arg9[%c56_226, %c0_227] : memref<64x128xf32, #tpu.memory_space<vmem>>, vector<8x128xf32>
    tpu.vector_store %arg9[%c56_226, %c0_227], %760 {strides = array<i32>} : memref<64x128xf32, #tpu.memory_space<vmem>>, vector<8x128xf32>,
    %c0_228 = arith.constant 0 : index
    %c0_229 = arith.constant 0 : index
    %762 = vector.load %arg9[%c0_228, %c0_229] : memref<64x128xf32, #tpu.memory_space<vmem>>, vector<64x128xf32>
    %c0_230 = arith.constant 0 : index
    %c0_231 = arith.constant 0 : index
    %763 = vector.load %arg6[%c0_230, %c0_231] : memref<128x128xf32, #tpu.memory_space<vmem>>, vector<128x128xf32>
    %cst_232 = arith.constant dense<0.000000e+00> : vector<64x128xf32>
    %764 = tpu.matmul %762, %763, %cst_232 {dimension_numbers = #tpu.dot_dimension_numbers<[1], [0], [0], [1], [0, 0, 1, 1], [], []>} : vector<64x128xf32>, vector<128x128xf32>, vector<64x128xf32> -> vector<64x128xf32>
    %c0_233 = arith.constant 0 : index
    %c0_234 = arith.constant 0 : index
    %765 = vector.load %arg7[%c0_233, %c0_234] : memref<1x128xf32, #tpu.memory_space<vmem>>, vector<1x128xf32>
    %766 = vector.broadcast %765 : vector<1x128xf32> to vector<64x128xf32>
    %767 = arith.addf %764, %766 : vector<64x128xf32>
    %c0_235 = arith.constant 0 : index
    %c0_236 = arith.constant 0 : index
    %768 = vector.load %arg8[%c0_235, %c0_236] : memref<64x128xf32, #tpu.memory_space<vmem>>, vector<64x128xf32>
    tpu.vector_store %arg8[%c0_235, %c0_236], %767 {strides = array<i32>} : memref<64x128xf32, #tpu.memory_space<vmem>>, vector<64x128xf32>,
    return
  }
}

</mosaic_0001>

<bundles_post_ra>
// kernel: rnn_decoder_forward.1
= control target key start
LH: loop header
LB: loop body
LE: loop exit
PB: predicated region body
PF: predicated region fallthrough
CT: control target
= control target key end

     0   :  { %13 = vsyncpa [#allocation4], 0  ;;  %s9737_s0 = inlined_call_operand.vmem [shape: f32[8,8], index: 0, kind: input, shape index: {}]   ;;  %s9738_s1 = inlined_call_operand.hbm [shape: f32[8,384], index: 1, kind: input, shape index: {}]   ;;  %s9739_s2 = inlined_call_operand.hbm [shape: f32[2,128,384], index: 2, kind: input, shape index: {}]   ;;  %s9740_s3 = inlined_call_operand.hbm [shape: f32[3,128,384], index: 3, kind: input, shape index: {}]   ;;  %s9741_s4 = inlined_call_operand.vmem [shape: f32[3,1,384], index: 4, kind: input, shape index: {}]   ;;  %s9742_s5 = inlined_call_operand.vmem [shape: f32[3,1,128], index: 5, kind: input, shape index: {}]   ;;  %s9743_s6 = inlined_call_operand.hbm [shape: f32[128,128], index: 6, kind: input, shape index: {}]   ;;  %s9744_s7 = inlined_call_operand.vmem [shape: f32[1,128], index: 7, kind: input, shape index: {}]   ;;  %s9745_s8 = inlined_call_operand.vmem [shape: f32[64,128], index: 8, kind: output, shape index: {}]  }
   0x1   :  { %14 = vsyncpa [#allocation6], 0 }
   0x2   :  { %15 = vsyncpa [#allocation9], 0  ;;  %s7215_s27 = smov [#allocation5]  }
   0x3   :  { %s33_s28 = sshll.u32 %s7215_s27, 4  ;;  %s34_s28 = int_to_ptr.vmem [resolvable:$true] %s33_s28 }
   0x4   :  { %s7137_s29 = scalar_lea.vmem %s34_s28, 12288  ;;  %p7142_p1 = scmp.lt.s32.totalorder %s34_s28, %s34_s28 }
   0x5   :  { %p7138_p0 = scmp.ne.s32.totalorder %s34_s28, %s7137_s29  ;;  %p7143_p2 = scmp.lt.s32.totalorder %s7137_s29, %s7137_s29 }
   0x7   :  { %p7144_p3 = por %p7143_p2, %p7142_p1 }
   0x9   :  { %p7145_p4 = pnand %p7144_p3, %p7138_p0 }
   0xb   :  { %7148 = shalt.err (!%p7145_p4)
}
   0xc   :  { %s7216_s30 = smov 384   ;;  %s7217_s9 = smov 24  }
   0xd   :  { %39 = dma.hbm_to_vmem [thread:$0]  %s9739_s2, 12288, %s34_s28, [#allocation6], %s7216_s30, %s7216_s30, %s7217_s9  }
   0xe   :  { %s7218_s12 = smov [#allocation3]   ;;  %s7219_s14 = smov [#allocation7]  }
   0xf   :  { %s24_s13 = sshll.u32 %s7218_s12, 4  ;;  %s45_s15 = sshll.u32 %s7219_s14, 4  ;;  %s25_s13 = int_to_ptr.vmem [resolvable:$true] %s24_s13  ;;  %s46_s15 = int_to_ptr.vmem [resolvable:$true] %s45_s15 }
  0x10   :  { %s7157_s16 = scalar_lea.vmem %s25_s13, 384  ;;  %p7162_p6 = scmp.lt.s32.totalorder %s25_s13, %s25_s13 }
  0x11   :  { %p7158_p5 = scmp.ne.s32.totalorder %s25_s13, %s7157_s16  ;;  %p7163_p7 = scmp.lt.s32.totalorder %s7157_s16, %s7157_s16 }
  0x13   :  { %p7164_p8 = por %p7163_p7, %p7162_p6 }
  0x15   :  { %p7165_p9 = pnand %p7164_p8, %p7158_p5 }
  0x17   :  { %7168 = shalt.err (!%p7165_p9)
}
  0x18   :  { %27 = dma.hbm_to_vmem [thread:$0]  %s9738_s1, 384, %s25_s13, [#allocation4]  }
  0x19   :  { %s7177_s19 = scalar_lea.vmem %s46_s15, 18432  ;;  %p7182_p11 = scmp.lt.s32.totalorder %s46_s15, %s46_s15 }
  0x1a   :  { %p7178_p10 = scmp.ne.s32.totalorder %s46_s15, %s7177_s19  ;;  %p7183_p12 = scmp.lt.s32.totalorder %s7177_s19, %s7177_s19 }
  0x1c   :  { %p7184_p13 = por %p7183_p12, %p7182_p11 }
  0x1e   :  { %p7185_p0 = pnand %p7184_p13, %p7178_p10 }
  0x20   :  { %7188 = shalt.err (!%p7185_p0)
}
  0x21   :  { %51 = dma.hbm_to_vmem [thread:$0]  %s9740_s3, 18432, %s46_s15, [#allocation6], %s7216_s30, %s7216_s30, %s7217_s9  }
  0x22   :  { %s7220_s21 = smov [#allocation8]  }
  0x23   :  { %s61_s22 = sshll.u32 %s7220_s21, 4  ;;  %s62_s22 = int_to_ptr.vmem [resolvable:$true] %s61_s22 }
  0x24   :  { %s7197_s23 = scalar_lea.vmem %s62_s22, 2048  ;;  %p7202_p2 = scmp.lt.s32.totalorder %s62_s22, %s62_s22 }
  0x25   :  { %p7198_p1 = scmp.ne.s32.totalorder %s62_s22, %s7197_s23  ;;  %p7203_p3 = scmp.lt.s32.totalorder %s7197_s23, %s7197_s23 }
  0x27   :  { %p7204_p4 = por %p7203_p3, %p7202_p2 }
  0x29   :  { %p7205_p5 = pnand %p7204_p4, %p7198_p1 }
  0x2b   :  { %7208 = shalt.err (!%p7205_p5)
}
  0x2c   :  { %s7221_s1 = smov 128   ;;  %s7222_s24 = smov 8  }
  0x2d   :  { %67 = dma.hbm_to_vmem [thread:$0]  %s9743_s6, 2048, %s62_s22, [#allocation9], %s7221_s1, %s7221_s1, %s7222_s24  }
  0x2e   :  { %7209 = dma.done.wait [#allocation4], 384  }
  0x2f   :  { %7210 = vsyncadd [#allocation4], 4294966912 }
  0x30   :  { %7211 = dma.done.wait [#allocation6], 30720  }
  0x31   :  { %7212 = vsyncadd [#allocation6], 4294936576 }
  0x32   :  { %7213 = dma.done.wait [#allocation9], 2048  }
  0x33   :  { %7214 = vsyncadd [#allocation9], 4294965248  ;;  %v9757_v0 = vmov 0.0   ;;  %v84_v1 = vld [vmem:[#allocation3 + $0x8] sm:$0xff]  ;;  %v83_v2 = vld [vmem:[#allocation3] sm:$0xff]  ;;  %vm103_vm0 = vcmask 64512   ;;  %v88_v37 = vlaneseq }
  0x34   :  { %171 = vmatprep.mubr.f32.mxu0 %v9757_v0  ;;  %385 = vmatprep.mubr.f32.mxu1 %v9757_v0  ;;  %v82_v3 = vld [vmem:[%s9737_s0] sm:$0xff]  ;;  %v85_v4 = vld [vmem:[#allocation3 + $0x10] sm:$0xff]  ;;  %vm7224_vm1 = vmmov 0   ;;  %v7291_v5 = vld [vmem:[#allocation7 + $0x170] sm:$0xff] }
  0x35   :  { %137 = vmatprep.subr.mxu0 %v84_v1  ;;  %9846 = vst [vmem:[#allocation13_spill] sm:$0xff] %v7291_v5  ;;  %321 = vmatprep.subr.mxu1 %v7291_v5  ;;  %v7294_v6 = vld [vmem:[#allocation7 + $0x168] sm:$0xff]  ;;  %v7296_v7 = vld [vmem:[#allocation7 + $0x158] sm:$0xff]  ;;  %v7298_v8 = vld [vmem:[#allocation7 + $0x150] sm:$0xff]  ;;  %v89_v38 = vshrl.u32 %v88_v37, 7 }
  0x36   :  { %138 = vmatpush1.msra.mxu0 %v83_v2  ;;  %322 = vmatpush1.msra.mxu1 %v7294_v6  ;;  %v7301_v9 = vld [vmem:[#allocation7 + $0x140] sm:$0xff]  ;;  %v7305_v10 = vld [vmem:[#allocation7 + $0x138] sm:$0xff]  ;;  %v7309_v11 = vld [vmem:[#allocation7 + $0x128] sm:$0xff] }
  0x37   :  { %5515 = vmatmul.mubr.msk.f32.vlgmr.msra.gmra.mxu0 %vm103_vm0, %v82_v3  ;;  %6004 = vmatprep.subr.mxu0 %v9757_v0  ;;  %v7313_v12 = vld [vmem:[#allocation7 + $0x120] sm:$0xff]  ;;  %v7317_v13 = vld [vmem:[#allocation7 + $0x110] sm:$0xff]  ;;  %v7321_v14 = vld [vmem:[#allocation7 + $0x108] sm:$0xff]  ;;  %v7421_v39 = vsub.s32 0, %v89_v38  ;;  %v7427_v42 = vsub.s32 1, %v89_v38  ;;  %v7436_v54 = vsub.s32 2, %v89_v38 }
  0x38   :  { %6005 = vmatpush3.msra.mxu0 %v85_v4  ;;  %6006 = vmatprep.mubr.msk.f32.mxu0 %vm7224_vm1, %v9757_v0  ;;  %v7325_v15 = vld [vmem:[#allocation7 + $0xf8] sm:$0xff]  ;;  %v7329_v16 = vld [vmem:[#allocation7 + $0xf0] sm:$0xff]  ;;  %v7333_v17 = vld [vmem:[#allocation7 + $0xe0] sm:$0xff] }
  0x39   :  { %533 = vmatprep.subr.mxu0 %v7291_v5  ;;  %323 = vmatprep.subr.mxu1 %v7296_v7  ;;  %v7337_v18 = vld [vmem:[#allocation7 + $0xd8] sm:$0xff]  ;;  %v7341_v19 = vld [vmem:[#allocation7 + $0xc8] sm:$0xff]  ;;  %v7345_v20 = vld [vmem:[#allocation7 + $0xc0] sm:$0xff]  ;;  %9849 = vst [vmem:[#allocation16_spill] sm:$0xff] %v7421_v39 }
  0x3a   :  { %324 = vmatpush1.msra.mxu1 %v7298_v8  ;;  %v7349_v21 = vld [vmem:[#allocation7 + $0xb0] sm:$0xff]  ;;  %v7353_v22 = vld [vmem:[#allocation7 + $0xa8] sm:$0xff]  ;;  %v7357_v23 = vld [vmem:[#allocation7 + $0x98] sm:$0xff]  ;;  %9850 = vst [vmem:[#allocation17_spill] sm:$0xff] %v7427_v42 }
  0x3b   :  { %6007 = vmatmul.mubr.msk.f32.vlgmr.msra.gmra.mxu0 %vm103_vm0, %v82_v3  ;;  %325 = vmatprep.subr.mxu1 %v7301_v9  ;;  %v7361_v24 = vld [vmem:[#allocation7 + $0x90] sm:$0xff]  ;;  %v7365_v25 = vld [vmem:[#allocation7 + $0x80] sm:$0xff]  ;;  %v7369_v26 = vld [vmem:[#allocation7 + $0x78] sm:$0xff]  ;;  %9852 = vst [vmem:[#allocation19_spill] sm:$0xff] %v7436_v54 }
  0x3c   :  { %597 = vmatprep.mubr.f32.mxu0 %v9757_v0  ;;  %534 = vmatpush1.msra.mxu0 %v7294_v6  ;;  %v7373_v27 = vld [vmem:[#allocation7 + $0x68] sm:$0xff]  ;;  %v7377_v28 = vld [vmem:[#allocation7 + $0x60] sm:$0xff]  ;;  %v7381_v29 = vld [vmem:[#allocation7 + $0x50] sm:$0xff] }
  0x3d   :  { %535 = vmatprep.subr.mxu0 %v7296_v7  ;;  %326 = vmatpush1.msra.mxu1 %v7305_v10  ;;  %v7385_v30 = vld [vmem:[#allocation7 + $0x48] sm:$0xff]  ;;  %v7389_v31 = vld [vmem:[#allocation7 + $0x38] sm:$0xff]  ;;  %v7393_v32 = vld [vmem:[#allocation7 + $0x30] sm:$0xff] }
  0x3e   :  { %536 = vmatpush1.msra.mxu0 %v7298_v8  ;;  %327 = vmatprep.subr.mxu1 %v7309_v11  ;;  %v7397_v33 = vld [vmem:[#allocation7 + $0x20] sm:$0xff]  ;;  %v7401_v34 = vld [vmem:[#allocation7 + $0x18] sm:$0xff]  ;;  %v7405_v35 = vld [vmem:[#allocation7 + $0x8] sm:$0xff] }
  0x3f   :  { %537 = vmatprep.subr.mxu0 %v7301_v9  ;;  %328 = vmatpush1.msra.mxu1 %v7313_v12  ;;  %9847 = vst [vmem:[#allocation14_spill] sm:$0xff] %v7405_v35  ;;  %v7409_v36 = vld [vmem:[#allocation7] sm:$0xff]  ;;  %v86_v40 = vld [vmem:[%s9741_s4] sm:$0x7]  ;;  %v7450_v4 = vld [vmem:[#allocation7 + $0x178] sm:$0xff] }
  0x40   :  { %538 = vmatpush1.msra.mxu0 %v7305_v10  ;;  %329 = vmatprep.subr.mxu1 %v7317_v13  ;;  %9848 = vst [vmem:[#allocation15_spill] sm:$0xff] %v7409_v36  ;;  %v91_v41 = vrot.slane %v86_v40, %v7421_v39  ;;  %v95_v47 = vrot.slane %v86_v40, %v7427_v42  ;;  %v7442_v58 = vld [vmem:[%s9742_s5] ss:$0 sm:$0xff]  ;;  %v7453_v37 = vld [vmem:[#allocation7 + $0x160] sm:$0xff] }
  0x41   :  { %539 = vmatprep.subr.mxu0 %v7309_v11  ;;  %330 = vmatpush1.msra.mxu1 %v7321_v14  ;;  %v99_v56 = vrot.slane %v86_v40, %v7436_v54  ;;  %v7459_v38 = vld [vmem:[#allocation7 + $0x148] sm:$0xff]  ;;  %v7463_v40 = vld [vmem:[#allocation7 + $0x130] sm:$0xff] }
  0x42   :  { %540 = vmatpush1.msra.mxu0 %v7313_v12  ;;  %331 = vmatprep.subr.mxu1 %v7325_v15 }
  0x43   :  { %541 = vmatprep.subr.mxu0 %v7317_v13  ;;  %332 = vmatpush1.msra.mxu1 %v7329_v16 }
  0x44   :  { %542 = vmatpush1.msra.mxu0 %v7321_v14  ;;  %333 = vmatprep.subr.mxu1 %v7333_v17 }
  0x45   :  { %543 = vmatprep.subr.mxu0 %v7325_v15  ;;  %334 = vmatpush1.msra.mxu1 %v7337_v18 }
  0x46   :  { %544 = vmatpush1.msra.mxu0 %v7329_v16  ;;  %335 = vmatprep.subr.mxu1 %v7341_v19 }
  0x47   :  { %545 = vmatprep.subr.mxu0 %v7333_v17  ;;  %336 = vmatpush1.msra.mxu1 %v7345_v20 }
  0x48   :  { %546 = vmatpush1.msra.mxu0 %v7337_v18  ;;  %337 = vmatprep.subr.mxu1 %v7349_v21 }
  0x49   :  { %547 = vmatprep.subr.mxu0 %v7341_v19  ;;  %338 = vmatpush1.msra.mxu1 %v7353_v22 }
  0x4a   :  { %548 = vmatpush1.msra.mxu0 %v7345_v20  ;;  %339 = vmatprep.subr.mxu1 %v7357_v23 }
  0x4b   :  { %549 = vmatprep.subr.mxu0 %v7349_v21  ;;  %340 = vmatpush1.msra.mxu1 %v7361_v24 }
  0x4c   :  { %550 = vmatpush1.msra.mxu0 %v7353_v22  ;;  %341 = vmatprep.subr.mxu1 %v7365_v25 }
  0x4d   :  { %551 = vmatprep.subr.mxu0 %v7357_v23  ;;  %342 = vmatpush1.msra.mxu1 %v7369_v26 }
  0x4e   :  { %552 = vmatpush1.msra.mxu0 %v7361_v24  ;;  %343 = vmatprep.subr.mxu1 %v7373_v27 }
  0x4f   :  { %553 = vmatprep.subr.mxu0 %v7365_v25  ;;  %344 = vmatpush1.msra.mxu1 %v7377_v28 }
  0x50   :  { %554 = vmatpush1.msra.mxu0 %v7369_v26  ;;  %345 = vmatprep.subr.mxu1 %v7381_v29 }
  0x51   :  { %555 = vmatprep.subr.mxu0 %v7373_v27  ;;  %346 = vmatpush1.msra.mxu1 %v7385_v30 }
  0x52   :  { %556 = vmatpush1.msra.mxu0 %v7377_v28  ;;  %347 = vmatprep.subr.mxu1 %v7389_v31 }
  0x53   :  { %557 = vmatprep.subr.mxu0 %v7381_v29  ;;  %348 = vmatpush1.msra.mxu1 %v7393_v32 }
  0x54   :  { %558 = vmatpush1.msra.mxu0 %v7385_v30  ;;  %349 = vmatprep.subr.mxu1 %v7397_v33 }
  0x55   :  { %559 = vmatprep.subr.mxu0 %v7389_v31  ;;  %350 = vmatpush1.msra.mxu1 %v7401_v34 }
  0x56   :  { %560 = vmatpush1.msra.mxu0 %v7393_v32  ;;  %351 = vmatprep.subr.mxu1 %v7405_v35 }
  0x57   :  { %561 = vmatprep.subr.mxu0 %v7397_v33  ;;  %352 = vmatpush1.msra.mxu1 %v7409_v36 }
  0x58   :  { %562 = vmatpush1.msra.mxu0 %v7401_v34  ;;  %6009 = vmatprep.subr.mxu1 %v9757_v0 }
  0x59   :  { %563 = vmatprep.subr.mxu0 %v7405_v35 }
  0x5a   :  { %564 = vmatpush1.msra.mxu0 %v7409_v36 }
  0x5b   :  { %745 = vmatprep.subr.mxu0 %v7291_v5 }
  0xf7   :  { %v173_v43 = vpop.f32.mrf.mxu0 }
  0xf8   :  { %v7429_v44 = vadd.f32 %v173_v43, %v91_v41  ;;  %v7467_v41 = vld [vmem:[#allocation7 + $0x118] sm:$0xff]  ;;  %v7471_v43 = vld [vmem:[#allocation7 + $0x100] sm:$0xff] }
  0xf9   :  { %v175_v45 = vpop.f32.mrf.mxu0 }
  0xfa   :  { %9851 = vst [vmem:[#allocation18_spill] sm:$0xff] %v7429_v44  ;;  %v5518_v46 = vmul.f32 -1.442695, %v7429_v44  ;;  %v7433_v50 = vadd.f32 %v175_v45, %v95_v47  ;;  %v7475_v45 = vld [vmem:[#allocation7 + $0xe8] sm:$0xff]  ;;  %v7483_v47 = vld [vmem:[#allocation7 + $0xb8] sm:$0xff] }
  0xfb   :  { %v244_v48 = vpop.f32.mrf.mxu0 }
  0xfc   :  { %6886 = vpow2.f32 %v5518_v46  ;;  %v5519_v51 = vmul.f32 -1.442695, %v7433_v50  ;;  %v7444_v59 = vadd.f32 %v244_v48, %v99_v56  ;;  %v7479_v46 = vld [vmem:[#allocation7 + $0xd0] sm:$0xff]  ;;  %v7487_v48 = vld [vmem:[#allocation7 + $0xa0] sm:$0xff] }
  0xfd   :  { %v6008_v49 = vpop.f32.mrf.mxu0  ;;  %v7511_v56 = vld [vmem:[#allocation7 + $0x10] sm:$0xff] }
  0xfe   :  { %6888 = vpow2.f32 %v5519_v51  ;;  %v7491_v49 = vld [vmem:[#allocation7 + $0x88] sm:$0xff]  ;;  %v7495_v51 = vld [vmem:[#allocation7 + $0x70] sm:$0xff]  ;;  %9855 = vst [vmem:[#allocation22_spill] sm:$0xff] %v7511_v56 }
 0x109   :  { %v6887_v52 = vpop.eup %6886 }
 0x10a   :  { %v258_v53 = vadd.f32 1.0, %v6887_v52  ;;  %v7499_v52 = vld [vmem:[#allocation7 + $0x58] sm:$0xff] }
 0x10b   :  { %v6889_v55 = vpop.eup %6888 }
 0x10c   :  { %6890 = vrcp.f32 %v258_v53  ;;  %v264_v57 = vadd.f32 1.0, %v6889_v55  ;;  %v7503_v53 = vld [vmem:[#allocation7 + $0x40] sm:$0xff]  ;;  %v7507_v55 = vld [vmem:[#allocation7 + $0x28] sm:$0xff] }
 0x10d   :  { %9854 = vst [vmem:[#allocation21_spill] sm:$0xff] %v7507_v55 }
 0x10e   :  { %6892 = vrcp.f32 %v264_v57 }
 0x119   :  { %v6891_v60 = vpop.eup %6890 }
 0x11a   :  { %v267_v61 = vmul.f32 %v6891_v60, %v7442_v58 }
 0x11b   :  { %v6893_v63 = vpop.eup %6892 }
 0x11c   :  { %v268_v62 = vadd.f32 %v267_v61, %v7444_v59  ;;  %v270_v1 = vsub.f32 1.0, %v6893_v63 }
 0x11e   :  { %6894 = vtanh.f32 %v268_v62 }
 0x12b   :  { %v6895_v2 = vpop.eup %6894 }
 0x12c   :  { %v7448_v3 = vmul.f32 %v6895_v2, %v270_v1 }
 0x12e   :  { %9853 = vst [vmem:[#allocation20_spill] sm:$0xff] %v7448_v3  ;;  %386 = vmatmul.mubr.f32.vlgmr.msra.gmra.mxu1 %v7448_v3 }
 0x12f   :  { %6010 = vmatpush3.msra.mxu1 %v7450_v4  ;;  %6041 = vmatprep.mubr.msk.f32.mxu1 %vm7224_vm1, %v9757_v0 }
 0x130   :  { %6011 = vmatprep.subr.mxu1 %v9757_v0 }
 0x131   :  { %6012 = vmatpush3.msra.mxu1 %v7453_v37 }
 0x132   :  { %6013 = vmatprep.subr.mxu1 %v9757_v0 }
 0x133   :  { %6014 = vmatpush3.msra.mxu1 %v7459_v38 }
 0x134   :  { %6015 = vmatprep.subr.mxu1 %v9757_v0 }
 0x135   :  { %6016 = vmatpush3.msra.mxu1 %v7463_v40 }
 0x136   :  { %6017 = vmatprep.subr.mxu1 %v9757_v0 }
 0x137   :  { %6018 = vmatpush3.msra.mxu1 %v7467_v41 }
 0x138   :  { %6019 = vmatprep.subr.mxu1 %v9757_v0 }
 0x139   :  { %6020 = vmatpush3.msra.mxu1 %v7471_v43 }
 0x13a   :  { %6021 = vmatprep.subr.mxu1 %v9757_v0 }
 0x13b   :  { %6022 = vmatpush3.msra.mxu1 %v7475_v45 }
 0x13c   :  { %6023 = vmatprep.subr.mxu1 %v9757_v0 }
 0x13d   :  { %6024 = vmatpush3.msra.mxu1 %v7479_v46 }
 0x13e   :  { %6025 = vmatprep.subr.mxu1 %v9757_v0 }
 0x13f   :  { %6026 = vmatpush3.msra.mxu1 %v7483_v47 }
 0x140   :  { %6027 = vmatprep.subr.mxu1 %v9757_v0 }
 0x141   :  { %6028 = vmatpush3.msra.mxu1 %v7487_v48 }
 0x142   :  { %6029 = vmatprep.subr.mxu1 %v9757_v0 }
 0x143   :  { %6030 = vmatpush3.msra.mxu1 %v7491_v49 }
 0x144   :  { %6031 = vmatprep.subr.mxu1 %v9757_v0 }
 0x145   :  { %6032 = vmatpush3.msra.mxu1 %v7495_v51 }
 0x146   :  { %6033 = vmatprep.subr.mxu1 %v9757_v0 }
 0x147   :  { %6034 = vmatpush3.msra.mxu1 %v7499_v52 }
 0x148   :  { %6035 = vmatprep.subr.mxu1 %v9757_v0 }
 0x149   :  { %6036 = vmatpush3.msra.mxu1 %v7503_v53 }
 0x14a   :  { %6037 = vmatprep.subr.mxu1 %v9757_v0 }
 0x14b   :  { %6038 = vmatpush3.msra.mxu1 %v7507_v55 }
 0x14c   :  { %6039 = vmatprep.subr.mxu1 %v9757_v0 }
 0x14d   :  { %6040 = vmatpush3.msra.mxu1 %v7511_v56 }
 0x14e   :  { %6042 = vmatmul.mubr.f32.vlgmr.msra.gmra.mxu1 %v7448_v3  ;;  %6044 = vmatprep.subr.mxu1 %v9757_v0 }
 0x14f   :  { %6045 = vmatpush3.msra.mxu1 %v7450_v4  ;;  %6076 = vmatprep.mubr.msk.f32.mxu1 %vm7224_vm1, %v9757_v0 }
 0x150   :  { %6046 = vmatprep.subr.mxu1 %v9757_v0 }
 0x151   :  { %6047 = vmatpush3.msra.mxu1 %v7453_v37 }
 0x152   :  { %6048 = vmatprep.subr.mxu1 %v9757_v0 }
 0x153   :  { %6049 = vmatpush3.msra.mxu1 %v7459_v38 }
 0x154   :  { %6050 = vmatprep.subr.mxu1 %v9757_v0 }
 0x155   :  { %6051 = vmatpush3.msra.mxu1 %v7463_v40 }
 0x156   :  { %6052 = vmatprep.subr.mxu1 %v9757_v0 }
 0x157   :  { %6053 = vmatpush3.msra.mxu1 %v7467_v41 }
 0x158   :  { %6054 = vmatprep.subr.mxu1 %v9757_v0 }
 0x159   :  { %6055 = vmatpush3.msra.mxu1 %v7471_v43 }
 0x15a   :  { %6056 = vmatprep.subr.mxu1 %v9757_v0 }
 0x15b   :  { %6057 = vmatpush3.msra.mxu1 %v7475_v45 }
 0x15c   :  { %6058 = vmatprep.subr.mxu1 %v9757_v0 }
 0x15d   :  { %6059 = vmatpush3.msra.mxu1 %v7479_v46 }
 0x15e   :  { %6060 = vmatprep.subr.mxu1 %v9757_v0 }
 0x15f   :  { %6061 = vmatpush3.msra.mxu1 %v7483_v47 }
 0x160   :  { %6062 = vmatprep.subr.mxu1 %v9757_v0 }
 0x161   :  { %6063 = vmatpush3.msra.mxu1 %v7487_v48 }
 0x162   :  { %6064 = vmatprep.subr.mxu1 %v9757_v0 }
 0x163   :  { %6065 = vmatpush3.msra.mxu1 %v7491_v49 }
 0x164   :  { %6066 = vmatprep.subr.mxu1 %v9757_v0 }
 0x165   :  { %6067 = vmatpush3.msra.mxu1 %v7495_v51 }
 0x166   :  { %6068 = vmatprep.subr.mxu1 %v9757_v0 }
 0x167   :  { %6069 = vmatpush3.msra.mxu1 %v7499_v52 }
 0x168   :  { %6070 = vmatprep.subr.mxu1 %v9757_v0 }
 0x169   :  { %6071 = vmatpush3.msra.mxu1 %v7503_v53 }
 0x16a   :  { %6072 = vmatprep.subr.mxu1 %v9757_v0 }
 0x16b   :  { %6073 = vmatpush3.msra.mxu1 %v7507_v55 }
 0x16c   :  { %6074 = vmatprep.subr.mxu1 %v9757_v0 }
 0x16d   :  { %6075 = vmatpush3.msra.mxu1 %v7511_v56 }
 0x16e   :  { %6079 = vmatprep.subr.mxu1 %v9757_v0 }
 0x1ee   :  { %v387_v57 = vpop.f32.mrf.mxu1 }
 0x1ef   :  { %v462_v60 = vadd.f32 %v387_v57, %v7429_v44 }
 0x1f0   :  { %v389_v62 = vpop.f32.mrf.mxu1 }
 0x1f1   :  { %v5520_v61 = vmul.f32 -1.442695, %v462_v60  ;;  %v469_v63 = vadd.f32 %v389_v62, %v7433_v50 }
 0x1f3   :  { %6896 = vpow2.f32 %v5520_v61  ;;  %v5521_v1 = vmul.f32 -1.442695, %v469_v63 }
 0x1f5   :  { %6898 = vpow2.f32 %v5521_v1 }
 0x200   :  { %v6897_v2 = vpop.eup %6896 }
 0x201   :  { %v466_v54 = vadd.f32 1.0, %v6897_v2 }
 0x202   :  { %v6899_v42 = vpop.eup %6898 }
 0x203   :  { %6900 = vrcp.f32 %v466_v54  ;;  %v473_v39 = vadd.f32 1.0, %v6899_v42 }
 0x205   :  { %6902 = vrcp.f32 %v473_v39  ;;  %v9861_v39 = vld [vmem:[#allocation13_spill] sm:$0xff] }
 0x20e   :  { %v458_v5 = vpop.f32.mrf.mxu1 }
 0x20f   :  { %v476_v56 = vadd.f32 %v7442_v58, %v458_v5  ;;  %v9858_v5 = vld [vmem:[#allocation14_spill] sm:$0xff] }
 0x210   :  { %v6901_v36 = vpop.eup %6900  ;;  %v6043_v0 = vpop.f32.mrf.mxu1 }
 0x211   :  { %v477_v35 = vmul.f32 %v6901_v36, %v476_v56  ;;  %v9857_v0 = vmov 0.0   ;;  %v9860_v36 = vld [vmem:[#allocation22_spill] sm:$0xff] }
 0x212   :  { %v6903_v60 = vpop.eup %6902 }
 0x213   :  { %v478_v57 = vadd.f32 %v477_v35, %v7444_v59  ;;  %v480_v61 = vsub.f32 1.0, %v6903_v60  ;;  %v482_v1 = vmul.f32 %v6903_v60, %v7448_v3  ;;  %v9859_v35 = vld [vmem:[#allocation15_spill] sm:$0xff] }
 0x215   :  { %6904 = vtanh.f32 %v478_v57 }
 0x222   :  { %v6905_v62 = vpop.eup %6904 }
 0x223   :  { %v481_v63 = vmul.f32 %v6905_v62, %v480_v61 }
 0x225   :  { %v7557_v2 = vadd.f32 %v482_v1, %v481_v63 }
 0x227   :  { %9856 = vst [vmem:[#allocation23_spill] sm:$0xff] %v7557_v2  ;;  %598 = vmatmul.mubr.f32.vlgmr.msra.gmra.mxu0 %v7557_v2  ;;  %6077 = vmatmul.mubr.f32.vlgmr.msra.gmra.mxu1 %v7557_v2 }
 0x228   :  { %746 = vmatpush1.msra.mxu0 %v7294_v6  ;;  %6080 = vmatpush3.msra.mxu1 %v7450_v4 }
 0x229   :  { %747 = vmatprep.subr.mxu0 %v7296_v7  ;;  %6081 = vmatprep.subr.mxu1 %v9857_v0 }
 0x22a   :  { %748 = vmatpush1.msra.mxu0 %v7298_v8  ;;  %6082 = vmatpush3.msra.mxu1 %v7453_v37 }
 0x22b   :  { %749 = vmatprep.subr.mxu0 %v7301_v9  ;;  %6083 = vmatprep.subr.mxu1 %v9857_v0 }
 0x22c   :  { %750 = vmatpush1.msra.mxu0 %v7305_v10  ;;  %6084 = vmatpush3.msra.mxu1 %v7459_v38 }
 0x22d   :  { %751 = vmatprep.subr.mxu0 %v7309_v11  ;;  %6085 = vmatprep.subr.mxu1 %v9857_v0 }
 0x22e   :  { %752 = vmatpush1.msra.mxu0 %v7313_v12  ;;  %6086 = vmatpush3.msra.mxu1 %v7463_v40 }
 0x22f   :  { %753 = vmatprep.subr.mxu0 %v7317_v13  ;;  %6087 = vmatprep.subr.mxu1 %v9857_v0 }
 0x230   :  { %754 = vmatpush1.msra.mxu0 %v7321_v14  ;;  %6088 = vmatpush3.msra.mxu1 %v7467_v41 }
 0x231   :  { %755 = vmatprep.subr.mxu0 %v7325_v15  ;;  %6089 = vmatprep.subr.mxu1 %v9857_v0 }
 0x232   :  { %756 = vmatpush1.msra.mxu0 %v7329_v16  ;;  %6090 = vmatpush3.msra.mxu1 %v7471_v43 }
 0x233   :  { %757 = vmatprep.subr.mxu0 %v7333_v17  ;;  %6091 = vmatprep.subr.mxu1 %v9857_v0 }
 0x234   :  { %758 = vmatpush1.msra.mxu0 %v7337_v18  ;;  %6092 = vmatpush3.msra.mxu1 %v7475_v45 }
 0x235   :  { %759 = vmatprep.subr.mxu0 %v7341_v19  ;;  %6093 = vmatprep.subr.mxu1 %v9857_v0 }
 0x236   :  { %760 = vmatpush1.msra.mxu0 %v7345_v20  ;;  %6094 = vmatpush3.msra.mxu1 %v7479_v46 }
 0x237   :  { %761 = vmatprep.subr.mxu0 %v7349_v21  ;;  %6095 = vmatprep.subr.mxu1 %v9857_v0 }
 0x238   :  { %762 = vmatpush1.msra.mxu0 %v7353_v22  ;;  %6096 = vmatpush3.msra.mxu1 %v7483_v47 }
 0x239   :  { %763 = vmatprep.subr.mxu0 %v7357_v23  ;;  %6097 = vmatprep.subr.mxu1 %v9857_v0 }
 0x23a   :  { %764 = vmatpush1.msra.mxu0 %v7361_v24  ;;  %6098 = vmatpush3.msra.mxu1 %v7487_v48 }
 0x23b   :  { %765 = vmatprep.subr.mxu0 %v7365_v25  ;;  %6099 = vmatprep.subr.mxu1 %v9857_v0 }
 0x23c   :  { %766 = vmatpush1.msra.mxu0 %v7369_v26  ;;  %6100 = vmatpush3.msra.mxu1 %v7491_v49 }
 0x23d   :  { %767 = vmatprep.subr.mxu0 %v7373_v27  ;;  %6101 = vmatprep.subr.mxu1 %v9857_v0 }
 0x23e   :  { %768 = vmatpush1.msra.mxu0 %v7377_v28  ;;  %6102 = vmatpush3.msra.mxu1 %v7495_v51 }
 0x23f   :  { %769 = vmatprep.subr.mxu0 %v7381_v29  ;;  %6103 = vmatprep.subr.mxu1 %v9857_v0 }
 0x240   :  { %770 = vmatpush1.msra.mxu0 %v7385_v30  ;;  %6104 = vmatpush3.msra.mxu1 %v7499_v52 }
 0x241   :  { %771 = vmatprep.subr.mxu0 %v7389_v31  ;;  %6105 = vmatprep.subr.mxu1 %v9857_v0 }
 0x242   :  { %772 = vmatpush1.msra.mxu0 %v7393_v32  ;;  %6106 = vmatpush3.msra.mxu1 %v7503_v53 }
 0x243   :  { %773 = vmatprep.subr.mxu0 %v7397_v33  ;;  %6107 = vmatprep.subr.mxu1 %v9857_v0 }
 0x244   :  { %774 = vmatpush1.msra.mxu0 %v7401_v34  ;;  %6108 = vmatpush3.msra.mxu1 %v7507_v55 }
 0x245   :  { %775 = vmatprep.subr.mxu0 %v9858_v5  ;;  %6109 = vmatprep.subr.mxu1 %v9857_v0 }
 0x246   :  { %776 = vmatpush1.msra.mxu0 %v9859_v35  ;;  %809 = vmatprep.mubr.f32.mxu0 %v9857_v0 }
 0x247   :  { %6110 = vmatpush3.msra.mxu1 %v9860_v36  ;;  %6111 = vmatprep.mubr.msk.f32.mxu1 %vm7224_vm1, %v9857_v0 }
 0x248   :  { %957 = vmatprep.subr.mxu0 %v9861_v39  ;;  %6114 = vmatprep.subr.mxu1 %v9857_v0 }
 0x2e7   :  { %v599_v42 = vpop.f32.mrf.mxu0  ;;  %v670_v54 = vpop.f32.mrf.mxu1 }
 0x2e8   :  { %v674_v56 = vadd.f32 %v599_v42, %v7429_v44  ;;  %v688_v39 = vadd.f32 %v7442_v58, %v670_v54  ;;  %v7793_v54 = vld [vmem:[#allocation7 + $0x90] sm:$0xff] }
 0x2e9   :  { %v6078_v57 = vpop.f32.mrf.mxu1  ;;  %v601_v61 = vpop.f32.mrf.mxu0 }
 0x2ea   :  { %v5522_v60 = vmul.f32 -1.442695, %v674_v56  ;;  %v681_v62 = vadd.f32 %v601_v61, %v7433_v50 }
 0x2ec   :  { %6906 = vpow2.f32 %v5522_v60  ;;  %v5523_v63 = vmul.f32 -1.442695, %v681_v62 }
 0x2ee   :  { %6908 = vpow2.f32 %v5523_v63  ;;  %v7797_v63 = vld [vmem:[#allocation7 + $0x80] sm:$0xff] }
 0x2f9   :  { %v6907_v1 = vpop.eup %6906 }
 0x2fa   :  { %v678_v3 = vadd.f32 1.0, %v6907_v1  ;;  %v7799_v1 = vld [vmem:[#allocation7 + $0x88] sm:$0xff] }
 0x2fb   :  { %v6909_v36 = vpop.eup %6908 }
 0x2fc   :  { %6910 = vrcp.f32 %v678_v3  ;;  %v685_v35 = vadd.f32 1.0, %v6909_v36  ;;  %v7738_v3 = vld [vmem:[#allocation7 + $0x150] sm:$0xff]  ;;  %v7789_v36 = vld [vmem:[#allocation7 + $0xa0] sm:$0xff] }
 0x2fe   :  { %6912 = vrcp.f32 %v685_v35  ;;  %v7787_v35 = vld [vmem:[#allocation7 + $0x98] sm:$0xff] }
 0x309   :  { %v6911_v5 = vpop.eup %6910 }
 0x30a   :  { %v689_v55 = vmul.f32 %v6911_v5, %v688_v39  ;;  %v7783_v5 = vld [vmem:[#allocation7 + $0xb8] sm:$0xff] }
 0x30b   :  { %v6913_v56 = vpop.eup %6912  ;;  %v7803_v39 = vld [vmem:[#allocation7 + $0x78] sm:$0xff] }
 0x30c   :  { %v690_v42 = vadd.f32 %v689_v55, %v7444_v59  ;;  %v692_v57 = vsub.f32 1.0, %v6913_v56  ;;  %v694_v61 = vmul.f32 %v6913_v56, %v7557_v2  ;;  %v7781_v55 = vld [vmem:[#allocation7 + $0xa8] sm:$0xff]  ;;  %v7809_v56 = vld [vmem:[#allocation7 + $0x70] sm:$0xff] }
 0x30e   :  { %6914 = vtanh.f32 %v690_v42  ;;  %v7807_v42 = vld [vmem:[#allocation7 + $0x68] sm:$0xff] }
 0x31b   :  { %v6915_v60 = vpop.eup %6914 }
 0x31c   :  { %v693_v44 = vmul.f32 %v6915_v60, %v692_v57  ;;  %v7813_v57 = vld [vmem:[#allocation7 + $0x60] sm:$0xff]  ;;  %v7817_v60 = vld [vmem:[#allocation7 + $0x50] sm:$0xff] }
 0x31e   :  { %v7633_v62 = vadd.f32 %v694_v61, %v693_v44  ;;  %v7735_v44 = vld [vmem:[#allocation7 + $0x158] sm:$0xff] }
 0x31f   :  { %v7819_v61 = vld [vmem:[#allocation7 + $0x58] sm:$0xff] }
 0x320   :  { %9862 = vst [vmem:[#allocation13_spill] sm:$0xff] %v7633_v62  ;;  %810 = vmatmul.mubr.f32.vlgmr.msra.gmra.mxu0 %v7633_v62  ;;  %6112 = vmatmul.mubr.f32.vlgmr.msra.gmra.mxu1 %v7633_v62 }
 0x321   :  { %958 = vmatpush1.msra.mxu0 %v7294_v6  ;;  %6115 = vmatpush3.msra.mxu1 %v7450_v4  ;;  %v9863_v6 = vld [vmem:[#allocation21_spill] sm:$0xff] }
 0x322   :  { %959 = vmatprep.subr.mxu0 %v7296_v7  ;;  %6116 = vmatprep.subr.mxu1 %v9857_v0  ;;  %v9864_v7 = vld [vmem:[#allocation14_spill] sm:$0xff] }
 0x323   :  { %960 = vmatpush1.msra.mxu0 %v7298_v8  ;;  %6117 = vmatpush3.msra.mxu1 %v7453_v37  ;;  %v9865_v8 = vld [vmem:[#allocation15_spill] sm:$0xff] }
 0x324   :  { %961 = vmatprep.subr.mxu0 %v7301_v9  ;;  %6118 = vmatprep.subr.mxu1 %v9857_v0  ;;  %v9866_v9 = vld [vmem:[#allocation22_spill] sm:$0xff] }
 0x325   :  { %962 = vmatpush1.msra.mxu0 %v7305_v10  ;;  %6119 = vmatpush3.msra.mxu1 %v7459_v38 }
 0x326   :  { %963 = vmatprep.subr.mxu0 %v7309_v11  ;;  %6120 = vmatprep.subr.mxu1 %v9857_v0 }
 0x327   :  { %964 = vmatpush1.msra.mxu0 %v7313_v12  ;;  %6121 = vmatpush3.msra.mxu1 %v7463_v40  ;;  %v9867_v12 = vld [vmem:[#allocation18_spill] sm:$0xff] }
 0x328   :  { %965 = vmatprep.subr.mxu0 %v7317_v13  ;;  %6122 = vmatprep.subr.mxu1 %v9857_v0 }
 0x329   :  { %966 = vmatpush1.msra.mxu0 %v7321_v14  ;;  %6123 = vmatpush3.msra.mxu1 %v7467_v41 }
 0x32a   :  { %967 = vmatprep.subr.mxu0 %v7325_v15  ;;  %6124 = vmatprep.subr.mxu1 %v9857_v0 }
 0x32b   :  { %968 = vmatpush1.msra.mxu0 %v7329_v16  ;;  %6125 = vmatpush3.msra.mxu1 %v7471_v43 }
 0x32c   :  { %969 = vmatprep.subr.mxu0 %v7333_v17  ;;  %6126 = vmatprep.subr.mxu1 %v9857_v0 }
 0x32d   :  { %970 = vmatpush1.msra.mxu0 %v7337_v18  ;;  %6127 = vmatpush3.msra.mxu1 %v7475_v45 }
 0x32e   :  { %971 = vmatprep.subr.mxu0 %v7341_v19  ;;  %6128 = vmatprep.subr.mxu1 %v9857_v0 }
 0x32f   :  { %972 = vmatpush1.msra.mxu0 %v7345_v20  ;;  %6129 = vmatpush3.msra.mxu1 %v7479_v46  ;;  %v7762_v46 = vld [vmem:[#allocation7 + $0xf0] sm:$0xff] }
 0x330   :  { %973 = vmatprep.subr.mxu0 %v7349_v21  ;;  %6130 = vmatprep.subr.mxu1 %v9857_v0 }
 0x331   :  { %974 = vmatpush1.msra.mxu0 %v7353_v22  ;;  %6131 = vmatpush3.msra.mxu1 %v7483_v47  ;;  %v7765_v47 = vld [vmem:[#allocation7 + $0xe0] sm:$0xff] }
 0x332   :  { %975 = vmatprep.subr.mxu0 %v7357_v23  ;;  %6132 = vmatprep.subr.mxu1 %v9857_v0 }
 0x333   :  { %976 = vmatpush1.msra.mxu0 %v7361_v24  ;;  %6133 = vmatpush3.msra.mxu1 %v7487_v48  ;;  %v7768_v48 = vld [vmem:[#allocation7 + $0xd8] sm:$0xff] }
 0x334   :  { %977 = vmatprep.subr.mxu0 %v7365_v25  ;;  %6134 = vmatprep.subr.mxu1 %v9857_v0 }
 0x335   :  { %978 = vmatpush1.msra.mxu0 %v7369_v26  ;;  %6135 = vmatpush3.msra.mxu1 %v7491_v49  ;;  %v7771_v49 = vld [vmem:[#allocation7 + $0xc8] sm:$0xff] }
 0x336   :  { %979 = vmatprep.subr.mxu0 %v7373_v27  ;;  %6136 = vmatprep.subr.mxu1 %v9857_v0 }
 0x337   :  { %980 = vmatpush1.msra.mxu0 %v7377_v28  ;;  %6137 = vmatpush3.msra.mxu1 %v7495_v51  ;;  %v7773_v51 = vld [vmem:[#allocation7 + $0xc0] sm:$0xff] }
 0x338   :  { %981 = vmatprep.subr.mxu0 %v7381_v29  ;;  %6138 = vmatprep.subr.mxu1 %v9857_v0 }
 0x339   :  { %982 = vmatpush1.msra.mxu0 %v7385_v30  ;;  %6139 = vmatpush3.msra.mxu1 %v7499_v52  ;;  %v7775_v52 = vld [vmem:[#allocation7 + $0xd0] sm:$0xff] }
 0x33a   :  { %983 = vmatprep.subr.mxu0 %v7389_v31  ;;  %6140 = vmatprep.subr.mxu1 %v9857_v0 }
 0x33b   :  { %984 = vmatpush1.msra.mxu0 %v7393_v32  ;;  %6141 = vmatpush3.msra.mxu1 %v7503_v53  ;;  %v7779_v53 = vld [vmem:[#allocation7 + $0xb0] sm:$0xff] }
 0x33c   :  { %985 = vmatprep.subr.mxu0 %v7397_v33  ;;  %6142 = vmatprep.subr.mxu1 %v9857_v0  ;;  %v7729_v33 = vld [vmem:[#allocation7 + $0x170] sm:$0xff] }
 0x33d   :  { %986 = vmatpush1.msra.mxu0 %v7401_v34  ;;  %6143 = vmatpush3.msra.mxu1 %v9863_v6  ;;  %v7732_v34 = vld [vmem:[#allocation7 + $0x168] sm:$0xff] }
 0x33e   :  { %987 = vmatprep.subr.mxu0 %v9864_v7  ;;  %6144 = vmatprep.subr.mxu1 %v9857_v0  ;;  %v7823_v6 = vld [vmem:[#allocation7 + $0x48] sm:$0xff]  ;;  %v7827_v7 = vld [vmem:[#allocation7 + $0x38] sm:$0xff] }
 0x33f   :  { %988 = vmatpush1.msra.mxu0 %v9865_v8  ;;  %1021 = vmatprep.mubr.f32.mxu0 %v9857_v0  ;;  %v7829_v8 = vld [vmem:[#allocation7 + $0x40] sm:$0xff] }
 0x340   :  { %6145 = vmatpush3.msra.mxu1 %v9866_v9  ;;  %6146 = vmatprep.mubr.msk.f32.mxu1 %vm7224_vm1, %v9857_v0  ;;  %v7833_v9 = vld [vmem:[#allocation7 + $0x30] sm:$0xff] }
 0x341   :  { %6149 = vmatprep.subr.mxu1 %v9857_v0  ;;  %1169 = vmatprep.subr.mxu0 %v7729_v33 }
 0x3e0   :  { %v811_v10 = vpop.f32.mrf.mxu0  ;;  %v882_v11 = vpop.f32.mrf.mxu1 }
 0x3e1   :  { %v886_v13 = vadd.f32 %v811_v10, %v9867_v12  ;;  %v900_v23 = vadd.f32 %v7442_v58, %v882_v11  ;;  %v7837_v10 = vld [vmem:[#allocation7 + $0x20] sm:$0xff]  ;;  %v7839_v11 = vld [vmem:[#allocation7 + $0x28] sm:$0xff] }
 0x3e2   :  { %v6113_v14 = vpop.f32.mrf.mxu1  ;;  %v813_v16 = vpop.f32.mrf.mxu0 }
 0x3e3   :  { %v5524_v15 = vmul.f32 -1.442695, %v886_v13  ;;  %v893_v17 = vadd.f32 %v813_v16, %v7433_v50  ;;  %v7843_v13 = vld [vmem:[#allocation7 + $0x18] sm:$0xff]  ;;  %v7847_v14 = vld [vmem:[#allocation7 + $0x8] sm:$0xff]  ;;  %v7853_v16 = vld [vmem:[#allocation7] sm:$0xff] }
 0x3e5   :  { %6916 = vpow2.f32 %v5524_v15  ;;  %v5525_v18 = vmul.f32 -1.442695, %v893_v17  ;;  %v7849_v15 = vld [vmem:[#allocation7 + $0x10] sm:$0xff] }
 0x3e6   :  { %9869 = vst [vmem:[#allocation14_spill] sm:$0xff] %v7849_v15 }
 0x3e7   :  { %6918 = vpow2.f32 %v5525_v18 }
 0x3f2   :  { %v6917_v19 = vpop.eup %6916 }
 0x3f3   :  { %v890_v20 = vadd.f32 1.0, %v6917_v19 }
 0x3f4   :  { %v6919_v21 = vpop.eup %6918 }
 0x3f5   :  { %6920 = vrcp.f32 %v890_v20  ;;  %v897_v22 = vadd.f32 1.0, %v6919_v21 }
 0x3f7   :  { %6922 = vrcp.f32 %v897_v22 }
 0x402   :  { %v6921_v24 = vpop.eup %6920 }
 0x403   :  { %v901_v25 = vmul.f32 %v6921_v24, %v900_v23 }
 0x404   :  { %v6923_v27 = vpop.eup %6922 }
 0x405   :  { %v902_v26 = vadd.f32 %v901_v25, %v7444_v59  ;;  %v904_v28 = vsub.f32 1.0, %v6923_v27  ;;  %v906_v31 = vmul.f32 %v6923_v27, %v7633_v62 }
 0x407   :  { %6924 = vtanh.f32 %v902_v26 }
 0x414   :  { %v6925_v29 = vpop.eup %6924 }
 0x415   :  { %v905_v30 = vmul.f32 %v6925_v29, %v904_v28 }
 0x417   :  { %v7708_v32 = vadd.f32 %v906_v31, %v905_v30 }
 0x419   :  { %9868 = vst [vmem:[#allocation21_spill] sm:$0xff] %v7708_v32  ;;  %1022 = vmatmul.mubr.f32.vlgmr.msra.gmra.mxu0 %v7708_v32  ;;  %6147 = vmatmul.mubr.f32.vlgmr.msra.gmra.mxu1 %v7708_v32 }
 0x41a   :  { %6150 = vmatpush3.msra.mxu1 %v7450_v4  ;;  %1233 = vmatprep.mubr.f32.mxu0 %v9857_v0  ;;  %v7741_v4 = vld [vmem:[#allocation7 + $0x140] sm:$0xff] }
 0x41b   :  { %6151 = vmatprep.subr.mxu1 %v9857_v0  ;;  %6181 = vmatprep.mubr.msk.f32.mxu1 %vm7224_vm1, %v9857_v0 }
 0x41c   :  { %6152 = vmatpush3.msra.mxu1 %v7453_v37  ;;  %1170 = vmatpush1.msra.mxu0 %v7732_v34  ;;  %v7744_v37 = vld [vmem:[#allocation7 + $0x138] sm:$0xff] }
 0x41d   :  { %6153 = vmatprep.subr.mxu1 %v9857_v0  ;;  %1171 = vmatprep.subr.mxu0 %v7735_v44 }
 0x41e   :  { %6154 = vmatpush3.msra.mxu1 %v7459_v38  ;;  %1172 = vmatpush1.msra.mxu0 %v7738_v3  ;;  %v7747_v38 = vld [vmem:[#allocation7 + $0x128] sm:$0xff] }
 0x41f   :  { %6155 = vmatprep.subr.mxu1 %v9857_v0  ;;  %1173 = vmatprep.subr.mxu0 %v7741_v4 }
 0x420   :  { %6156 = vmatpush3.msra.mxu1 %v7463_v40  ;;  %1174 = vmatpush1.msra.mxu0 %v7744_v37  ;;  %v7750_v40 = vld [vmem:[#allocation7 + $0x120] sm:$0xff] }
 0x421   :  { %6157 = vmatprep.subr.mxu1 %v9857_v0  ;;  %1175 = vmatprep.subr.mxu0 %v7747_v38 }
 0x422   :  { %6158 = vmatpush3.msra.mxu1 %v7467_v41  ;;  %1176 = vmatpush1.msra.mxu0 %v7750_v40  ;;  %v7753_v41 = vld [vmem:[#allocation7 + $0x110] sm:$0xff] }
 0x423   :  { %6159 = vmatprep.subr.mxu1 %v9857_v0  ;;  %1177 = vmatprep.subr.mxu0 %v7753_v41 }
 0x424   :  { %6160 = vmatpush3.msra.mxu1 %v7471_v43  ;;  %v7756_v43 = vld [vmem:[#allocation7 + $0x108] sm:$0xff] }
 0x425   :  { %6161 = vmatprep.subr.mxu1 %v9857_v0  ;;  %1178 = vmatpush1.msra.mxu0 %v7756_v43 }
 0x426   :  { %6162 = vmatpush3.msra.mxu1 %v7475_v45  ;;  %v7759_v45 = vld [vmem:[#allocation7 + $0xf8] sm:$0xff] }
 0x427   :  { %6163 = vmatprep.subr.mxu1 %v9857_v0  ;;  %1179 = vmatprep.subr.mxu0 %v7759_v45 }
 0x428   :  { %1180 = vmatpush1.msra.mxu0 %v7762_v46  ;;  %6164 = vmatpush3.msra.mxu1 %v7775_v52 }
 0x429   :  { %1181 = vmatprep.subr.mxu0 %v7765_v47  ;;  %6165 = vmatprep.subr.mxu1 %v9857_v0 }
 0x42a   :  { %1182 = vmatpush1.msra.mxu0 %v7768_v48  ;;  %6166 = vmatpush3.msra.mxu1 %v7783_v5 }
 0x42b   :  { %1183 = vmatprep.subr.mxu0 %v7771_v49  ;;  %6167 = vmatprep.subr.mxu1 %v9857_v0 }
 0x42c   :  { %1184 = vmatpush1.msra.mxu0 %v7773_v51  ;;  %6168 = vmatpush3.msra.mxu1 %v7789_v36 }
 0x42d   :  { %1185 = vmatprep.subr.mxu0 %v7779_v53  ;;  %6169 = vmatprep.subr.mxu1 %v9857_v0 }
 0x42e   :  { %1186 = vmatpush1.msra.mxu0 %v7781_v55  ;;  %6170 = vmatpush3.msra.mxu1 %v7799_v1 }
 0x42f   :  { %1187 = vmatprep.subr.mxu0 %v7787_v35  ;;  %6171 = vmatprep.subr.mxu1 %v9857_v0 }
 0x430   :  { %1188 = vmatpush1.msra.mxu0 %v7793_v54  ;;  %6172 = vmatpush3.msra.mxu1 %v7809_v56 }
 0x431   :  { %1189 = vmatprep.subr.mxu0 %v7797_v63  ;;  %6173 = vmatprep.subr.mxu1 %v9857_v0 }
 0x432   :  { %1190 = vmatpush1.msra.mxu0 %v7803_v39  ;;  %6174 = vmatpush3.msra.mxu1 %v7819_v61 }
 0x433   :  { %1191 = vmatprep.subr.mxu0 %v7807_v42  ;;  %6175 = vmatprep.subr.mxu1 %v9857_v0 }
 0x434   :  { %1192 = vmatpush1.msra.mxu0 %v7813_v57  ;;  %6176 = vmatpush3.msra.mxu1 %v7829_v8 }
 0x435   :  { %1193 = vmatprep.subr.mxu0 %v7817_v60  ;;  %6177 = vmatprep.subr.mxu1 %v9857_v0 }
 0x436   :  { %1194 = vmatpush1.msra.mxu0 %v7823_v6  ;;  %6178 = vmatpush3.msra.mxu1 %v7839_v11 }
 0x437   :  { %1195 = vmatprep.subr.mxu0 %v7827_v7  ;;  %6179 = vmatprep.subr.mxu1 %v9857_v0 }
 0x438   :  { %1196 = vmatpush1.msra.mxu0 %v7833_v9  ;;  %6180 = vmatpush3.msra.mxu1 %v7849_v15 }
 0x439   :  { %1197 = vmatprep.subr.mxu0 %v7837_v10  ;;  %6184 = vmatprep.subr.mxu1 %v9857_v0 }
 0x43a   :  { %1198 = vmatpush1.msra.mxu0 %v7843_v13 }
 0x43b   :  { %1199 = vmatprep.subr.mxu0 %v7847_v14 }
 0x43c   :  { %1200 = vmatpush1.msra.mxu0 %v7853_v16 }
 0x43d   :  { %1381 = vmatprep.subr.mxu0 %v7729_v33 }
 0x4d9   :  { %v1023_v17 = vpop.f32.mrf.mxu0  ;;  %v1094_v18 = vpop.f32.mrf.mxu1 }
 0x4da   :  { %v1098_v19 = vadd.f32 %v1023_v17, %v9867_v12  ;;  %v1112_v29 = vadd.f32 %v7442_v58, %v1094_v18  ;;  %v7906_v58 = vld [vmem:[#allocation7 + $0x178] sm:$0xff]  ;;  %v7914_v18 = vld [vmem:[#allocation7 + $0x148] sm:$0xff] }
 0x4db   :  { %v6148_v20 = vpop.f32.mrf.mxu1  ;;  %v1025_v22 = vpop.f32.mrf.mxu0 }
 0x4dc   :  { %v5526_v21 = vmul.f32 -1.442695, %v1098_v19  ;;  %v1105_v23 = vadd.f32 %v1025_v22, %v7433_v50 }
 0x4de   :  { %6926 = vpow2.f32 %v5526_v21  ;;  %v5527_v24 = vmul.f32 -1.442695, %v1105_v23 }
 0x4e0   :  { %6928 = vpow2.f32 %v5527_v24  ;;  %v7918_v24 = vld [vmem:[#allocation7 + $0x130] sm:$0xff] }
 0x4eb   :  { %v6927_v25 = vpop.eup %6926 }
 0x4ec   :  { %v1102_v26 = vadd.f32 1.0, %v6927_v25  ;;  %v7926_v25 = vld [vmem:[#allocation7 + $0x100] sm:$0xff] }
 0x4ed   :  { %v6929_v27 = vpop.eup %6928 }
 0x4ee   :  { %6930 = vrcp.f32 %v1102_v26  ;;  %v1109_v28 = vadd.f32 1.0, %v6929_v27  ;;  %v7930_v26 = vld [vmem:[#allocation7 + $0xe8] sm:$0xff] }
 0x4f0   :  { %6932 = vrcp.f32 %v1109_v28 }
 0x4fb   :  { %v6931_v30 = vpop.eup %6930 }
 0x4fc   :  { %v1113_v31 = vmul.f32 %v6931_v30, %v1112_v29 }
 0x4fd   :  { %v6933_v19 = vpop.eup %6932 }
 0x4fe   :  { %v1114_v17 = vadd.f32 %v1113_v31, %v7444_v59  ;;  %v1116_v20 = vsub.f32 1.0, %v6933_v19  ;;  %v1118_v22 = vmul.f32 %v6933_v19, %v7708_v32 }
 0x500   :  { %6934 = vtanh.f32 %v1114_v17 }
 0x50d   :  { %v6935_v21 = vpop.eup %6934 }
 0x50e   :  { %v1117_v62 = vmul.f32 %v6935_v21, %v1116_v20 }
 0x510   :  { %v7867_v23 = vadd.f32 %v1118_v22, %v1117_v62  ;;  %v7910_v62 = vld [vmem:[#allocation7 + $0x160] sm:$0xff] }
 0x512   :  { %1234 = vmatmul.mubr.f32.vlgmr.msra.gmra.mxu0 %v7867_v23  ;;  %6182 = vmatmul.mubr.f32.vlgmr.msra.gmra.mxu1 %v7867_v23 }
 0x513   :  { %1382 = vmatpush1.msra.mxu0 %v7732_v34  ;;  %1445 = vmatprep.mubr.f32.mxu0 %v9857_v0 }
 0x514   :  { %1383 = vmatprep.subr.mxu0 %v7735_v44  ;;  %6216 = vmatprep.mubr.msk.f32.mxu1 %vm7224_vm1, %v9857_v0 }
 0x515   :  { %1384 = vmatpush1.msra.mxu0 %v7738_v3  ;;  %6185 = vmatpush3.msra.mxu1 %v7906_v58 }
 0x516   :  { %1385 = vmatprep.subr.mxu0 %v7741_v4  ;;  %6186 = vmatprep.subr.mxu1 %v9857_v0 }
 0x517   :  { %1386 = vmatpush1.msra.mxu0 %v7744_v37  ;;  %6187 = vmatpush3.msra.mxu1 %v7910_v62 }
 0x518   :  { %1387 = vmatprep.subr.mxu0 %v7747_v38  ;;  %6188 = vmatprep.subr.mxu1 %v9857_v0 }
 0x519   :  { %1388 = vmatpush1.msra.mxu0 %v7750_v40  ;;  %6189 = vmatpush3.msra.mxu1 %v7914_v18 }
 0x51a   :  { %1389 = vmatprep.subr.mxu0 %v7753_v41  ;;  %6190 = vmatprep.subr.mxu1 %v9857_v0 }
 0x51b   :  { %1390 = vmatpush1.msra.mxu0 %v7756_v43  ;;  %6191 = vmatpush3.msra.mxu1 %v7918_v24 }
 0x51c   :  { %1391 = vmatprep.subr.mxu0 %v7759_v45  ;;  %6192 = vmatprep.subr.mxu1 %v9857_v0 }
 0x51d   :  { %1392 = vmatpush1.msra.mxu0 %v7762_v46 }
 0x51e   :  { %1393 = vmatprep.subr.mxu0 %v7765_v47 }
 0x51f   :  { %1394 = vmatpush1.msra.mxu0 %v7768_v48 }
 0x520   :  { %1395 = vmatprep.subr.mxu0 %v7771_v49 }
 0x521   :  { %1396 = vmatpush1.msra.mxu0 %v7773_v51 }
 0x522   :  { %1397 = vmatprep.subr.mxu0 %v7779_v53 }
 0x523   :  { %1398 = vmatpush1.msra.mxu0 %v7781_v55 }
 0x524   :  { %1399 = vmatprep.subr.mxu0 %v7787_v35 }
 0x525   :  { %1400 = vmatpush1.msra.mxu0 %v7793_v54 }
 0x526   :  { %1401 = vmatprep.subr.mxu0 %v7797_v63 }
 0x527   :  { %1402 = vmatpush1.msra.mxu0 %v7803_v39 }
 0x528   :  { %1403 = vmatprep.subr.mxu0 %v7807_v42 }
 0x529   :  { %1404 = vmatpush1.msra.mxu0 %v7813_v57 }
 0x52a   :  { %1405 = vmatprep.subr.mxu0 %v7817_v60 }
 0x52b   :  { %1406 = vmatpush1.msra.mxu0 %v7823_v6 }
 0x52c   :  { %1407 = vmatprep.subr.mxu0 %v7827_v7 }
 0x52d   :  { %1408 = vmatpush1.msra.mxu0 %v7833_v9 }
 0x52e   :  { %1409 = vmatprep.subr.mxu0 %v7837_v10 }
 0x52f   :  { %1410 = vmatpush1.msra.mxu0 %v7843_v13 }
 0x530   :  { %1411 = vmatprep.subr.mxu0 %v7847_v14 }
 0x531   :  { %1412 = vmatpush1.msra.mxu0 %v7853_v16 }
 0x532   :  { %1593 = vmatprep.subr.mxu0 %v7729_v33  ;;  %v7922_v33 = vld [vmem:[#allocation7 + $0x118] sm:$0xff] }
 0x533   :  { %6193 = vmatpush3.msra.mxu1 %v7922_v33 }
 0x534   :  { %6194 = vmatprep.subr.mxu1 %v9857_v0 }
 0x535   :  { %6195 = vmatpush3.msra.mxu1 %v7926_v25 }
 0x536   :  { %6196 = vmatprep.subr.mxu1 %v9857_v0 }
 0x537   :  { %6197 = vmatpush3.msra.mxu1 %v7930_v26 }
 0x538   :  { %6198 = vmatprep.subr.mxu1 %v9857_v0 }
 0x539   :  { %6199 = vmatpush3.msra.mxu1 %v7775_v52 }
 0x53a   :  { %6200 = vmatprep.subr.mxu1 %v9857_v0 }
 0x53b   :  { %6201 = vmatpush3.msra.mxu1 %v7783_v5 }
 0x53c   :  { %6202 = vmatprep.subr.mxu1 %v9857_v0 }
 0x53d   :  { %6203 = vmatpush3.msra.mxu1 %v7789_v36 }
 0x53e   :  { %6204 = vmatprep.subr.mxu1 %v9857_v0 }
 0x53f   :  { %6205 = vmatpush3.msra.mxu1 %v7799_v1 }
 0x540   :  { %6206 = vmatprep.subr.mxu1 %v9857_v0 }
 0x541   :  { %6207 = vmatpush3.msra.mxu1 %v7809_v56 }
 0x542   :  { %6208 = vmatprep.subr.mxu1 %v9857_v0 }
 0x543   :  { %6209 = vmatpush3.msra.mxu1 %v7819_v61 }
 0x544   :  { %6210 = vmatprep.subr.mxu1 %v9857_v0 }
 0x545   :  { %6211 = vmatpush3.msra.mxu1 %v7829_v8 }
 0x546   :  { %6212 = vmatprep.subr.mxu1 %v9857_v0 }
 0x547   :  { %6213 = vmatpush3.msra.mxu1 %v7839_v11 }
 0x548   :  { %6214 = vmatprep.subr.mxu1 %v9857_v0 }
 0x549   :  { %6215 = vmatpush3.msra.mxu1 %v7849_v15  ;;  %v7957_v15 = vld [vmem:[%s9742_s5] ss:$0 sm:$0xff] }
 0x54a   :  { %6219 = vmatprep.subr.mxu1 %v9857_v0 }
 0x5d2   :  { %v1235_v27 = vpop.f32.mrf.mxu0  ;;  %v1306_v28 = vpop.f32.mrf.mxu1 }
 0x5d3   :  { %v1310_v29 = vadd.f32 %v1235_v27, %v9867_v12  ;;  %v1324_v27 = vadd.f32 %v7957_v15, %v1306_v28  ;;  %v1789_v28 = vld [vmem:[#allocation5 + $0xc0] sm:$0xff] }
 0x5d4   :  { %v6183_v30 = vpop.f32.mrf.mxu1  ;;  %v1237_v17 = vpop.f32.mrf.mxu0 }
 0x5d5   :  { %v5528_v31 = vmul.f32 -1.442695, %v1310_v29  ;;  %v1317_v19 = vadd.f32 %v1237_v17, %v7433_v50 }
 0x5d7   :  { %6936 = vpow2.f32 %v5528_v31  ;;  %v5529_v20 = vmul.f32 -1.442695, %v1317_v19 }
 0x5d9   :  { %6938 = vpow2.f32 %v5529_v20 }
 0x5e4   :  { %v6937_v21 = vpop.eup %6936 }
 0x5e5   :  { %v1314_v22 = vadd.f32 1.0, %v6937_v21 }
 0x5e6   :  { %v6939_v32 = vpop.eup %6938 }
 0x5e7   :  { %6940 = vrcp.f32 %v1314_v22  ;;  %v1321_v2 = vadd.f32 1.0, %v6939_v32 }
 0x5e9   :  { %6942 = vrcp.f32 %v1321_v2  ;;  %v9870_v2 = vld [vmem:[#allocation14_spill] sm:$0xff] }
 0x5f4   :  { %v6941_v30 = vpop.eup %6940 }
 0x5f5   :  { %v1325_v29 = vmul.f32 %v6941_v30, %v1324_v27  ;;  %v1787_v27 = vld [vmem:[#allocation5 + $0xb0] sm:$0xff]  ;;  %v1788_v30 = vld [vmem:[#allocation5 + $0xb8] sm:$0xff] }
 0x5f6   :  { %v6943_v17 = vpop.eup %6942 }
 0x5f7   :  { %v1326_v31 = vadd.f32 %v1325_v29, %v7444_v59  ;;  %v1328_v19 = vsub.f32 1.0, %v6943_v17  ;;  %v1330_v22 = vmul.f32 %v6943_v17, %v7867_v23  ;;  %v1786_v29 = vld [vmem:[#allocation5 + $0xa8] sm:$0xff]  ;;  %v1785_v17 = vld [vmem:[#allocation5 + $0xa0] sm:$0xff] }
 0x5f9   :  { %6944 = vtanh.f32 %v1326_v31  ;;  %v1784_v31 = vld [vmem:[#allocation5 + $0x98] sm:$0xff] }
 0x606   :  { %v6945_v20 = vpop.eup %6944 }
 0x607   :  { %v1329_v21 = vmul.f32 %v6945_v20, %v1328_v19  ;;  %v1783_v19 = vld [vmem:[#allocation5 + $0x90] sm:$0xff]  ;;  %v1781_v20 = vld [vmem:[#allocation5 + $0x80] sm:$0xff] }
 0x609   :  { %v7962_v32 = vadd.f32 %v1330_v22, %v1329_v21  ;;  %v1782_v21 = vld [vmem:[#allocation5 + $0x88] sm:$0xff]  ;;  %v1780_v22 = vld [vmem:[#allocation5 + $0x78] sm:$0xff] }
 0x60b   :  { %1446 = vmatmul.mubr.f32.vlgmr.msra.gmra.mxu0 %v7962_v32  ;;  %6217 = vmatmul.mubr.f32.vlgmr.msra.gmra.mxu1 %v7962_v32 }
 0x60c   :  { %1594 = vmatpush1.msra.mxu0 %v7732_v34  ;;  %6220 = vmatpush3.msra.mxu1 %v7906_v58  ;;  %v1811_v34 = vld [vmem:[#allocation5 + $0x170] sm:$0xff]  ;;  %v1797_v58 = vld [vmem:[#allocation5 + $0x100] sm:$0xff] }
 0x60d   :  { %1595 = vmatprep.subr.mxu0 %v7735_v44  ;;  %6221 = vmatprep.subr.mxu1 %v9857_v0  ;;  %v1812_v44 = vld [vmem:[#allocation5 + $0x178] sm:$0xff] }
 0x60e   :  { %1596 = vmatpush1.msra.mxu0 %v7738_v3  ;;  %6222 = vmatpush3.msra.mxu1 %v7910_v62  ;;  %v1795_v62 = vld [vmem:[#allocation5 + $0xf0] sm:$0xff] }
 0x60f   :  { %1597 = vmatprep.subr.mxu0 %v7741_v4  ;;  %6223 = vmatprep.subr.mxu1 %v9857_v0 }
 0x610   :  { %1598 = vmatpush1.msra.mxu0 %v7744_v37  ;;  %6224 = vmatpush3.msra.mxu1 %v7914_v18  ;;  %v1793_v18 = vld [vmem:[#allocation5 + $0xe0] sm:$0xff] }
 0x611   :  { %1599 = vmatprep.subr.mxu0 %v7747_v38  ;;  %6225 = vmatprep.subr.mxu1 %v9857_v0 }
 0x612   :  { %1600 = vmatpush1.msra.mxu0 %v7750_v40  ;;  %6226 = vmatpush3.msra.mxu1 %v7918_v24  ;;  %v1794_v24 = vld [vmem:[#allocation5 + $0xe8] sm:$0xff] }
 0x613   :  { %1601 = vmatprep.subr.mxu0 %v7753_v41  ;;  %6227 = vmatprep.subr.mxu1 %v9857_v0 }
 0x614   :  { %1602 = vmatpush1.msra.mxu0 %v7756_v43  ;;  %6228 = vmatpush3.msra.mxu1 %v7922_v33  ;;  %v1792_v33 = vld [vmem:[#allocation5 + $0xd8] sm:$0xff] }
 0x615   :  { %1603 = vmatprep.subr.mxu0 %v7759_v45  ;;  %6229 = vmatprep.subr.mxu1 %v9857_v0 }
 0x616   :  { %1604 = vmatpush1.msra.mxu0 %v7762_v46  ;;  %6230 = vmatpush3.msra.mxu1 %v7926_v25  ;;  %v1790_v25 = vld [vmem:[#allocation5 + $0xc8] sm:$0xff] }
 0x617   :  { %1605 = vmatprep.subr.mxu0 %v7765_v47  ;;  %6231 = vmatprep.subr.mxu1 %v9857_v0 }
 0x618   :  { %1606 = vmatpush1.msra.mxu0 %v7768_v48  ;;  %6232 = vmatpush3.msra.mxu1 %v7930_v26  ;;  %v1791_v26 = vld [vmem:[#allocation5 + $0xd0] sm:$0xff] }
 0x619   :  { %1607 = vmatprep.subr.mxu0 %v7771_v49  ;;  %6233 = vmatprep.subr.mxu1 %v9857_v0 }
 0x61a   :  { %1608 = vmatpush1.msra.mxu0 %v7773_v51  ;;  %6234 = vmatpush3.msra.mxu1 %v7775_v52 }
 0x61b   :  { %1609 = vmatprep.subr.mxu0 %v7779_v53  ;;  %6235 = vmatprep.subr.mxu1 %v9857_v0 }
 0x61c   :  { %1610 = vmatpush1.msra.mxu0 %v7781_v55  ;;  %6236 = vmatpush3.msra.mxu1 %v7783_v5 }
 0x61d   :  { %1611 = vmatprep.subr.mxu0 %v7787_v35  ;;  %6237 = vmatprep.subr.mxu1 %v9857_v0 }
 0x61e   :  { %1612 = vmatpush1.msra.mxu0 %v7793_v54  ;;  %6238 = vmatpush3.msra.mxu1 %v7789_v36 }
 0x61f   :  { %1613 = vmatprep.subr.mxu0 %v7797_v63  ;;  %6239 = vmatprep.subr.mxu1 %v9857_v0 }
 0x620   :  { %1614 = vmatpush1.msra.mxu0 %v7803_v39  ;;  %6240 = vmatpush3.msra.mxu1 %v7799_v1  ;;  %v1810_v39 = vld [vmem:[#allocation5 + $0x168] sm:$0xff] }
 0x621   :  { %1615 = vmatprep.subr.mxu0 %v7807_v42  ;;  %6241 = vmatprep.subr.mxu1 %v9857_v0  ;;  %v1808_v42 = vld [vmem:[#allocation5 + $0x158] sm:$0xff] }
 0x622   :  { %1616 = vmatpush1.msra.mxu0 %v7813_v57  ;;  %6242 = vmatpush3.msra.mxu1 %v7809_v56  ;;  %v1809_v56 = vld [vmem:[#allocation5 + $0x160] sm:$0xff]  ;;  %v1807_v57 = vld [vmem:[#allocation5 + $0x150] sm:$0xff] }
 0x623   :  { %1617 = vmatprep.subr.mxu0 %v7817_v60  ;;  %6243 = vmatprep.subr.mxu1 %v9857_v0  ;;  %v1805_v60 = vld [vmem:[#allocation5 + $0x140] sm:$0xff] }
 0x624   :  { %1618 = vmatpush1.msra.mxu0 %v7823_v6  ;;  %6244 = vmatpush3.msra.mxu1 %v7819_v61  ;;  %v1806_v61 = vld [vmem:[#allocation5 + $0x148] sm:$0xff]  ;;  %v1804_v6 = vld [vmem:[#allocation5 + $0x138] sm:$0xff] }
 0x625   :  { %1619 = vmatprep.subr.mxu0 %v7827_v7  ;;  %6245 = vmatprep.subr.mxu1 %v9857_v0  ;;  %v9871_v7 = vld [vmem:[#allocation20_spill] sm:$0xff] }
 0x626   :  { %1620 = vmatpush1.msra.mxu0 %v7833_v9  ;;  %6246 = vmatpush3.msra.mxu1 %v7829_v8  ;;  %v1802_v8 = vld [vmem:[#allocation5 + $0x128] sm:$0xff]  ;;  %v1803_v9 = vld [vmem:[#allocation5 + $0x130] sm:$0xff] }
 0x627   :  { %1621 = vmatprep.subr.mxu0 %v7837_v10  ;;  %6247 = vmatprep.subr.mxu1 %v9857_v0  ;;  %v1801_v10 = vld [vmem:[#allocation5 + $0x120] sm:$0xff] }
 0x628   :  { %1622 = vmatpush1.msra.mxu0 %v7843_v13  ;;  %6248 = vmatpush3.msra.mxu1 %v7839_v11  ;;  %v1799_v11 = vld [vmem:[#allocation5 + $0x110] sm:$0xff]  ;;  %v1800_v13 = vld [vmem:[#allocation5 + $0x118] sm:$0xff] }
 0x629   :  { %1623 = vmatprep.subr.mxu0 %v7847_v14  ;;  %6249 = vmatprep.subr.mxu1 %v9857_v0  ;;  %v1798_v14 = vld [vmem:[#allocation5 + $0x108] sm:$0xff] }
 0x62a   :  { %1624 = vmatpush1.msra.mxu0 %v7853_v16  ;;  %6250 = vmatpush3.msra.mxu1 %v9870_v2  ;;  %v1796_v16 = vld [vmem:[#allocation5 + $0xf8] sm:$0xff]  ;;  %v1778_v2 = vld [vmem:[#allocation5 + $0x68] sm:$0xff] }
 0x62b   :  { %1657 = vmatprep.mubr.f32.mxu0 %v9857_v0  ;;  %6251 = vmatprep.mubr.msk.f32.mxu1 %vm7224_vm1, %v9857_v0 }
 0x62c   :  { %1831 = vmatprep.subr.mxu0 %v1811_v34  ;;  %6254 = vmatprep.subr.mxu1 %v1812_v44  ;;  %v1779_v34 = vld [vmem:[#allocation5 + $0x70] sm:$0xff] }
 0x6cb   :  { %v1447_v3 = vpop.f32.mrf.mxu0  ;;  %v1518_v4 = vpop.f32.mrf.mxu1 }
 0x6cc   :  { %v1522_v37 = vadd.f32 %v1447_v3, %v9867_v12  ;;  %v1536_v51 = vadd.f32 %v7957_v15, %v1518_v4  ;;  %v1775_v3 = vld [vmem:[#allocation5 + $0x50] sm:$0xff]  ;;  %v1776_v4 = vld [vmem:[#allocation5 + $0x58] sm:$0xff] }
 0x6cd   :  { %v6218_v38 = vpop.f32.mrf.mxu1  ;;  %v1449_v41 = vpop.f32.mrf.mxu0 }
 0x6ce   :  { %v5530_v40 = vmul.f32 -1.442695, %v1522_v37  ;;  %v1529_v43 = vadd.f32 %v1449_v41, %v7433_v50  ;;  %v1774_v37 = vld [vmem:[#allocation5 + $0x48] sm:$0xff]  ;;  %v1772_v38 = vld [vmem:[#allocation5 + $0x38] sm:$0xff]  ;;  %v1771_v41 = vld [vmem:[#allocation5 + $0x30] sm:$0xff] }
 0x6d0   :  { %6946 = vpow2.f32 %v5530_v40  ;;  %v5531_v45 = vmul.f32 -1.442695, %v1529_v43  ;;  %v1773_v40 = vld [vmem:[#allocation5 + $0x40] sm:$0xff] }
 0x6d1   :  { %v1769_v43 = vld [vmem:[#allocation5 + $0x20] sm:$0xff] }
 0x6d2   :  { %6948 = vpow2.f32 %v5531_v45  ;;  %v1770_v45 = vld [vmem:[#allocation5 + $0x28] sm:$0xff] }
 0x6dd   :  { %v6947_v46 = vpop.eup %6946 }
 0x6de   :  { %v1526_v47 = vadd.f32 1.0, %v6947_v46  ;;  %v1768_v46 = vld [vmem:[#allocation5 + $0x18] sm:$0xff] }
 0x6df   :  { %v6949_v48 = vpop.eup %6948 }
 0x6e0   :  { %6950 = vrcp.f32 %v1526_v47  ;;  %v1533_v49 = vadd.f32 1.0, %v6949_v48  ;;  %v1766_v47 = vld [vmem:[#allocation5 + $0x8] sm:$0xff]  ;;  %v1767_v48 = vld [vmem:[#allocation5 + $0x10] sm:$0xff] }
 0x6e2   :  { %6952 = vrcp.f32 %v1533_v49  ;;  %v1765_v49 = vld [vmem:[#allocation5] sm:$0xff] }
 0x6ed   :  { %v6951_v52 = vpop.eup %6950 }
 0x6ee   :  { %v1537_v53 = vmul.f32 %v6951_v52, %v1536_v51  ;;  %v9872_v51 = vld [vmem:[#allocation23_spill] sm:$0xff]  ;;  %v9873_v52 = vld [vmem:[#allocation13_spill] sm:$0xff] }
 0x6ef   :  { %v6953_v5 = vpop.eup %6952 }
 0x6f0   :  { %v1538_v55 = vadd.f32 %v1537_v53, %v7444_v59  ;;  %v1540_v35 = vsub.f32 1.0, %v6953_v5  ;;  %v1542_v63 = vmul.f32 %v6953_v5, %v7962_v32  ;;  %v9874_v53 = vld [vmem:[#allocation21_spill] sm:$0xff]  ;;  %v8066_v5 = vld [vmem:[#allocation7 + $0x2e8] sm:$0xff] }
 0x6f2   :  { %6954 = vtanh.f32 %v1538_v55  ;;  %v8063_v55 = vld [vmem:[#allocation7 + $0x2f0] sm:$0xff] }
 0x6f3   :  { %9875 = vst [vmem:[#allocation15_spill] sm:$0xff] %v8063_v55 }
 0x6ff   :  { %v6955_v36 = vpop.eup %6954 }
 0x700   :  { %v1541_v54 = vmul.f32 %v6955_v36, %v1540_v35  ;;  %v8068_v35 = vld [vmem:[#allocation7 + $0x2f8] sm:$0xff]  ;;  %v8078_v36 = vld [vmem:[#allocation7 + $0x2e0] sm:$0xff] }
 0x702   :  { %v8036_v1 = vadd.f32 %v1542_v63, %v1541_v54  ;;  %v8081_v54 = vld [vmem:[#allocation7 + $0x2c0] sm:$0xff]  ;;  %v8085_v63 = vld [vmem:[#allocation7 + $0x2b8] sm:$0xff] }
 0x704   :  { %1658 = vmatmul.mubr.f32.vlgmr.msra.gmra.mxu0 %v8036_v1  ;;  %6252 = vmatmul.mubr.f32.vlgmr.msra.gmra.mxu1 %v8036_v1 }
 0x705   :  { %1832 = vmatpush1.msra.mxu0 %v1810_v39  ;;  %6255 = vmatpush3.msra.mxu1 %v1812_v44  ;;  %v1777_v44 = vld [vmem:[#allocation5 + $0x60] sm:$0xff]  ;;  %v8088_v39 = vld [vmem:[#allocation7 + $0x2c8] sm:$0xff] }
 0x706   :  { %1833 = vmatprep.subr.mxu0 %v1808_v42  ;;  %6256 = vmatprep.subr.mxu1 %v1809_v56  ;;  %v8091_v42 = vld [vmem:[#allocation7 + $0x2a8] sm:$0xff] }
 0x707   :  { %6286 = vmatprep.mubr.f32.mxu1 %v9871_v7  ;;  %1834 = vmatpush1.msra.mxu0 %v1807_v57  ;;  %v8098_v57 = vld [vmem:[#allocation7 + $0x2b0] sm:$0xff] }
 0x708   :  { %6257 = vmatpush3.msra.mxu1 %v1809_v56  ;;  %1835 = vmatprep.subr.mxu0 %v1805_v60  ;;  %v8095_v56 = vld [vmem:[#allocation7 + $0x2a0] sm:$0xff]  ;;  %v8101_v60 = vld [vmem:[#allocation7 + $0x290] sm:$0xff] }
 0x709   :  { %6258 = vmatprep.subr.mxu1 %v1806_v61  ;;  %1836 = vmatpush1.msra.mxu0 %v1804_v6  ;;  %v8108_v6 = vld [vmem:[#allocation7 + $0x298] sm:$0xff] }
 0x70a   :  { %6259 = vmatpush3.msra.mxu1 %v1806_v61  ;;  %1837 = vmatprep.subr.mxu0 %v1802_v8  ;;  %v8105_v61 = vld [vmem:[#allocation7 + $0x288] sm:$0xff]  ;;  %v8115_v8 = vld [vmem:[#allocation7 + $0x270] sm:$0xff] }
 0x70b   :  { %6260 = vmatprep.subr.mxu1 %v1803_v9  ;;  %1838 = vmatpush1.msra.mxu0 %v1801_v10  ;;  %v8121_v10 = vld [vmem:[#allocation7 + $0x260] sm:$0xff] }
 0x70c   :  { %6261 = vmatpush3.msra.mxu1 %v1803_v9  ;;  %1839 = vmatprep.subr.mxu0 %v1799_v11  ;;  %v8118_v9 = vld [vmem:[#allocation7 + $0x280] sm:$0xff]  ;;  %v8125_v11 = vld [vmem:[#allocation7 + $0x258] sm:$0xff] }
 0x70d   :  { %6262 = vmatprep.subr.mxu1 %v1800_v13  ;;  %1840 = vmatpush1.msra.mxu0 %v1798_v14  ;;  %v8131_v14 = vld [vmem:[#allocation7 + $0x248] sm:$0xff] }
 0x70e   :  { %6263 = vmatpush3.msra.mxu1 %v1800_v13  ;;  %1841 = vmatprep.subr.mxu0 %v1796_v16  ;;  %v8128_v13 = vld [vmem:[#allocation7 + $0x268] sm:$0xff]  ;;  %v8135_v16 = vld [vmem:[#allocation7 + $0x240] sm:$0xff] }
 0x70f   :  { %6264 = vmatprep.subr.mxu1 %v1797_v58  ;;  %1842 = vmatpush1.msra.mxu0 %v1795_v62  ;;  %v8141_v62 = vld [vmem:[#allocation7 + $0x230] sm:$0xff] }
 0x710   :  { %6265 = vmatpush3.msra.mxu1 %v1797_v58  ;;  %1843 = vmatprep.subr.mxu0 %v1793_v18  ;;  %v8138_v58 = vld [vmem:[#allocation7 + $0x250] sm:$0xff]  ;;  %v8145_v18 = vld [vmem:[#allocation7 + $0x228] sm:$0xff] }
 0x711   :  { %6266 = vmatprep.subr.mxu1 %v1794_v24  ;;  %1844 = vmatpush1.msra.mxu0 %v1792_v33  ;;  %v8150_v33 = vld [vmem:[#allocation7 + $0x238] sm:$0xff] }
 0x712   :  { %6267 = vmatpush3.msra.mxu1 %v1794_v24  ;;  %1845 = vmatprep.subr.mxu0 %v1790_v25  ;;  %v8148_v24 = vld [vmem:[#allocation7 + $0x218] sm:$0xff]  ;;  %v8154_v25 = vld [vmem:[#allocation7 + $0x210] sm:$0xff] }
 0x713   :  { %6268 = vmatprep.subr.mxu1 %v1791_v26  ;;  %1846 = vmatpush1.msra.mxu0 %v1789_v28  ;;  %v8158_v28 = vld [vmem:[#allocation7 + $0x220] sm:$0xff] }
 0x714   :  { %6269 = vmatpush3.msra.mxu1 %v1791_v26  ;;  %1847 = vmatprep.subr.mxu0 %v1787_v27  ;;  %v8156_v26 = vld [vmem:[#allocation7 + $0x200] sm:$0xff]  ;;  %v8162_v27 = vld [vmem:[#allocation7 + $0x1f8] sm:$0xff] }
 0x715   :  { %6270 = vmatprep.subr.mxu1 %v1788_v30  ;;  %1848 = vmatpush1.msra.mxu0 %v1786_v29  ;;  %v8168_v29 = vld [vmem:[#allocation7 + $0x1e8] sm:$0xff] }
 0x716   :  { %6271 = vmatpush3.msra.mxu1 %v1788_v30  ;;  %1849 = vmatprep.subr.mxu0 %v1784_v31  ;;  %v8164_v30 = vld [vmem:[#allocation7 + $0x208] sm:$0xff]  ;;  %v8172_v31 = vld [vmem:[#allocation7 + $0x1e0] sm:$0xff] }
 0x717   :  { %6272 = vmatprep.subr.mxu1 %v1785_v17  ;;  %1850 = vmatpush1.msra.mxu0 %v1783_v19  ;;  %v8178_v19 = vld [vmem:[#allocation7 + $0x1d0] sm:$0xff] }
 0x718   :  { %6273 = vmatpush3.msra.mxu1 %v1785_v17  ;;  %1851 = vmatprep.subr.mxu0 %v1781_v20  ;;  %v8174_v17 = vld [vmem:[#allocation7 + $0x1f0] sm:$0xff]  ;;  %v8182_v20 = vld [vmem:[#allocation7 + $0x1c8] sm:$0xff] }
 0x719   :  { %6274 = vmatprep.subr.mxu1 %v1782_v21  ;;  %1852 = vmatpush1.msra.mxu0 %v1780_v22  ;;  %v8188_v22 = vld [vmem:[#allocation7 + $0x1b8] sm:$0xff] }
 0x71a   :  { %6275 = vmatpush3.msra.mxu1 %v1782_v21  ;;  %1853 = vmatprep.subr.mxu0 %v1778_v2  ;;  %v8184_v21 = vld [vmem:[#allocation7 + $0x1d8] sm:$0xff]  ;;  %v8192_v2 = vld [vmem:[#allocation7 + $0x1b0] sm:$0xff] }
 0x71b   :  { %6276 = vmatprep.subr.mxu1 %v1779_v34  ;;  %1854 = vmatpush1.msra.mxu0 %v1777_v44  ;;  %v8198_v44 = vld [vmem:[#allocation7 + $0x1a0] sm:$0xff] }
 0x71c   :  { %6277 = vmatpush3.msra.mxu1 %v1779_v34  ;;  %1855 = vmatprep.subr.mxu0 %v1775_v3  ;;  %v8194_v34 = vld [vmem:[#allocation7 + $0x1c0] sm:$0xff]  ;;  %9877 = vst [vmem:[#allocation18_spill] sm:$0xff] %v8198_v44  ;;  %v8202_v3 = vld [vmem:[#allocation7 + $0x198] sm:$0xff] }
 0x71d   :  { %6278 = vmatprep.subr.mxu1 %v1776_v4  ;;  %1856 = vmatpush1.msra.mxu0 %v1774_v37  ;;  %9876 = vst [vmem:[#allocation22_spill] sm:$0xff] %v8194_v34  ;;  %9878 = vst [vmem:[#allocation14_spill] sm:$0xff] %v8202_v3  ;;  %v8208_v37 = vld [vmem:[#allocation7 + $0x188] sm:$0xff] }
 0x71e   :  { %6279 = vmatpush3.msra.mxu1 %v1776_v4  ;;  %1857 = vmatprep.subr.mxu0 %v1772_v38  ;;  %v8204_v4 = vld [vmem:[#allocation7 + $0x1a8] sm:$0xff]  ;;  %9880 = vst [vmem:[#allocation23_spill] sm:$0xff] %v8208_v37  ;;  %v8212_v38 = vld [vmem:[#allocation7 + $0x180] sm:$0xff] }
 0x71f   :  { %6280 = vmatprep.subr.mxu1 %v1773_v40  ;;  %1858 = vmatpush1.msra.mxu0 %v1771_v41  ;;  %9879 = vst [vmem:[#allocation20_spill] sm:$0xff] %v8204_v4  ;;  %9881 = vst [vmem:[#allocation13_spill] sm:$0xff] %v8212_v38 }
 0x720   :  { %6281 = vmatpush3.msra.mxu1 %v1773_v40  ;;  %1859 = vmatprep.subr.mxu0 %v1769_v43  ;;  %v8214_v40 = vld [vmem:[#allocation7 + $0x190] sm:$0xff] }
 0x721   :  { %6282 = vmatprep.subr.mxu1 %v1770_v45  ;;  %1860 = vmatpush1.msra.mxu0 %v1768_v46  ;;  %9882 = vst [vmem:[#allocation21_spill] sm:$0xff] %v8214_v40 }
 0x722   :  { %6283 = vmatpush3.msra.mxu1 %v1770_v45  ;;  %1861 = vmatprep.subr.mxu0 %v1766_v47 }
 0x723   :  { %6284 = vmatprep.subr.mxu1 %v1767_v48  ;;  %1862 = vmatpush1.msra.mxu0 %v1765_v49 }
 0x724   :  { %1895 = vmatprep.mubr.f32.mxu0 %v9857_v0  ;;  %6285 = vmatpush3.msra.mxu1 %v1767_v48 }
 0x725   :  { %1896 = vmatmul.mubr.f32.vlgmr.msra.gmra.mxu0 %v9871_v7  ;;  %6287 = vmatmul.mubr.f32.vlgmr.msra.gmra.mxu1 %v9872_v51  ;;  %v8111_v7 = vld [vmem:[#allocation7 + $0x278] sm:$0xff] }
 0x726   :  { %6289 = vmatprep.mubr.f32.mxu1 %v9873_v52  ;;  %1901 = vmatprep.mubr.f32.mxu0 %v9857_v0 }
 0x727   :  { %6298 = vmatprep.subr.mxu1 %v9857_v0  ;;  %2124 = vmatprep.subr.mxu0 %v8063_v55 }
 0x728   :  { %2125 = vmatpush1.msra.mxu0 %v8066_v5  ;;  %6299 = vmatpush3.msra.mxu1 %v8068_v35 }
 0x729   :  { %1902 = vmatmul.mubr.f32.gmra.mxu0 %v9872_v51  ;;  %6290 = vmatmul.mubr.f32.gmra.mxu1 %v9874_v53 }
 0x72a   :  { %6292 = vmatprep.mubr.f32.mxu1 %v7867_v23  ;;  %1907 = vmatprep.mubr.f32.mxu0 %v9857_v0 }
 0x72b   :  { %6300 = vmatprep.subr.mxu1 %v9857_v0 }
 0x72c   :  { %6301 = vmatpush3.msra.mxu1 %v8078_v36 }
 0x72d   :  { %1908 = vmatmul.mubr.f32.gmra.mxu0 %v9873_v52  ;;  %6293 = vmatmul.mubr.f32.gmra.mxu1 %v7962_v32 }
 0x72e   :  { %6295 = vmatprep.mubr.f32.mxu1 %v8036_v1  ;;  %1913 = vmatprep.mubr.f32.mxu0 %v9857_v0 }
 0x72f   :  { %6302 = vmatprep.subr.mxu1 %v9857_v0 }
 0x730   :  { %6303 = vmatpush3.msra.mxu1 %v8088_v39 }
 0x731   :  { %1914 = vmatmul.mubr.f32.gmra.mxu0 %v9874_v53  ;;  %6304 = vmatprep.subr.mxu1 %v9857_v0 }
 0x732   :  { %1919 = vmatprep.mubr.f32.mxu0 %v9857_v0  ;;  %6305 = vmatpush3.msra.mxu1 %v8098_v57 }
 0x733   :  { %6306 = vmatprep.subr.mxu1 %v9857_v0 }
 0x734   :  { %6307 = vmatpush3.msra.mxu1 %v8108_v6 }
 0x735   :  { %1920 = vmatmul.mubr.f32.gmra.mxu0 %v7867_v23  ;;  %v8071_v23 = vld [vmem:[#allocation7 + $0x2d8] sm:$0xff]  ;;  %6308 = vmatprep.subr.mxu1 %v9857_v0 }
 0x736   :  { %1925 = vmatprep.mubr.f32.mxu0 %v9857_v0  ;;  %2126 = vmatprep.subr.mxu0 %v8071_v23 }
 0x737   :  { %6309 = vmatpush3.msra.mxu1 %v8118_v9 }
 0x738   :  { %6310 = vmatprep.subr.mxu1 %v9857_v0 }
 0x739   :  { %1926 = vmatmul.mubr.f32.gmra.mxu0 %v7962_v32  ;;  %v8075_v32 = vld [vmem:[#allocation7 + $0x2d0] sm:$0xff]  ;;  %6311 = vmatpush3.msra.mxu1 %v8128_v13 }
 0x73a   :  { %1931 = vmatprep.mubr.f32.mxu0 %v9857_v0  ;;  %2127 = vmatpush1.msra.mxu0 %v8075_v32 }
 0x73b   :  { %2128 = vmatprep.subr.mxu0 %v8081_v54  ;;  %6312 = vmatprep.subr.mxu1 %v9857_v0 }
 0x73c   :  { %2129 = vmatpush1.msra.mxu0 %v8085_v63  ;;  %6313 = vmatpush3.msra.mxu1 %v8138_v58 }
 0x73d   :  { %1932 = vmatmul.mubr.f32.gmra.mxu0 %v8036_v1  ;;  %2130 = vmatprep.subr.mxu0 %v8091_v42 }
 0x73e   :  { %1937 = vmatprep.mubr.f32.mxu0 %v9857_v0  ;;  %2131 = vmatpush1.msra.mxu0 %v8095_v56 }
 0x73f   :  { %2132 = vmatprep.subr.mxu0 %v8101_v60  ;;  %6314 = vmatprep.subr.mxu1 %v9857_v0 }
 0x740   :  { %2133 = vmatpush1.msra.mxu0 %v8105_v61  ;;  %6315 = vmatpush3.msra.mxu1 %v8150_v33 }
 0x741   :  { %2134 = vmatprep.subr.mxu0 %v8111_v7  ;;  %6316 = vmatprep.subr.mxu1 %v9857_v0 }
 0x742   :  { %2135 = vmatpush1.msra.mxu0 %v8115_v8  ;;  %6317 = vmatpush3.msra.mxu1 %v8158_v28 }
 0x743   :  { %2136 = vmatprep.subr.mxu0 %v8121_v10  ;;  %6318 = vmatprep.subr.mxu1 %v9857_v0 }
 0x744   :  { %2137 = vmatpush1.msra.mxu0 %v8125_v11  ;;  %6319 = vmatpush3.msra.mxu1 %v8164_v30 }
 0x745   :  { %2138 = vmatprep.subr.mxu0 %v8131_v14  ;;  %6320 = vmatprep.subr.mxu1 %v9857_v0 }
 0x746   :  { %2139 = vmatpush1.msra.mxu0 %v8135_v16  ;;  %6321 = vmatpush3.msra.mxu1 %v8174_v17 }
 0x747   :  { %2140 = vmatprep.subr.mxu0 %v8141_v62  ;;  %6322 = vmatprep.subr.mxu1 %v9857_v0 }
 0x748   :  { %2141 = vmatpush1.msra.mxu0 %v8145_v18  ;;  %6323 = vmatpush3.msra.mxu1 %v8184_v21 }
 0x749   :  { %2142 = vmatprep.subr.mxu0 %v8148_v24  ;;  %6324 = vmatprep.subr.mxu1 %v9857_v0 }
 0x74a   :  { %2143 = vmatpush1.msra.mxu0 %v8154_v25  ;;  %6325 = vmatpush3.msra.mxu1 %v8194_v34 }
 0x74b   :  { %2144 = vmatprep.subr.mxu0 %v8156_v26  ;;  %6326 = vmatprep.subr.mxu1 %v9857_v0 }
 0x74c   :  { %2145 = vmatpush1.msra.mxu0 %v8162_v27  ;;  %6327 = vmatpush3.msra.mxu1 %v8204_v4 }
 0x74d   :  { %2146 = vmatprep.subr.mxu0 %v8168_v29  ;;  %6328 = vmatprep.subr.mxu1 %v9857_v0 }
 0x74e   :  { %2147 = vmatpush1.msra.mxu0 %v8172_v31  ;;  %6329 = vmatpush3.msra.mxu1 %v8214_v40 }
 0x74f   :  { %2148 = vmatprep.subr.mxu0 %v8178_v19  ;;  %6333 = vmatprep.subr.mxu1 %v9857_v0 }
 0x750   :  { %2149 = vmatpush1.msra.mxu0 %v8182_v20 }
 0x751   :  { %2150 = vmatprep.subr.mxu0 %v8188_v22 }
 0x752   :  { %2151 = vmatpush1.msra.mxu0 %v8192_v2 }
 0x753   :  { %2152 = vmatprep.subr.mxu0 %v8198_v44 }
 0x754   :  { %2153 = vmatpush1.msra.mxu0 %v8202_v3 }
 0x755   :  { %2154 = vmatprep.subr.mxu0 %v8208_v37 }
 0x756   :  { %2155 = vmatpush1.msra.mxu0 %v8212_v38  ;;  %v9883_v38 = vld [vmem:[#allocation16_spill] sm:$0xff] }
 0x757   :  { %2336 = vmatprep.subr.mxu0 %v8063_v55  ;;  %v5534_v55 = vld [vmem:[%s9741_s4 + $0x3] sm:$0x7] }
 0x758   :  { %v8230_v37 = vrot.slane %v5534_v55, %v9883_v38 }
 0x75a   :  { %9884 = vst [vmem:[#allocation24_spill] sm:$0xff] %v8230_v37 }
 0x7c4   :  { %v1659_v41 = vpop.f32.mrf.mxu0  ;;  %v1730_v43 = vpop.f32.mrf.mxu1 }
 0x7c5   :  { %v1734_v45 = vadd.f32 %v1659_v41, %v9867_v12  ;;  %v1748_v41 = vadd.f32 %v7957_v15, %v1730_v43 }
 0x7c6   :  { %v6253_v46 = vpop.f32.mrf.mxu1  ;;  %v1661_v48 = vpop.f32.mrf.mxu0 }
 0x7c7   :  { %v5532_v47 = vmul.f32 -1.442695, %v1734_v45  ;;  %v1741_v49 = vadd.f32 %v1661_v48, %v7433_v50  ;;  %v9885_v48 = vld [vmem:[#allocation17_spill] sm:$0xff] }
 0x7c9   :  { %6956 = vpow2.f32 %v5532_v47  ;;  %v5533_v51 = vmul.f32 -1.442695, %v1741_v49  ;;  %v8235_v49 = vrot.slane %v5534_v55, %v9885_v48 }
 0x7cb   :  { %6958 = vpow2.f32 %v5533_v51 }
 0x7d6   :  { %v6957_v52 = vpop.eup %6956 }
 0x7d7   :  { %v1738_v53 = vadd.f32 1.0, %v6957_v52 }
 0x7d8   :  { %v6959_v40 = vpop.eup %6958 }
 0x7d9   :  { %6960 = vrcp.f32 %v1738_v53  ;;  %v1745_v12 = vadd.f32 1.0, %v6959_v40 }
 0x7db   :  { %6962 = vrcp.f32 %v1745_v12 }
 0x7e5   :  { %v1897_v45 = vpop.f32.mrf.mxu0 }
 0x7e6   :  { %v6961_v46 = vpop.eup %6960  ;;  %v1898_v50 = vadd.f32 %v1897_v45, %v8230_v37 }
 0x7e7   :  { %v1749_v47 = vmul.f32 %v6961_v46, %v1748_v41  ;;  %v1899_v53 = vpop.f32.mrf.mxu0 }
 0x7e8   :  { %v5537_v51 = vmul.f32 -1.442695, %v1898_v50  ;;  %v1900_v38 = vadd.f32 %v1899_v53, %v8235_v49  ;;  %v6963_v4 = vpop.eup %6962 }
 0x7e9   :  { %v1750_v52 = vadd.f32 %v1749_v47, %v7444_v59  ;;  %v1752_v43 = vsub.f32 1.0, %v6963_v4  ;;  %v1754_v12 = vmul.f32 %v6963_v4, %v8036_v1  ;;  %v9886_v1 = vld [vmem:[#allocation19_spill] sm:$0xff] }
 0x7ea   :  { %6964 = vpow2.f32 %v5537_v51  ;;  %v5538_v40 = vmul.f32 -1.442695, %v1900_v38  ;;  %v8243_v38 = vpop.f32.mrf.mxu1  ;;  %v8251_v4 = vrot.slane %v5534_v55, %v9886_v1  ;;  %v9888_v55 = vld [vmem:[#allocation14_spill] sm:$0xff] }
 0x7eb   :  { %6966 = vtanh.f32 %v1750_v52 }
 0x7ec   :  { %6968 = vpow2.f32 %v5538_v40  ;;  %v2010_v47 = vpop.f32.mrf.mxu1 }
 0x7ed   :  { %v2011_v52 = vadd.f32 %v2010_v47, %v8251_v4  ;;  %v9893_v47 = vld [vmem:[#allocation15_spill] sm:$0xff] }
 0x7ee   :  { %v8338_v48 = vpop.f32.mrf.mxu1 }
 0x7ef   :  { %9900 = vst [vmem:[#allocation32_spill] sm:$0xff] %v8338_v48 }
 0x7f7   :  { %v6965_v15 = vpop.eup %6964 }
 0x7f8   :  { %v6967_v3 = vpop.eup %6966  ;;  %v2060_v45 = vadd.f32 1.0, %v6965_v15 }
 0x7f9   :  { %v1753_v41 = vmul.f32 %v6967_v3, %v1752_v43  ;;  %v6969_v59 = vpop.eup %6968  ;;  %v8248_v3 = vld [vmem:[%s9742_s5 + $0x1] ss:$0 sm:$0xff] }
 0x7fa   :  { %6970 = vrcp.f32 %v2060_v45  ;;  %v2066_v50 = vadd.f32 1.0, %v6969_v59  ;;  %v9891_v59 = vld [vmem:[#allocation13_spill] sm:$0xff] }
 0x7fb   :  { %v1755_v46 = vadd.f32 %v1754_v12, %v1753_v41  ;;  %v9889_v12 = vld [vmem:[#allocation20_spill] sm:$0xff] }
 0x7fc   :  { %6972 = vrcp.f32 %v2066_v50  ;;  %v9892_v50 = vld [vmem:[#allocation21_spill] sm:$0xff] }
 0x7fd   :  { %1938 = vmatmul.mubr.f32.gmra.mxu0 %v1755_v46  ;;  %6296 = vmatmul.mubr.f32.gmra.mxu1 %v1755_v46  ;;  %v9890_v46 = vld [vmem:[#allocation23_spill] sm:$0xff] }
 0x7fe   :  { %2188 = vmatprep.mubr.f32.mxu0 %v9857_v0  ;;  %6330 = vmatprep.mubr.msk.f32.mxu1 %vm7224_vm1, %v9857_v0 }
 0x807   :  { %v6971_v51 = vpop.eup %6970 }
 0x808   :  { %v2069_v53 = vmul.f32 %v6971_v51, %v8248_v3  ;;  %v1903_v51 = vpop.f32.mrf.mxu0 }
 0x809   :  { %v6973_v15 = vpop.eup %6972 }
 0x80a   :  { %v2070_v40 = vadd.f32 %v2069_v53, %v2011_v52  ;;  %v2072_v43 = vsub.f32 1.0, %v6973_v15  ;;  %v1905_v52 = vpop.f32.mrf.mxu0 }
 0x80c   :  { %6974 = vtanh.f32 %v2070_v40  ;;  %v8326_v53 = vpop.f32.mrf.mxu0 }
 0x80d   :  { %9894 = vst [vmem:[#allocation26_spill] sm:$0xff] %v8326_v53 }
 0x80e   :  { %v8328_v40 = vpop.f32.mrf.mxu0 }
 0x80f   :  { %9895 = vst [vmem:[#allocation27_spill] sm:$0xff] %v8328_v40 }
 0x810   :  { %v8330_v15 = vpop.f32.mrf.mxu0 }
 0x811   :  { %9896 = vst [vmem:[#allocation28_spill] sm:$0xff] %v8330_v15 }
 0x819   :  { %v6975_v45 = vpop.eup %6974 }
 0x81a   :  { %v8255_v41 = vmul.f32 %v6975_v45, %v2072_v43  ;;  %v8332_v43 = vpop.f32.mrf.mxu0 }
 0x81b   :  { %9897 = vst [vmem:[#allocation29_spill] sm:$0xff] %v8332_v43 }
 0x81c   :  { %9887 = vst [vmem:[#allocation25_spill] sm:$0xff] %v8255_v41  ;;  %2189 = vmatmul.mubr.f32.vlgmr.msra.gmra.mxu0 %v8255_v41  ;;  %6331 = vmatmul.mubr.f32.vlgmr.msra.gmra.mxu1 %v8255_v41  ;;  %v8334_v45 = vpop.f32.mrf.mxu0 }
 0x81d   :  { %2337 = vmatpush1.msra.mxu0 %v8066_v5  ;;  %6334 = vmatpush3.msra.mxu1 %v8068_v35  ;;  %9898 = vst [vmem:[#allocation30_spill] sm:$0xff] %v8334_v45 }
 0x81e   :  { %2338 = vmatprep.subr.mxu0 %v8071_v23  ;;  %6335 = vmatprep.subr.mxu1 %v9857_v0  ;;  %v8336_v1 = vpop.f32.mrf.mxu0 }
 0x81f   :  { %2339 = vmatpush1.msra.mxu0 %v8075_v32  ;;  %6336 = vmatpush3.msra.mxu1 %v8078_v36  ;;  %9899 = vst [vmem:[#allocation31_spill] sm:$0xff] %v8336_v1 }
 0x820   :  { %2340 = vmatprep.subr.mxu0 %v8081_v54  ;;  %6337 = vmatprep.subr.mxu1 %v9857_v0 }
 0x821   :  { %2341 = vmatpush1.msra.mxu0 %v8085_v63  ;;  %6338 = vmatpush3.msra.mxu1 %v8088_v39 }
 0x822   :  { %2342 = vmatprep.subr.mxu0 %v8091_v42  ;;  %6339 = vmatprep.subr.mxu1 %v9857_v0 }
 0x823   :  { %2343 = vmatpush1.msra.mxu0 %v8095_v56  ;;  %6340 = vmatpush3.msra.mxu1 %v8098_v57 }
 0x824   :  { %2344 = vmatprep.subr.mxu0 %v8101_v60  ;;  %6341 = vmatprep.subr.mxu1 %v9857_v0 }
 0x825   :  { %2345 = vmatpush1.msra.mxu0 %v8105_v61  ;;  %6342 = vmatpush3.msra.mxu1 %v8108_v6 }
 0x826   :  { %2346 = vmatprep.subr.mxu0 %v8111_v7  ;;  %6343 = vmatprep.subr.mxu1 %v9857_v0 }
 0x827   :  { %2347 = vmatpush1.msra.mxu0 %v8115_v8  ;;  %6344 = vmatpush3.msra.mxu1 %v8118_v9 }
 0x828   :  { %2348 = vmatprep.subr.mxu0 %v8121_v10  ;;  %6345 = vmatprep.subr.mxu1 %v9857_v0 }
 0x829   :  { %2349 = vmatpush1.msra.mxu0 %v8125_v11  ;;  %6346 = vmatpush3.msra.mxu1 %v8128_v13 }
 0x82a   :  { %2350 = vmatprep.subr.mxu0 %v8131_v14  ;;  %6347 = vmatprep.subr.mxu1 %v9857_v0 }
 0x82b   :  { %2351 = vmatpush1.msra.mxu0 %v8135_v16  ;;  %6348 = vmatpush3.msra.mxu1 %v8138_v58 }
 0x82c   :  { %2352 = vmatprep.subr.mxu0 %v8141_v62  ;;  %6349 = vmatprep.subr.mxu1 %v9857_v0 }
 0x82d   :  { %2353 = vmatpush1.msra.mxu0 %v8145_v18  ;;  %6350 = vmatpush3.msra.mxu1 %v8150_v33 }
 0x82e   :  { %2354 = vmatprep.subr.mxu0 %v8148_v24  ;;  %6351 = vmatprep.subr.mxu1 %v9857_v0 }
 0x82f   :  { %2355 = vmatpush1.msra.mxu0 %v8154_v25  ;;  %6352 = vmatpush3.msra.mxu1 %v8158_v28 }
 0x830   :  { %2356 = vmatprep.subr.mxu0 %v8156_v26  ;;  %6353 = vmatprep.subr.mxu1 %v9857_v0 }
 0x831   :  { %2357 = vmatpush1.msra.mxu0 %v8162_v27  ;;  %6354 = vmatpush3.msra.mxu1 %v8164_v30 }
 0x832   :  { %2358 = vmatprep.subr.mxu0 %v8168_v29  ;;  %6355 = vmatprep.subr.mxu1 %v9857_v0 }
 0x833   :  { %2359 = vmatpush1.msra.mxu0 %v8172_v31  ;;  %6356 = vmatpush3.msra.mxu1 %v8174_v17 }
 0x834   :  { %2360 = vmatprep.subr.mxu0 %v8178_v19  ;;  %6357 = vmatprep.subr.mxu1 %v9857_v0 }
 0x835   :  { %2361 = vmatpush1.msra.mxu0 %v8182_v20  ;;  %6358 = vmatpush3.msra.mxu1 %v8184_v21 }
 0x836   :  { %2362 = vmatprep.subr.mxu0 %v8188_v22  ;;  %6359 = vmatprep.subr.mxu1 %v9857_v0 }
 0x837   :  { %2363 = vmatpush1.msra.mxu0 %v8192_v2  ;;  %6360 = vmatpush3.msra.mxu1 %v8194_v34 }
 0x838   :  { %2364 = vmatprep.subr.mxu0 %v8198_v44  ;;  %6361 = vmatprep.subr.mxu1 %v9857_v0 }
 0x839   :  { %2365 = vmatpush1.msra.mxu0 %v9888_v55  ;;  %6362 = vmatpush3.msra.mxu1 %v9889_v12 }
 0x83a   :  { %2366 = vmatprep.subr.mxu0 %v9890_v46  ;;  %6363 = vmatprep.subr.mxu1 %v9857_v0 }
 0x83b   :  { %2367 = vmatpush1.msra.mxu0 %v9891_v59  ;;  %2400 = vmatprep.mubr.f32.mxu0 %v9857_v0 }
 0x83c   :  { %6364 = vmatpush3.msra.mxu1 %v9892_v50  ;;  %6365 = vmatprep.mubr.msk.f32.mxu1 %vm7224_vm1, %v9857_v0  ;;  %v8340_v50 = vpop.f32.mrf.mxu0 }
 0x83d   :  { %2548 = vmatprep.subr.mxu0 %v9893_v47  ;;  %6368 = vmatprep.subr.mxu1 %v9857_v0  ;;  %9901 = vst [vmem:[#allocation33_spill] sm:$0xff] %v8340_v50  ;;  %v8342_v47 = vpop.f32.mrf.mxu1  ;;  %v1904_v50 = vadd.f32 %v1903_v51, %v8230_v37 }
 0x83e   :  { %9902 = vst [vmem:[#allocation34_spill] sm:$0xff] %v8342_v47  ;;  %v8344_v59 = vpop.f32.mrf.mxu0 }
 0x83f   :  { %9903 = vst [vmem:[#allocation35_spill] sm:$0xff] %v8344_v59  ;;  %v8346_v46 = vpop.f32.mrf.mxu1 }
 0x840   :  { %9904 = vst [vmem:[#allocation36_spill] sm:$0xff] %v8346_v46  ;;  %v8348_v53 = vpop.f32.mrf.mxu0 }
 0x841   :  { %9905 = vst [vmem:[#allocation37_spill] sm:$0xff] %v8348_v53  ;;  %v8350_v40 = vpop.f32.mrf.mxu1 }
 0x842   :  { %9906 = vst [vmem:[#allocation38_spill] sm:$0xff] %v8350_v40  ;;  %v8352_v15 = vpop.f32.mrf.mxu0  ;;  %v1906_v40 = vadd.f32 %v1905_v52, %v8235_v49 }
 0x843   :  { %9907 = vst [vmem:[#allocation39_spill] sm:$0xff] %v8352_v15 }
 0x8bd   :  { %v8354_v43 = vpop.f32.mrf.mxu0  ;;  %v8356_v45 = vpop.f32.mrf.mxu1 }
 0x8be   :  { %9908 = vst [vmem:[#allocation40_spill] sm:$0xff] %v8354_v43  ;;  %9909 = vst [vmem:[#allocation41_spill] sm:$0xff] %v8356_v45 }
 0x8bf   :  { %v8358_v1 = vpop.f32.mrf.mxu0  ;;  %v8360_v48 = vpop.f32.mrf.mxu1 }
 0x8c0   :  { %9910 = vst [vmem:[#allocation42_spill] sm:$0xff] %v8358_v1  ;;  %9911 = vst [vmem:[#allocation43_spill] sm:$0xff] %v8360_v48 }
 0x8dc   :  { %v2190_v47 = vpop.f32.mrf.mxu0  ;;  %v2261_v59 = vpop.f32.mrf.mxu1 }
 0x8dd   :  { %v2265_v12 = vadd.f32 %v2190_v47, %v1904_v50  ;;  %v2279_v48 = vadd.f32 %v8248_v3, %v2261_v59  ;;  %v2016_v50 = vadd.f32 %v8243_v38, %v8251_v4  ;;  %v9915_v38 = vld [vmem:[#allocation14_spill] sm:$0xff]  ;;  %v9917_v59 = vld [vmem:[#allocation23_spill] sm:$0xff] }
 0x8de   :  { %v6332_v46 = vpop.f32.mrf.mxu1  ;;  %v2192_v53 = vpop.f32.mrf.mxu0 }
 0x8df   :  { %v5539_v55 = vmul.f32 -1.442695, %v2265_v12  ;;  %v2272_v15 = vadd.f32 %v2192_v53, %v1906_v40 }
 0x8e1   :  { %6976 = vpow2.f32 %v5539_v55  ;;  %v5540_v44 = vmul.f32 -1.442695, %v2272_v15  ;;  %v9918_v15 = vld [vmem:[#allocation13_spill] sm:$0xff] }
 0x8e3   :  { %6978 = vpow2.f32 %v5540_v44 }
 0x8ee   :  { %v6977_v43 = vpop.eup %6976 }
 0x8ef   :  { %v2269_v45 = vadd.f32 1.0, %v6977_v43  ;;  %v9919_v43 = vld [vmem:[#allocation21_spill] sm:$0xff] }
 0x8f0   :  { %v6979_v1 = vpop.eup %6978 }
 0x8f1   :  { %6980 = vrcp.f32 %v2269_v45  ;;  %v2276_v34 = vadd.f32 1.0, %v6979_v1  ;;  %v9916_v1 = vld [vmem:[#allocation20_spill] sm:$0xff]  ;;  %v9920_v45 = vld [vmem:[#allocation15_spill] sm:$0xff] }
 0x8f3   :  { %6982 = vrcp.f32 %v2276_v34  ;;  %v9913_v34 = vld [vmem:[#allocation22_spill] sm:$0xff] }
 0x8fe   :  { %v6981_v51 = vpop.eup %6980 }
 0x8ff   :  { %v2280_v46 = vmul.f32 %v6981_v51, %v2279_v48  ;;  %v9914_v48 = vld [vmem:[#allocation18_spill] sm:$0xff] }
 0x900   :  { %v6983_v47 = vpop.eup %6982  ;;  %v9921_v51 = vld [vmem:[#allocation26_spill] sm:$0xff] }
 0x901   :  { %v2281_v12 = vadd.f32 %v2280_v46, %v2016_v50  ;;  %v2283_v55 = vsub.f32 1.0, %v6983_v47  ;;  %v2285_v44 = vmul.f32 %v6983_v47, %v8255_v41  ;;  %v1910_v50 = vadd.f32 %v9921_v51, %v8230_v37 }
 0x903   :  { %6984 = vtanh.f32 %v2281_v12 }
 0x910   :  { %v6985_v52 = vpop.eup %6984 }
 0x911   :  { %v2284_v53 = vmul.f32 %v6985_v52, %v2283_v55 }
 0x913   :  { %v8368_v40 = vadd.f32 %v2285_v44, %v2284_v53  ;;  %v9922_v44 = vld [vmem:[#allocation27_spill] sm:$0xff] }
 0x914   :  { %v1912_v41 = vadd.f32 %v9922_v44, %v8235_v49 }
 0x915   :  { %9912 = vst [vmem:[#allocation44_spill] sm:$0xff] %v8368_v40  ;;  %2401 = vmatmul.mubr.f32.vlgmr.msra.gmra.mxu0 %v8368_v40  ;;  %6366 = vmatmul.mubr.f32.vlgmr.msra.gmra.mxu1 %v8368_v40 }
 0x916   :  { %2549 = vmatpush1.msra.mxu0 %v8066_v5  ;;  %6369 = vmatpush3.msra.mxu1 %v8068_v35 }
 0x917   :  { %2550 = vmatprep.subr.mxu0 %v8071_v23  ;;  %6370 = vmatprep.subr.mxu1 %v9857_v0 }
 0x918   :  { %2551 = vmatpush1.msra.mxu0 %v8075_v32  ;;  %6371 = vmatpush3.msra.mxu1 %v8078_v36 }
 0x919   :  { %2552 = vmatprep.subr.mxu0 %v8081_v54  ;;  %6372 = vmatprep.subr.mxu1 %v9857_v0 }
 0x91a   :  { %2553 = vmatpush1.msra.mxu0 %v8085_v63  ;;  %6373 = vmatpush3.msra.mxu1 %v8088_v39 }
 0x91b   :  { %2554 = vmatprep.subr.mxu0 %v8091_v42  ;;  %6374 = vmatprep.subr.mxu1 %v9857_v0 }
 0x91c   :  { %2555 = vmatpush1.msra.mxu0 %v8095_v56  ;;  %6375 = vmatpush3.msra.mxu1 %v8098_v57 }
 0x91d   :  { %2556 = vmatprep.subr.mxu0 %v8101_v60  ;;  %6376 = vmatprep.subr.mxu1 %v9857_v0 }
 0x91e   :  { %2557 = vmatpush1.msra.mxu0 %v8105_v61  ;;  %6377 = vmatpush3.msra.mxu1 %v8108_v6 }
 0x91f   :  { %2558 = vmatprep.subr.mxu0 %v8111_v7  ;;  %6378 = vmatprep.subr.mxu1 %v9857_v0 }
 0x920   :  { %2559 = vmatpush1.msra.mxu0 %v8115_v8  ;;  %6379 = vmatpush3.msra.mxu1 %v8118_v9 }
 0x921   :  { %2560 = vmatprep.subr.mxu0 %v8121_v10  ;;  %6380 = vmatprep.subr.mxu1 %v9857_v0 }
 0x922   :  { %2561 = vmatpush1.msra.mxu0 %v8125_v11  ;;  %6381 = vmatpush3.msra.mxu1 %v8128_v13 }
 0x923   :  { %2562 = vmatprep.subr.mxu0 %v8131_v14  ;;  %6382 = vmatprep.subr.mxu1 %v9857_v0 }
 0x924   :  { %2563 = vmatpush1.msra.mxu0 %v8135_v16  ;;  %6383 = vmatpush3.msra.mxu1 %v8138_v58 }
 0x925   :  { %2564 = vmatprep.subr.mxu0 %v8141_v62  ;;  %6384 = vmatprep.subr.mxu1 %v9857_v0 }
 0x926   :  { %2565 = vmatpush1.msra.mxu0 %v8145_v18  ;;  %6385 = vmatpush3.msra.mxu1 %v8150_v33 }
 0x927   :  { %2566 = vmatprep.subr.mxu0 %v8148_v24  ;;  %6386 = vmatprep.subr.mxu1 %v9857_v0 }
 0x928   :  { %2567 = vmatpush1.msra.mxu0 %v8154_v25  ;;  %6387 = vmatpush3.msra.mxu1 %v8158_v28 }
 0x929   :  { %2568 = vmatprep.subr.mxu0 %v8156_v26  ;;  %6388 = vmatprep.subr.mxu1 %v9857_v0 }
 0x92a   :  { %2569 = vmatpush1.msra.mxu0 %v8162_v27  ;;  %6389 = vmatpush3.msra.mxu1 %v8164_v30 }
 0x92b   :  { %2570 = vmatprep.subr.mxu0 %v8168_v29  ;;  %6390 = vmatprep.subr.mxu1 %v9857_v0 }
 0x92c   :  { %2571 = vmatpush1.msra.mxu0 %v8172_v31  ;;  %6391 = vmatpush3.msra.mxu1 %v8174_v17 }
 0x92d   :  { %2572 = vmatprep.subr.mxu0 %v8178_v19  ;;  %6392 = vmatprep.subr.mxu1 %v9857_v0 }
 0x92e   :  { %2573 = vmatpush1.msra.mxu0 %v8182_v20  ;;  %6393 = vmatpush3.msra.mxu1 %v8184_v21 }
 0x92f   :  { %2574 = vmatprep.subr.mxu0 %v8188_v22  ;;  %6394 = vmatprep.subr.mxu1 %v9857_v0 }
 0x930   :  { %2575 = vmatpush1.msra.mxu0 %v8192_v2  ;;  %6395 = vmatpush3.msra.mxu1 %v9913_v34 }
 0x931   :  { %2576 = vmatprep.subr.mxu0 %v9914_v48  ;;  %6396 = vmatprep.subr.mxu1 %v9857_v0 }
 0x932   :  { %2577 = vmatpush1.msra.mxu0 %v9915_v38  ;;  %6397 = vmatpush3.msra.mxu1 %v9916_v1 }
 0x933   :  { %2578 = vmatprep.subr.mxu0 %v9917_v59  ;;  %6398 = vmatprep.subr.mxu1 %v9857_v0 }
 0x934   :  { %2579 = vmatpush1.msra.mxu0 %v9918_v15  ;;  %2612 = vmatprep.mubr.f32.mxu0 %v9857_v0 }
 0x935   :  { %6399 = vmatpush3.msra.mxu1 %v9919_v43  ;;  %6400 = vmatprep.mubr.msk.f32.mxu1 %vm7224_vm1, %v9857_v0 }
 0x936   :  { %2760 = vmatprep.subr.mxu0 %v9920_v45  ;;  %6403 = vmatprep.subr.mxu1 %v9857_v0 }
 0x9d5   :  { %v2402_v46 = vpop.f32.mrf.mxu0  ;;  %v2473_v12 = vpop.f32.mrf.mxu1 }
 0x9d6   :  { %v2477_v47 = vadd.f32 %v2402_v46, %v1910_v50  ;;  %v2491_v51 = vadd.f32 %v8248_v3, %v2473_v12  ;;  %v9923_v50 = vld [vmem:[#allocation34_spill] sm:$0xff]  ;;  %v8567_v12 = vld [vmem:[#allocation7 + $0x2b0] sm:$0xff] }
 0x9d7   :  { %v6367_v55 = vpop.f32.mrf.mxu1  ;;  %v2404_v53 = vpop.f32.mrf.mxu0  ;;  %v2021_v46 = vadd.f32 %v9923_v50, %v8251_v4  ;;  %v8581_v50 = vld [vmem:[#allocation7 + $0x278] sm:$0xff] }
 0x9d8   :  { %v5541_v52 = vmul.f32 -1.442695, %v2477_v47  ;;  %v2484_v43 = vadd.f32 %v2404_v53, %v1912_v41  ;;  %v8571_v53 = vld [vmem:[#allocation7 + $0x290] sm:$0xff] }
 0x9da   :  { %6986 = vpow2.f32 %v5541_v52  ;;  %v5542_v15 = vmul.f32 -1.442695, %v2484_v43 }
 0x9dc   :  { %6988 = vpow2.f32 %v5542_v15 }
 0x9e7   :  { %v6987_v59 = vpop.eup %6986 }
 0x9e8   :  { %v2481_v45 = vadd.f32 1.0, %v6987_v59 }
 0x9e9   :  { %v6989_v1 = vpop.eup %6988 }
 0x9ea   :  { %6990 = vrcp.f32 %v2481_v45  ;;  %v2488_v38 = vadd.f32 1.0, %v6989_v1  ;;  %v8565_v1 = vld [vmem:[#allocation7 + $0x2a0] sm:$0xff]  ;;  %v8575_v45 = vld [vmem:[#allocation7 + $0x288] sm:$0xff] }
 0x9ec   :  { %6992 = vrcp.f32 %v2488_v38  ;;  %v8561_v38 = vld [vmem:[#allocation7 + $0x2a8] sm:$0xff] }
 0x9f7   :  { %v6991_v37 = vpop.eup %6990 }
 0x9f8   :  { %v2492_v47 = vmul.f32 %v6991_v37, %v2491_v51  ;;  %v8551_v37 = vld [vmem:[#allocation7 + $0x2c0] sm:$0xff]  ;;  %v8577_v51 = vld [vmem:[#allocation7 + $0x298] sm:$0xff] }
 0x9f9   :  { %v6993_v44 = vpop.eup %6992 }
 0x9fa   :  { %v2493_v55 = vadd.f32 %v2492_v47, %v2021_v46  ;;  %v2495_v52 = vsub.f32 1.0, %v6993_v44  ;;  %v2497_v15 = vmul.f32 %v6993_v44, %v8368_v40  ;;  %v8585_v46 = vld [vmem:[#allocation7 + $0x270] sm:$0xff]  ;;  %v8587_v47 = vld [vmem:[#allocation7 + $0x280] sm:$0xff]  ;;  %v8595_v44 = vld [vmem:[#allocation7 + $0x258] sm:$0xff] }
 0x9fc   :  { %6994 = vtanh.f32 %v2493_v55  ;;  %v8591_v55 = vld [vmem:[#allocation7 + $0x260] sm:$0xff] }
 0xa09   :  { %v6995_v41 = vpop.eup %6994 }
 0xa0a   :  { %v2496_v43 = vmul.f32 %v6995_v41, %v2495_v52  ;;  %v8597_v52 = vld [vmem:[#allocation7 + $0x268] sm:$0xff] }
 0xa0b   :  { %v8601_v41 = vld [vmem:[#allocation7 + $0x248] sm:$0xff] }
 0xa0c   :  { %v8447_v59 = vadd.f32 %v2497_v15, %v2496_v43  ;;  %v8605_v43 = vld [vmem:[#allocation7 + $0x240] sm:$0xff]  ;;  %v8607_v15 = vld [vmem:[#allocation7 + $0x250] sm:$0xff] }
 0xa0e   :  { %9924 = vst [vmem:[#allocation22_spill] sm:$0xff] %v8447_v59  ;;  %2613 = vmatmul.mubr.f32.vlgmr.msra.gmra.mxu0 %v8447_v59  ;;  %6401 = vmatmul.mubr.f32.vlgmr.msra.gmra.mxu1 %v8447_v59 }
 0xa0f   :  { %2761 = vmatpush1.msra.mxu0 %v8066_v5  ;;  %6404 = vmatpush3.msra.mxu1 %v8068_v35  ;;  %v9925_v5 = vld [vmem:[#allocation14_spill] sm:$0xff]  ;;  %v9926_v35 = vld [vmem:[#allocation20_spill] sm:$0xff] }
 0xa10   :  { %2762 = vmatprep.subr.mxu0 %v8071_v23  ;;  %6405 = vmatprep.subr.mxu1 %v9857_v0  ;;  %v9927_v23 = vld [vmem:[#allocation23_spill] sm:$0xff] }
 0xa11   :  { %2763 = vmatpush1.msra.mxu0 %v8075_v32  ;;  %6406 = vmatpush3.msra.mxu1 %v8078_v36  ;;  %v9928_v32 = vld [vmem:[#allocation13_spill] sm:$0xff] }
 0xa12   :  { %2764 = vmatprep.subr.mxu0 %v8081_v54  ;;  %6407 = vmatprep.subr.mxu1 %v9857_v0  ;;  %v9929_v36 = vld [vmem:[#allocation21_spill] sm:$0xff]  ;;  %v9930_v54 = vld [vmem:[#allocation24_spill] sm:$0xff] }
 0xa13   :  { %2765 = vmatpush1.msra.mxu0 %v8085_v63  ;;  %6408 = vmatpush3.msra.mxu1 %v8088_v39  ;;  %v9931_v63 = vld [vmem:[#allocation28_spill] sm:$0xff] }
 0xa14   :  { %2766 = vmatprep.subr.mxu0 %v8091_v42  ;;  %6409 = vmatprep.subr.mxu1 %v9857_v0  ;;  %v1916_v39 = vadd.f32 %v9931_v63, %v9930_v54  ;;  %v8623_v63 = vld [vmem:[#allocation7 + $0x220] sm:$0xff] }
 0xa15   :  { %2767 = vmatpush1.msra.mxu0 %v8095_v56  ;;  %6410 = vmatpush3.msra.mxu1 %v8098_v57 }
 0xa16   :  { %2768 = vmatprep.subr.mxu0 %v8101_v60  ;;  %6411 = vmatprep.subr.mxu1 %v9857_v0 }
 0xa17   :  { %2769 = vmatpush1.msra.mxu0 %v8105_v61  ;;  %6412 = vmatpush3.msra.mxu1 %v8108_v6 }
 0xa18   :  { %2770 = vmatprep.subr.mxu0 %v8111_v7  ;;  %6413 = vmatprep.subr.mxu1 %v9857_v0  ;;  %v9932_v7 = vld [vmem:[#allocation29_spill] sm:$0xff] }
 0xa19   :  { %2771 = vmatpush1.msra.mxu0 %v8115_v8  ;;  %6414 = vmatpush3.msra.mxu1 %v8118_v9  ;;  %v1918_v8 = vadd.f32 %v9932_v7, %v8235_v49  ;;  %v8651_v7 = vld [vmem:[#allocation7 + $0x1c8] sm:$0xff] }
 0xa1a   :  { %2772 = vmatprep.subr.mxu0 %v8121_v10  ;;  %6415 = vmatprep.subr.mxu1 %v9857_v0 }
 0xa1b   :  { %2773 = vmatpush1.msra.mxu0 %v8125_v11  ;;  %6416 = vmatpush3.msra.mxu1 %v8128_v13 }
 0xa1c   :  { %2774 = vmatprep.subr.mxu0 %v8131_v14  ;;  %6417 = vmatprep.subr.mxu1 %v9857_v0 }
 0xa1d   :  { %2775 = vmatpush1.msra.mxu0 %v8135_v16  ;;  %6418 = vmatpush3.msra.mxu1 %v8138_v58 }
 0xa1e   :  { %2776 = vmatprep.subr.mxu0 %v8141_v62  ;;  %6419 = vmatprep.subr.mxu1 %v9857_v0 }
 0xa1f   :  { %2777 = vmatpush1.msra.mxu0 %v8145_v18  ;;  %6420 = vmatpush3.msra.mxu1 %v8150_v33  ;;  %v9933_v18 = vld [vmem:[#allocation32_spill] sm:$0xff] }
 0xa20   :  { %2778 = vmatprep.subr.mxu0 %v8148_v24  ;;  %6421 = vmatprep.subr.mxu1 %v9857_v0  ;;  %v2026_v24 = vadd.f32 %v9933_v18, %v8251_v4  ;;  %v8683_v18 = vld [vmem:[#allocation7 + $0x190] sm:$0xff] }
 0xa21   :  { %2779 = vmatpush1.msra.mxu0 %v8154_v25  ;;  %6422 = vmatpush3.msra.mxu1 %v8158_v28  ;;  %9940 = vst [vmem:[#allocation20_spill] sm:$0xff] %v8683_v18 }
 0xa22   :  { %2780 = vmatprep.subr.mxu0 %v8156_v26  ;;  %6423 = vmatprep.subr.mxu1 %v9857_v0 }
 0xa23   :  { %2781 = vmatpush1.msra.mxu0 %v8162_v27  ;;  %6424 = vmatpush3.msra.mxu1 %v8164_v30 }
 0xa24   :  { %2782 = vmatprep.subr.mxu0 %v8168_v29  ;;  %6425 = vmatprep.subr.mxu1 %v9857_v0 }
 0xa25   :  { %2783 = vmatpush1.msra.mxu0 %v8172_v31  ;;  %6426 = vmatpush3.msra.mxu1 %v8174_v17  ;;  %v8532_v17 = vld [vmem:[#allocation7 + $0x2f0] sm:$0xff] }
 0xa26   :  { %2784 = vmatprep.subr.mxu0 %v8178_v19  ;;  %6427 = vmatprep.subr.mxu1 %v9857_v0  ;;  %9935 = vst [vmem:[#allocation15_spill] sm:$0xff] %v8532_v17  ;;  %v8535_v19 = vld [vmem:[#allocation7 + $0x2e8] sm:$0xff] }
 0xa27   :  { %2785 = vmatpush1.msra.mxu0 %v8182_v20  ;;  %6428 = vmatpush3.msra.mxu1 %v8184_v21  ;;  %v8537_v20 = vld [vmem:[#allocation7 + $0x2f8] sm:$0xff] }
 0xa28   :  { %2786 = vmatprep.subr.mxu0 %v8188_v22  ;;  %6429 = vmatprep.subr.mxu1 %v9857_v0  ;;  %v8541_v21 = vld [vmem:[#allocation7 + $0x2d8] sm:$0xff]  ;;  %v8545_v22 = vld [vmem:[#allocation7 + $0x2d0] sm:$0xff] }
 0xa29   :  { %2787 = vmatpush1.msra.mxu0 %v8192_v2  ;;  %6430 = vmatpush3.msra.mxu1 %v9913_v34  ;;  %v8547_v2 = vld [vmem:[#allocation7 + $0x2e0] sm:$0xff]  ;;  %v8555_v34 = vld [vmem:[#allocation7 + $0x2b8] sm:$0xff] }
 0xa2a   :  { %2788 = vmatprep.subr.mxu0 %v9914_v48  ;;  %6431 = vmatprep.subr.mxu1 %v9857_v0  ;;  %v8557_v48 = vld [vmem:[#allocation7 + $0x2c8] sm:$0xff] }
 0xa2b   :  { %2789 = vmatpush1.msra.mxu0 %v9925_v5  ;;  %6432 = vmatpush3.msra.mxu1 %v9926_v35  ;;  %v8609_v5 = vld [vmem:[#allocation7 + $0x230] sm:$0xff]  ;;  %v8613_v35 = vld [vmem:[#allocation7 + $0x228] sm:$0xff] }
 0xa2c   :  { %2790 = vmatprep.subr.mxu0 %v9927_v23  ;;  %6433 = vmatprep.subr.mxu1 %v9857_v0  ;;  %v8615_v23 = vld [vmem:[#allocation7 + $0x238] sm:$0xff] }
 0xa2d   :  { %2791 = vmatpush1.msra.mxu0 %v9928_v32  ;;  %2824 = vmatprep.mubr.f32.mxu0 %v9857_v0  ;;  %v8617_v32 = vld [vmem:[#allocation7 + $0x218] sm:$0xff] }
 0xa2e   :  { %6434 = vmatpush3.msra.mxu1 %v9929_v36  ;;  %6435 = vmatprep.mubr.msk.f32.mxu1 %vm7224_vm1, %v9857_v0  ;;  %v8621_v36 = vld [vmem:[#allocation7 + $0x210] sm:$0xff] }
 0xa2f   :  { %6438 = vmatprep.subr.mxu1 %v9857_v0  ;;  %2972 = vmatprep.subr.mxu0 %v8532_v17 }
 0xace   :  { %v2614_v42 = vpop.f32.mrf.mxu0  ;;  %v2685_v56 = vpop.f32.mrf.mxu1 }
 0xacf   :  { %v2689_v57 = vadd.f32 %v2614_v42, %v1916_v39  ;;  %v2703_v58 = vadd.f32 %v8248_v3, %v2685_v56  ;;  %v8627_v39 = vld [vmem:[#allocation7 + $0x200] sm:$0xff]  ;;  %v8631_v42 = vld [vmem:[#allocation7 + $0x1f8] sm:$0xff]  ;;  %v8633_v56 = vld [vmem:[#allocation7 + $0x208] sm:$0xff] }
 0xad0   :  { %v6402_v60 = vpop.f32.mrf.mxu1  ;;  %v2616_v6 = vpop.f32.mrf.mxu0 }
 0xad1   :  { %v5543_v61 = vmul.f32 -1.442695, %v2689_v57  ;;  %v2696_v9 = vadd.f32 %v2616_v6, %v1918_v8  ;;  %v8637_v57 = vld [vmem:[#allocation7 + $0x1e8] sm:$0xff]  ;;  %v8641_v60 = vld [vmem:[#allocation7 + $0x1e0] sm:$0xff]  ;;  %v8647_v6 = vld [vmem:[#allocation7 + $0x1d0] sm:$0xff] }
 0xad2   :  { %v8653_v8 = vld [vmem:[#allocation7 + $0x1d8] sm:$0xff] }
 0xad3   :  { %6996 = vpow2.f32 %v5543_v61  ;;  %v5544_v10 = vmul.f32 -1.442695, %v2696_v9  ;;  %v8643_v61 = vld [vmem:[#allocation7 + $0x1f0] sm:$0xff]  ;;  %v8657_v9 = vld [vmem:[#allocation7 + $0x1b8] sm:$0xff] }
 0xad5   :  { %6998 = vpow2.f32 %v5544_v10  ;;  %v8661_v10 = vld [vmem:[#allocation7 + $0x1b0] sm:$0xff] }
 0xae0   :  { %v6997_v11 = vpop.eup %6996 }
 0xae1   :  { %v2693_v13 = vadd.f32 1.0, %v6997_v11  ;;  %v8663_v11 = vld [vmem:[#allocation7 + $0x1c0] sm:$0xff] }
 0xae2   :  { %v6999_v14 = vpop.eup %6998 }
 0xae3   :  { %7000 = vrcp.f32 %v2693_v13  ;;  %v2700_v16 = vadd.f32 1.0, %v6999_v14  ;;  %v8667_v13 = vld [vmem:[#allocation7 + $0x1a0] sm:$0xff]  ;;  %v8671_v14 = vld [vmem:[#allocation7 + $0x198] sm:$0xff] }
 0xae4   :  { %9936 = vst [vmem:[#allocation26_spill] sm:$0xff] %v8671_v14 }
 0xae5   :  { %7002 = vrcp.f32 %v2700_v16  ;;  %v8673_v16 = vld [vmem:[#allocation7 + $0x1a8] sm:$0xff] }
 0xae6   :  { %9937 = vst [vmem:[#allocation27_spill] sm:$0xff] %v8673_v16 }
 0xaf0   :  { %v7001_v62 = vpop.eup %7000 }
 0xaf1   :  { %v2704_v33 = vmul.f32 %v7001_v62, %v2703_v58  ;;  %v8677_v58 = vld [vmem:[#allocation7 + $0x188] sm:$0xff]  ;;  %v8681_v62 = vld [vmem:[#allocation7 + $0x180] sm:$0xff] }
 0xaf2   :  { %v7003_v26 = vpop.eup %7002  ;;  %9938 = vst [vmem:[#allocation34_spill] sm:$0xff] %v8677_v58  ;;  %9939 = vst [vmem:[#allocation14_spill] sm:$0xff] %v8681_v62 }
 0xaf3   :  { %v2705_v25 = vadd.f32 %v2704_v33, %v2026_v24  ;;  %v2707_v28 = vsub.f32 1.0, %v7003_v26  ;;  %v2709_v29 = vmul.f32 %v7003_v26, %v8447_v59  ;;  %v9941_v24 = vld [vmem:[#allocation30_spill] sm:$0xff]  ;;  %v9942_v59 = vld [vmem:[#allocation31_spill] sm:$0xff] }
 0xaf4   :  { %v1922_v33 = vadd.f32 %v9941_v24, %v9930_v54  ;;  %v1924_v40 = vadd.f32 %v9942_v59, %v8235_v49 }
 0xaf5   :  { %7004 = vtanh.f32 %v2705_v25 }
 0xb02   :  { %v7005_v27 = vpop.eup %7004 }
 0xb03   :  { %v2708_v30 = vmul.f32 %v7005_v27, %v2707_v28 }
 0xb05   :  { %v8525_v31 = vadd.f32 %v2709_v29, %v2708_v30 }
 0xb07   :  { %9934 = vst [vmem:[#allocation18_spill] sm:$0xff] %v8525_v31  ;;  %2825 = vmatmul.mubr.f32.vlgmr.msra.gmra.mxu0 %v8525_v31  ;;  %6436 = vmatmul.mubr.f32.vlgmr.msra.gmra.mxu1 %v8525_v31 }
 0xb08   :  { %3036 = vmatprep.mubr.f32.mxu0 %v9857_v0  ;;  %6470 = vmatprep.mubr.msk.f32.mxu1 %vm7224_vm1, %v9857_v0 }
 0xb09   :  { %2973 = vmatpush1.msra.mxu0 %v8535_v19  ;;  %6439 = vmatpush3.msra.mxu1 %v8537_v20 }
 0xb0a   :  { %2974 = vmatprep.subr.mxu0 %v8541_v21  ;;  %6440 = vmatprep.subr.mxu1 %v9857_v0 }
 0xb0b   :  { %2975 = vmatpush1.msra.mxu0 %v8545_v22  ;;  %6441 = vmatpush3.msra.mxu1 %v8547_v2 }
 0xb0c   :  { %2976 = vmatprep.subr.mxu0 %v8551_v37  ;;  %6442 = vmatprep.subr.mxu1 %v9857_v0 }
 0xb0d   :  { %2977 = vmatpush1.msra.mxu0 %v8555_v34  ;;  %6443 = vmatpush3.msra.mxu1 %v8557_v48 }
 0xb0e   :  { %2978 = vmatprep.subr.mxu0 %v8561_v38  ;;  %6444 = vmatprep.subr.mxu1 %v9857_v0 }
 0xb0f   :  { %2979 = vmatpush1.msra.mxu0 %v8565_v1  ;;  %6445 = vmatpush3.msra.mxu1 %v8567_v12 }
 0xb10   :  { %2980 = vmatprep.subr.mxu0 %v8571_v53  ;;  %6446 = vmatprep.subr.mxu1 %v9857_v0 }
 0xb11   :  { %2981 = vmatpush1.msra.mxu0 %v8575_v45  ;;  %6447 = vmatpush3.msra.mxu1 %v8577_v51 }
 0xb12   :  { %2982 = vmatprep.subr.mxu0 %v8581_v50  ;;  %6448 = vmatprep.subr.mxu1 %v9857_v0 }
 0xb13   :  { %2983 = vmatpush1.msra.mxu0 %v8585_v46  ;;  %6449 = vmatpush3.msra.mxu1 %v8587_v47 }
 0xb14   :  { %2984 = vmatprep.subr.mxu0 %v8591_v55  ;;  %6450 = vmatprep.subr.mxu1 %v9857_v0 }
 0xb15   :  { %2985 = vmatpush1.msra.mxu0 %v8595_v44  ;;  %6451 = vmatpush3.msra.mxu1 %v8597_v52 }
 0xb16   :  { %2986 = vmatprep.subr.mxu0 %v8601_v41  ;;  %6452 = vmatprep.subr.mxu1 %v9857_v0 }
 0xb17   :  { %2987 = vmatpush1.msra.mxu0 %v8605_v43  ;;  %6453 = vmatpush3.msra.mxu1 %v8607_v15 }
 0xb18   :  { %2988 = vmatprep.subr.mxu0 %v8609_v5  ;;  %6454 = vmatprep.subr.mxu1 %v9857_v0 }
 0xb19   :  { %2989 = vmatpush1.msra.mxu0 %v8613_v35  ;;  %6455 = vmatpush3.msra.mxu1 %v8615_v23 }
 0xb1a   :  { %2990 = vmatprep.subr.mxu0 %v8617_v32  ;;  %6456 = vmatprep.subr.mxu1 %v9857_v0 }
 0xb1b   :  { %2991 = vmatpush1.msra.mxu0 %v8621_v36  ;;  %6457 = vmatpush3.msra.mxu1 %v8623_v63 }
 0xb1c   :  { %2992 = vmatprep.subr.mxu0 %v8627_v39  ;;  %6458 = vmatprep.subr.mxu1 %v9857_v0 }
 0xb1d   :  { %2993 = vmatpush1.msra.mxu0 %v8631_v42  ;;  %6459 = vmatpush3.msra.mxu1 %v8633_v56 }
 0xb1e   :  { %2994 = vmatprep.subr.mxu0 %v8637_v57  ;;  %6460 = vmatprep.subr.mxu1 %v9857_v0 }
 0xb1f   :  { %2995 = vmatpush1.msra.mxu0 %v8641_v60  ;;  %6461 = vmatpush3.msra.mxu1 %v8643_v61 }
 0xb20   :  { %2996 = vmatprep.subr.mxu0 %v8647_v6  ;;  %6462 = vmatprep.subr.mxu1 %v9857_v0 }
 0xb21   :  { %2997 = vmatpush1.msra.mxu0 %v8651_v7  ;;  %6463 = vmatpush3.msra.mxu1 %v8653_v8 }
 0xb22   :  { %2998 = vmatprep.subr.mxu0 %v8657_v9  ;;  %6464 = vmatprep.subr.mxu1 %v9857_v0 }
 0xb23   :  { %2999 = vmatpush1.msra.mxu0 %v8661_v10  ;;  %6465 = vmatpush3.msra.mxu1 %v8663_v11 }
 0xb24   :  { %3000 = vmatprep.subr.mxu0 %v8667_v13  ;;  %6466 = vmatprep.subr.mxu1 %v9857_v0 }
 0xb25   :  { %3001 = vmatpush1.msra.mxu0 %v8671_v14  ;;  %6467 = vmatpush3.msra.mxu1 %v8673_v16 }
 0xb26   :  { %3002 = vmatprep.subr.mxu0 %v8677_v58  ;;  %6468 = vmatprep.subr.mxu1 %v9857_v0 }
 0xb27   :  { %3003 = vmatpush1.msra.mxu0 %v8681_v62  ;;  %6469 = vmatpush3.msra.mxu1 %v8683_v18 }
 0xb28   :  { %3184 = vmatprep.subr.mxu0 %v8532_v17  ;;  %6473 = vmatprep.subr.mxu1 %v9857_v0 }
 0xbc7   :  { %v2826_v25 = vpop.f32.mrf.mxu0  ;;  %v2897_v26 = vpop.f32.mrf.mxu1 }
 0xbc8   :  { %v2901_v28 = vadd.f32 %v2826_v25, %v1922_v33  ;;  %v2915_v24 = vadd.f32 %v8248_v3, %v2897_v26  ;;  %v9943_v33 = vld [vmem:[#allocation38_spill] sm:$0xff]  ;;  %v9949_v26 = vld [vmem:[#allocation15_spill] sm:$0xff] }
 0xbc9   :  { %v6437_v27 = vpop.f32.mrf.mxu1  ;;  %v2828_v29 = vpop.f32.mrf.mxu0  ;;  %v2031_v25 = vadd.f32 %v9943_v33, %v8251_v4  ;;  %v9944_v3 = vld [vmem:[#allocation26_spill] sm:$0xff] }
 0xbca   :  { %v5545_v30 = vmul.f32 -1.442695, %v2901_v28  ;;  %v2908_v62 = vadd.f32 %v2828_v29, %v1924_v40  ;;  %v9950_v29 = vld [vmem:[#allocation24_spill] sm:$0xff] }
 0xbcc   :  { %7006 = vpow2.f32 %v5545_v30  ;;  %v5546_v58 = vmul.f32 -1.442695, %v2908_v62 }
 0xbce   :  { %7008 = vpow2.f32 %v5546_v58 }
 0xbd9   :  { %v7007_v18 = vpop.eup %7006 }
 0xbda   :  { %v2905_v17 = vadd.f32 1.0, %v7007_v18 }
 0xbdb   :  { %v7009_v16 = vpop.eup %7008 }
 0xbdc   :  { %7010 = vrcp.f32 %v2905_v17  ;;  %v2912_v14 = vadd.f32 1.0, %v7009_v16  ;;  %v9946_v17 = vld [vmem:[#allocation34_spill] sm:$0xff]  ;;  %v9948_v16 = vld [vmem:[#allocation20_spill] sm:$0xff] }
 0xbde   :  { %7012 = vrcp.f32 %v2912_v14  ;;  %v9947_v14 = vld [vmem:[#allocation14_spill] sm:$0xff] }
 0xbe9   :  { %v7011_v54 = vpop.eup %7010 }
 0xbea   :  { %v2916_v28 = vmul.f32 %v7011_v54, %v2915_v24  ;;  %v9945_v54 = vld [vmem:[#allocation27_spill] sm:$0xff]  ;;  %v9951_v24 = vld [vmem:[#allocation33_spill] sm:$0xff] }
 0xbeb   :  { %v7013_v59 = vpop.eup %7012  ;;  %v1928_v33 = vadd.f32 %v9951_v24, %v9950_v29  ;;  %v8779_v24 = vld [vmem:[%s9742_s5 + $0x1] ss:$0 sm:$0xff] }
 0xbec   :  { %v2917_v27 = vadd.f32 %v2916_v28, %v2031_v25  ;;  %v2919_v30 = vsub.f32 1.0, %v7013_v59  ;;  %v2921_v58 = vmul.f32 %v7013_v59, %v8525_v31 }
 0xbee   :  { %7014 = vtanh.f32 %v2917_v27 }
 0xbfb   :  { %v7015_v40 = vpop.eup %7014 }
 0xbfc   :  { %v2920_v62 = vmul.f32 %v7015_v40, %v2919_v30 }
 0xbfe   :  { %v8701_v18 = vadd.f32 %v2921_v58, %v2920_v62  ;;  %v9952_v62 = vld [vmem:[#allocation35_spill] sm:$0xff] }
 0xbff   :  { %v1930_v58 = vadd.f32 %v9952_v62, %v8235_v49 }
 0xc00   :  { %3037 = vmatmul.mubr.f32.vlgmr.msra.gmra.mxu0 %v8701_v18  ;;  %6471 = vmatmul.mubr.f32.vlgmr.msra.gmra.mxu1 %v8701_v18 }
 0xc01   :  { %3185 = vmatpush1.msra.mxu0 %v8535_v19  ;;  %6474 = vmatpush3.msra.mxu1 %v8537_v20 }
 0xc02   :  { %3186 = vmatprep.subr.mxu0 %v8541_v21  ;;  %6475 = vmatprep.subr.mxu1 %v9857_v0 }
 0xc03   :  { %3187 = vmatpush1.msra.mxu0 %v8545_v22  ;;  %6476 = vmatpush3.msra.mxu1 %v8547_v2 }
 0xc04   :  { %3188 = vmatprep.subr.mxu0 %v8551_v37  ;;  %6477 = vmatprep.subr.mxu1 %v9857_v0 }
 0xc05   :  { %3189 = vmatpush1.msra.mxu0 %v8555_v34  ;;  %6478 = vmatpush3.msra.mxu1 %v8557_v48 }
 0xc06   :  { %3190 = vmatprep.subr.mxu0 %v8561_v38  ;;  %6479 = vmatprep.subr.mxu1 %v9857_v0 }
 0xc07   :  { %3191 = vmatpush1.msra.mxu0 %v8565_v1  ;;  %6480 = vmatpush3.msra.mxu1 %v8567_v12 }
 0xc08   :  { %3192 = vmatprep.subr.mxu0 %v8571_v53  ;;  %6481 = vmatprep.subr.mxu1 %v9857_v0 }
 0xc09   :  { %3193 = vmatpush1.msra.mxu0 %v8575_v45  ;;  %6482 = vmatpush3.msra.mxu1 %v8577_v51 }
 0xc0a   :  { %3194 = vmatprep.subr.mxu0 %v8581_v50  ;;  %6483 = vmatprep.subr.mxu1 %v9857_v0 }
 0xc0b   :  { %3195 = vmatpush1.msra.mxu0 %v8585_v46  ;;  %6484 = vmatpush3.msra.mxu1 %v8587_v47 }
 0xc0c   :  { %3196 = vmatprep.subr.mxu0 %v8591_v55  ;;  %6485 = vmatprep.subr.mxu1 %v9857_v0 }
 0xc0d   :  { %3197 = vmatpush1.msra.mxu0 %v8595_v44  ;;  %6486 = vmatpush3.msra.mxu1 %v8597_v52 }
 0xc0e   :  { %3198 = vmatprep.subr.mxu0 %v8601_v41  ;;  %6487 = vmatprep.subr.mxu1 %v9857_v0 }
 0xc0f   :  { %3199 = vmatpush1.msra.mxu0 %v8605_v43  ;;  %6488 = vmatpush3.msra.mxu1 %v8607_v15 }
 0xc10   :  { %3200 = vmatprep.subr.mxu0 %v8609_v5  ;;  %6489 = vmatprep.subr.mxu1 %v9857_v0 }
 0xc11   :  { %3201 = vmatpush1.msra.mxu0 %v8613_v35  ;;  %6490 = vmatpush3.msra.mxu1 %v8615_v23 }
 0xc12   :  { %3202 = vmatprep.subr.mxu0 %v8617_v32  ;;  %6491 = vmatprep.subr.mxu1 %v9857_v0 }
 0xc13   :  { %3203 = vmatpush1.msra.mxu0 %v8621_v36  ;;  %6492 = vmatpush3.msra.mxu1 %v8623_v63 }
 0xc14   :  { %3204 = vmatprep.subr.mxu0 %v8627_v39  ;;  %6493 = vmatprep.subr.mxu1 %v9857_v0 }
 0xc15   :  { %3205 = vmatpush1.msra.mxu0 %v8631_v42  ;;  %6494 = vmatpush3.msra.mxu1 %v8633_v56 }
 0xc16   :  { %3206 = vmatprep.subr.mxu0 %v8637_v57  ;;  %6495 = vmatprep.subr.mxu1 %v9857_v0 }
 0xc17   :  { %3207 = vmatpush1.msra.mxu0 %v8641_v60  ;;  %6496 = vmatpush3.msra.mxu1 %v8643_v61 }
 0xc18   :  { %3208 = vmatprep.subr.mxu0 %v8647_v6  ;;  %6497 = vmatprep.subr.mxu1 %v9857_v0 }
 0xc19   :  { %3209 = vmatpush1.msra.mxu0 %v8651_v7  ;;  %6498 = vmatpush3.msra.mxu1 %v8653_v8 }
 0xc1a   :  { %3210 = vmatprep.subr.mxu0 %v8657_v9  ;;  %6499 = vmatprep.subr.mxu1 %v9857_v0 }
 0xc1b   :  { %3211 = vmatpush1.msra.mxu0 %v8661_v10  ;;  %6500 = vmatpush3.msra.mxu1 %v8663_v11 }
 0xc1c   :  { %3212 = vmatprep.subr.mxu0 %v8667_v13  ;;  %6501 = vmatprep.subr.mxu1 %v9857_v0 }
 0xc1d   :  { %3213 = vmatpush1.msra.mxu0 %v9944_v3  ;;  %6502 = vmatpush3.msra.mxu1 %v9945_v54 }
 0xc1e   :  { %3214 = vmatprep.subr.mxu0 %v9946_v17  ;;  %6503 = vmatprep.subr.mxu1 %v9857_v0 }
 0xc1f   :  { %3215 = vmatpush1.msra.mxu0 %v9947_v14  ;;  %3248 = vmatprep.mubr.f32.mxu0 %v9857_v0 }
 0xc20   :  { %6504 = vmatpush3.msra.mxu1 %v9948_v16  ;;  %6505 = vmatprep.mubr.msk.f32.mxu1 %vm7224_vm1, %v9857_v0 }
 0xc21   :  { %3396 = vmatprep.subr.mxu0 %v9949_v26  ;;  %6508 = vmatprep.subr.mxu1 %v9857_v0 }
 0xcc0   :  { %v3038_v25 = vpop.f32.mrf.mxu0  ;;  %v3109_v28 = vpop.f32.mrf.mxu1 }
 0xcc1   :  { %v3113_v27 = vadd.f32 %v3038_v25, %v1928_v33  ;;  %v3127_v33 = vadd.f32 %v8779_v24, %v3109_v28  ;;  %v3605_v28 = vld [vmem:[#allocation5 + $0x2a0] sm:$0xff] }
 0xcc2   :  { %v6472_v59 = vpop.f32.mrf.mxu1  ;;  %v3040_v40 = vpop.f32.mrf.mxu0 }
 0xcc3   :  { %v5547_v30 = vmul.f32 -1.442695, %v3113_v27  ;;  %v3120_v31 = vadd.f32 %v3040_v40, %v1930_v58  ;;  %v9953_v27 = vld [vmem:[#allocation36_spill] sm:$0xff] }
 0xcc4   :  { %v2036_v59 = vadd.f32 %v9953_v27, %v8251_v4  ;;  %v3600_v27 = vld [vmem:[#allocation5 + $0x278] sm:$0xff] }
 0xcc5   :  { %7016 = vpow2.f32 %v5547_v30  ;;  %v5548_v16 = vmul.f32 -1.442695, %v3120_v31 }
 0xcc7   :  { %7018 = vpow2.f32 %v5548_v16 }
 0xcd2   :  { %v7017_v14 = vpop.eup %7016 }
 0xcd3   :  { %v3117_v26 = vadd.f32 1.0, %v7017_v14 }
 0xcd4   :  { %v7019_v17 = vpop.eup %7018 }
 0xcd5   :  { %7020 = vrcp.f32 %v3117_v26  ;;  %v3124_v54 = vadd.f32 1.0, %v7019_v17  ;;  %v3603_v26 = vld [vmem:[#allocation5 + $0x290] sm:$0xff] }
 0xcd7   :  { %7022 = vrcp.f32 %v3124_v54  ;;  %v3607_v54 = vld [vmem:[#allocation5 + $0x2b0] sm:$0xff] }
 0xce2   :  { %v7021_v25 = vpop.eup %7020 }
 0xce3   :  { %v3128_v30 = vmul.f32 %v7021_v25, %v3127_v33  ;;  %v3604_v33 = vld [vmem:[#allocation5 + $0x298] sm:$0xff]  ;;  %v3602_v25 = vld [vmem:[#allocation5 + $0x288] sm:$0xff] }
 0xce4   :  { %v7023_v16 = vpop.eup %7022 }
 0xce5   :  { %v3129_v31 = vadd.f32 %v3128_v30, %v2036_v59  ;;  %v3131_v14 = vsub.f32 1.0, %v7023_v16  ;;  %v3133_v17 = vmul.f32 %v7023_v16, %v8701_v18  ;;  %v3601_v59 = vld [vmem:[#allocation5 + $0x280] sm:$0xff]  ;;  %v3599_v30 = vld [vmem:[#allocation5 + $0x270] sm:$0xff]  ;;  %v3598_v16 = vld [vmem:[#allocation5 + $0x268] sm:$0xff] }
 0xce7   :  { %7024 = vtanh.f32 %v3129_v31  ;;  %v3597_v31 = vld [vmem:[#allocation5 + $0x260] sm:$0xff] }
 0xcf4   :  { %v7025_v40 = vpop.eup %7024 }
 0xcf5   :  { %v3132_v62 = vmul.f32 %v7025_v40, %v3131_v14  ;;  %v3596_v14 = vld [vmem:[#allocation5 + $0x258] sm:$0xff]  ;;  %v3594_v40 = vld [vmem:[#allocation5 + $0x248] sm:$0xff] }
 0xcf7   :  { %v8785_v58 = vadd.f32 %v3133_v17, %v3132_v62  ;;  %v3595_v62 = vld [vmem:[#allocation5 + $0x250] sm:$0xff]  ;;  %v3593_v17 = vld [vmem:[#allocation5 + $0x240] sm:$0xff] }
 0xcf9   :  { %3249 = vmatmul.mubr.f32.vlgmr.msra.gmra.mxu0 %v8785_v58  ;;  %6506 = vmatmul.mubr.f32.vlgmr.msra.gmra.mxu1 %v8785_v58 }
 0xcfa   :  { %3397 = vmatpush1.msra.mxu0 %v8535_v19  ;;  %6509 = vmatpush3.msra.mxu1 %v8537_v20  ;;  %v9954_v19 = vld [vmem:[#allocation27_spill] sm:$0xff]  ;;  %v9955_v20 = vld [vmem:[#allocation34_spill] sm:$0xff] }
 0xcfb   :  { %3398 = vmatprep.subr.mxu0 %v8541_v21  ;;  %6510 = vmatprep.subr.mxu1 %v9857_v0  ;;  %v9956_v21 = vld [vmem:[#allocation14_spill] sm:$0xff] }
 0xcfc   :  { %3399 = vmatpush1.msra.mxu0 %v8545_v22  ;;  %6511 = vmatpush3.msra.mxu1 %v8547_v2  ;;  %v9957_v22 = vld [vmem:[#allocation20_spill] sm:$0xff]  ;;  %v3615_v2 = vld [vmem:[#allocation5 + $0x2f0] sm:$0xff] }
 0xcfd   :  { %3400 = vmatprep.subr.mxu0 %v8551_v37  ;;  %6512 = vmatprep.subr.mxu1 %v9857_v0  ;;  %v3616_v37 = vld [vmem:[#allocation5 + $0x2f8] sm:$0xff] }
 0xcfe   :  { %3401 = vmatpush1.msra.mxu0 %v8555_v34  ;;  %6513 = vmatpush3.msra.mxu1 %v8557_v48  ;;  %v9958_v34 = vld [vmem:[#allocation37_spill] sm:$0xff] }
 0xcff   :  { %3402 = vmatprep.subr.mxu0 %v8561_v38  ;;  %6514 = vmatprep.subr.mxu1 %v9857_v0  ;;  %v1934_v48 = vadd.f32 %v9958_v34, %v9950_v29  ;;  %v3585_v34 = vld [vmem:[#allocation5 + $0x200] sm:$0xff] }
 0xd00   :  { %3403 = vmatpush1.msra.mxu0 %v8565_v1  ;;  %6515 = vmatpush3.msra.mxu1 %v8567_v12 }
 0xd01   :  { %3404 = vmatprep.subr.mxu0 %v8571_v53  ;;  %6516 = vmatprep.subr.mxu1 %v9857_v0 }
 0xd02   :  { %3405 = vmatpush1.msra.mxu0 %v8575_v45  ;;  %6517 = vmatpush3.msra.mxu1 %v8577_v51 }
 0xd03   :  { %3406 = vmatprep.subr.mxu0 %v8581_v50  ;;  %6518 = vmatprep.subr.mxu1 %v9857_v0  ;;  %v9959_v50 = vld [vmem:[#allocation39_spill] sm:$0xff] }
 0xd04   :  { %3407 = vmatpush1.msra.mxu0 %v8585_v46  ;;  %6519 = vmatpush3.msra.mxu1 %v8587_v47  ;;  %v1936_v46 = vadd.f32 %v9959_v50, %v8235_v49  ;;  %v3578_v50 = vld [vmem:[#allocation5 + $0x1c8] sm:$0xff] }
 0xd05   :  { %3408 = vmatprep.subr.mxu0 %v8591_v55  ;;  %6520 = vmatprep.subr.mxu1 %v9857_v0 }
 0xd06   :  { %3409 = vmatpush1.msra.mxu0 %v8595_v44  ;;  %6521 = vmatpush3.msra.mxu1 %v8597_v52 }
 0xd07   :  { %3410 = vmatprep.subr.mxu0 %v8601_v41  ;;  %6522 = vmatprep.subr.mxu1 %v9857_v0 }
 0xd08   :  { %3411 = vmatpush1.msra.mxu0 %v8605_v43  ;;  %6523 = vmatpush3.msra.mxu1 %v8607_v15 }
 0xd09   :  { %3412 = vmatprep.subr.mxu0 %v8609_v5  ;;  %6524 = vmatprep.subr.mxu1 %v9857_v0 }
 0xd0a   :  { %3413 = vmatpush1.msra.mxu0 %v8613_v35  ;;  %6525 = vmatpush3.msra.mxu1 %v8615_v23  ;;  %v9960_v35 = vld [vmem:[#allocation43_spill] sm:$0xff] }
 0xd0b   :  { %3414 = vmatprep.subr.mxu0 %v8617_v32  ;;  %6526 = vmatprep.subr.mxu1 %v9857_v0  ;;  %v2041_v23 = vadd.f32 %v9960_v35, %v8251_v4  ;;  %v9962_v35 = vld [vmem:[#allocation44_spill] sm:$0xff] }
 0xd0c   :  { %3415 = vmatpush1.msra.mxu0 %v8621_v36  ;;  %6527 = vmatpush3.msra.mxu1 %v8623_v63 }
 0xd0d   :  { %3416 = vmatprep.subr.mxu0 %v8627_v39  ;;  %6528 = vmatprep.subr.mxu1 %v9857_v0 }
 0xd0e   :  { %3417 = vmatpush1.msra.mxu0 %v8631_v42  ;;  %6529 = vmatpush3.msra.mxu1 %v8633_v56 }
 0xd0f   :  { %3418 = vmatprep.subr.mxu0 %v8637_v57  ;;  %6530 = vmatprep.subr.mxu1 %v9857_v0 }
 0xd10   :  { %3419 = vmatpush1.msra.mxu0 %v8641_v60  ;;  %6531 = vmatpush3.msra.mxu1 %v8643_v61  ;;  %v3614_v61 = vld [vmem:[#allocation5 + $0x2e8] sm:$0xff] }
 0xd11   :  { %3420 = vmatprep.subr.mxu0 %v8647_v6  ;;  %6532 = vmatprep.subr.mxu1 %v9857_v0  ;;  %v3612_v6 = vld [vmem:[#allocation5 + $0x2d8] sm:$0xff] }
 0xd12   :  { %3421 = vmatpush1.msra.mxu0 %v8651_v7  ;;  %6533 = vmatpush3.msra.mxu1 %v8653_v8  ;;  %v3613_v7 = vld [vmem:[#allocation5 + $0x2e0] sm:$0xff]  ;;  %v3611_v8 = vld [vmem:[#allocation5 + $0x2d0] sm:$0xff] }
 0xd13   :  { %3422 = vmatprep.subr.mxu0 %v8657_v9  ;;  %6534 = vmatprep.subr.mxu1 %v9857_v0  ;;  %v3609_v9 = vld [vmem:[#allocation5 + $0x2c0] sm:$0xff] }
 0xd14   :  { %3423 = vmatpush1.msra.mxu0 %v8661_v10  ;;  %6535 = vmatpush3.msra.mxu1 %v8663_v11  ;;  %v3610_v10 = vld [vmem:[#allocation5 + $0x2c8] sm:$0xff]  ;;  %v3608_v11 = vld [vmem:[#allocation5 + $0x2b8] sm:$0xff] }
 0xd15   :  { %3424 = vmatprep.subr.mxu0 %v8667_v13  ;;  %6536 = vmatprep.subr.mxu1 %v9857_v0  ;;  %v9961_v13 = vld [vmem:[#allocation25_spill] sm:$0xff] }
 0xd16   :  { %3425 = vmatpush1.msra.mxu0 %v9944_v3  ;;  %6537 = vmatpush3.msra.mxu1 %v9954_v19  ;;  %v3606_v3 = vld [vmem:[#allocation5 + $0x2a8] sm:$0xff]  ;;  %v3591_v19 = vld [vmem:[#allocation5 + $0x230] sm:$0xff] }
 0xd17   :  { %3426 = vmatprep.subr.mxu0 %v9955_v20  ;;  %6538 = vmatprep.subr.mxu1 %v9857_v0  ;;  %v3592_v20 = vld [vmem:[#allocation5 + $0x238] sm:$0xff] }
 0xd18   :  { %3427 = vmatpush1.msra.mxu0 %v9956_v21  ;;  %6539 = vmatpush3.msra.mxu1 %v9957_v22  ;;  %v3590_v21 = vld [vmem:[#allocation5 + $0x228] sm:$0xff]  ;;  %v3588_v22 = vld [vmem:[#allocation5 + $0x218] sm:$0xff] }
 0xd19   :  { %3460 = vmatprep.mubr.f32.mxu0 %v9857_v0  ;;  %6540 = vmatprep.mubr.msk.f32.mxu1 %vm7224_vm1, %v9857_v0 }
 0xd1a   :  { %3635 = vmatprep.subr.mxu0 %v3615_v2  ;;  %6543 = vmatprep.subr.mxu1 %v3616_v37  ;;  %v3589_v2 = vld [vmem:[#allocation5 + $0x220] sm:$0xff] }
 0xdb9   :  { %v3250_v38 = vpop.f32.mrf.mxu0  ;;  %v3321_v1 = vpop.f32.mrf.mxu1 }
 0xdba   :  { %v3325_v12 = vadd.f32 %v3250_v38, %v1934_v48  ;;  %v3339_v15 = vadd.f32 %v8779_v24, %v3321_v1  ;;  %v3586_v48 = vld [vmem:[#allocation5 + $0x208] sm:$0xff]  ;;  %v3584_v38 = vld [vmem:[#allocation5 + $0x1f8] sm:$0xff] }
 0xdbb   :  { %v6507_v53 = vpop.f32.mrf.mxu1  ;;  %v3252_v51 = vpop.f32.mrf.mxu0  ;;  %v3582_v1 = vld [vmem:[#allocation5 + $0x1e8] sm:$0xff] }
 0xdbc   :  { %v5549_v45 = vmul.f32 -1.442695, %v3325_v12  ;;  %v3332_v47 = vadd.f32 %v3252_v51, %v1936_v46  ;;  %v3583_v12 = vld [vmem:[#allocation5 + $0x1f0] sm:$0xff]  ;;  %v3581_v53 = vld [vmem:[#allocation5 + $0x1e0] sm:$0xff]  ;;  %v3580_v51 = vld [vmem:[#allocation5 + $0x1d8] sm:$0xff] }
 0xdbd   :  { %v3576_v46 = vld [vmem:[#allocation5 + $0x1b8] sm:$0xff] }
 0xdbe   :  { %7026 = vpow2.f32 %v5549_v45  ;;  %v5550_v55 = vmul.f32 -1.442695, %v3332_v47  ;;  %v3579_v45 = vld [vmem:[#allocation5 + $0x1d0] sm:$0xff]  ;;  %v3577_v47 = vld [vmem:[#allocation5 + $0x1c0] sm:$0xff] }
 0xdc0   :  { %7028 = vpow2.f32 %v5550_v55  ;;  %v3575_v55 = vld [vmem:[#allocation5 + $0x1b0] sm:$0xff] }
 0xdcb   :  { %v7027_v44 = vpop.eup %7026 }
 0xdcc   :  { %v3329_v52 = vadd.f32 1.0, %v7027_v44  ;;  %v3573_v44 = vld [vmem:[#allocation5 + $0x1a0] sm:$0xff] }
 0xdcd   :  { %v7029_v41 = vpop.eup %7028 }
 0xdce   :  { %7030 = vrcp.f32 %v3329_v52  ;;  %v3336_v43 = vadd.f32 1.0, %v7029_v41  ;;  %v3574_v52 = vld [vmem:[#allocation5 + $0x1a8] sm:$0xff]  ;;  %v3572_v41 = vld [vmem:[#allocation5 + $0x198] sm:$0xff] }
 0xdd0   :  { %7032 = vrcp.f32 %v3336_v43  ;;  %v3570_v43 = vld [vmem:[#allocation5 + $0x188] sm:$0xff] }
 0xddb   :  { %v7031_v5 = vpop.eup %7030 }
 0xddc   :  { %v3340_v32 = vmul.f32 %v7031_v5, %v3339_v15  ;;  %v3571_v15 = vld [vmem:[#allocation5 + $0x190] sm:$0xff]  ;;  %v3569_v5 = vld [vmem:[#allocation5 + $0x180] sm:$0xff] }
 0xddd   :  { %v7033_v63 = vpop.eup %7032 }
 0xdde   :  { %v3341_v36 = vadd.f32 %v3340_v32, %v2041_v23  ;;  %v3343_v39 = vsub.f32 1.0, %v7033_v63  ;;  %v3345_v57 = vmul.f32 %v7033_v63, %v8785_v58  ;;  %v9963_v23 = vld [vmem:[#allocation22_spill] sm:$0xff] }
 0xddf   :  { %v9964_v32 = vld [vmem:[#allocation18_spill] sm:$0xff] }
 0xde0   :  { %7034 = vtanh.f32 %v3341_v36  ;;  %v8889_v36 = vld [vmem:[#allocation7 + $0x470] sm:$0xff]  ;;  %v8892_v63 = vld [vmem:[#allocation7 + $0x468] sm:$0xff] }
 0xde1   :  { %9965 = vst [vmem:[#allocation23_spill] sm:$0xff] %v8889_v36 }
 0xded   :  { %v7035_v42 = vpop.eup %7034 }
 0xdee   :  { %v3344_v56 = vmul.f32 %v7035_v42, %v3343_v39  ;;  %v8894_v39 = vld [vmem:[#allocation7 + $0x478] sm:$0xff]  ;;  %v8904_v42 = vld [vmem:[#allocation7 + $0x460] sm:$0xff] }
 0xdf0   :  { %v8862_v60 = vadd.f32 %v3345_v57, %v3344_v56  ;;  %v8907_v56 = vld [vmem:[#allocation7 + $0x440] sm:$0xff]  ;;  %v8911_v57 = vld [vmem:[#allocation7 + $0x438] sm:$0xff] }
 0xdf2   :  { %3461 = vmatmul.mubr.f32.vlgmr.msra.gmra.mxu0 %v8862_v60  ;;  %6541 = vmatmul.mubr.f32.vlgmr.msra.gmra.mxu1 %v8862_v60 }
 0xdf3   :  { %3636 = vmatpush1.msra.mxu0 %v3614_v61  ;;  %6544 = vmatpush3.msra.mxu1 %v3616_v37  ;;  %v3587_v37 = vld [vmem:[#allocation5 + $0x210] sm:$0xff]  ;;  %v8914_v61 = vld [vmem:[#allocation7 + $0x448] sm:$0xff] }
 0xdf4   :  { %3637 = vmatprep.subr.mxu0 %v3612_v6  ;;  %6545 = vmatprep.subr.mxu1 %v3613_v7  ;;  %v8917_v6 = vld [vmem:[#allocation7 + $0x428] sm:$0xff] }
 0xdf5   :  { %6575 = vmatprep.mubr.f32.mxu1 %v9961_v13  ;;  %3638 = vmatpush1.msra.mxu0 %v3611_v8  ;;  %v8924_v8 = vld [vmem:[#allocation7 + $0x430] sm:$0xff] }
 0xdf6   :  { %6546 = vmatpush3.msra.mxu1 %v3613_v7  ;;  %3639 = vmatprep.subr.mxu0 %v3609_v9  ;;  %v8921_v7 = vld [vmem:[#allocation7 + $0x420] sm:$0xff]  ;;  %v8927_v9 = vld [vmem:[#allocation7 + $0x410] sm:$0xff] }
 0xdf7   :  { %6547 = vmatprep.subr.mxu1 %v3610_v10  ;;  %3640 = vmatpush1.msra.mxu0 %v3608_v11  ;;  %v8934_v11 = vld [vmem:[#allocation7 + $0x418] sm:$0xff] }
 0xdf8   :  { %6548 = vmatpush3.msra.mxu1 %v3610_v10  ;;  %3641 = vmatprep.subr.mxu0 %v3606_v3  ;;  %v8931_v10 = vld [vmem:[#allocation7 + $0x408] sm:$0xff]  ;;  %v8941_v3 = vld [vmem:[#allocation7 + $0x3f0] sm:$0xff] }
 0xdf9   :  { %6549 = vmatprep.subr.mxu1 %v3607_v54  ;;  %3642 = vmatpush1.msra.mxu0 %v3605_v28  ;;  %v8947_v28 = vld [vmem:[#allocation7 + $0x3e0] sm:$0xff] }
 0xdfa   :  { %6550 = vmatpush3.msra.mxu1 %v3607_v54  ;;  %3643 = vmatprep.subr.mxu0 %v3603_v26  ;;  %v8944_v54 = vld [vmem:[#allocation7 + $0x400] sm:$0xff]  ;;  %v8951_v26 = vld [vmem:[#allocation7 + $0x3d8] sm:$0xff] }
 0xdfb   :  { %6551 = vmatprep.subr.mxu1 %v3604_v33  ;;  %3644 = vmatpush1.msra.mxu0 %v3602_v25  ;;  %v8957_v25 = vld [vmem:[#allocation7 + $0x3c8] sm:$0xff] }
 0xdfc   :  { %6552 = vmatpush3.msra.mxu1 %v3604_v33  ;;  %3645 = vmatprep.subr.mxu0 %v3600_v27  ;;  %v8954_v33 = vld [vmem:[#allocation7 + $0x3e8] sm:$0xff]  ;;  %v8961_v27 = vld [vmem:[#allocation7 + $0x3c0] sm:$0xff] }
 0xdfd   :  { %6553 = vmatprep.subr.mxu1 %v3601_v59  ;;  %3646 = vmatpush1.msra.mxu0 %v3599_v30  ;;  %v8967_v30 = vld [vmem:[#allocation7 + $0x3b0] sm:$0xff] }
 0xdfe   :  { %6554 = vmatpush3.msra.mxu1 %v3601_v59  ;;  %3647 = vmatprep.subr.mxu0 %v3597_v31  ;;  %v8964_v59 = vld [vmem:[#allocation7 + $0x3d0] sm:$0xff]  ;;  %v8971_v31 = vld [vmem:[#allocation7 + $0x3a8] sm:$0xff] }
 0xdff   :  { %6555 = vmatprep.subr.mxu1 %v3598_v16  ;;  %3648 = vmatpush1.msra.mxu0 %v3596_v14  ;;  %v8976_v14 = vld [vmem:[#allocation7 + $0x3b8] sm:$0xff] }
 0xe00   :  { %6556 = vmatpush3.msra.mxu1 %v3598_v16  ;;  %3649 = vmatprep.subr.mxu0 %v3594_v40  ;;  %v8974_v16 = vld [vmem:[#allocation7 + $0x398] sm:$0xff]  ;;  %v8980_v40 = vld [vmem:[#allocation7 + $0x390] sm:$0xff] }
 0xe01   :  { %6557 = vmatprep.subr.mxu1 %v3595_v62  ;;  %3650 = vmatpush1.msra.mxu0 %v3593_v17  ;;  %v8984_v17 = vld [vmem:[#allocation7 + $0x3a0] sm:$0xff] }
 0xe02   :  { %6558 = vmatpush3.msra.mxu1 %v3595_v62  ;;  %3651 = vmatprep.subr.mxu0 %v3591_v19  ;;  %v8982_v62 = vld [vmem:[#allocation7 + $0x380] sm:$0xff]  ;;  %v8988_v19 = vld [vmem:[#allocation7 + $0x378] sm:$0xff] }
 0xe03   :  { %6559 = vmatprep.subr.mxu1 %v3592_v20  ;;  %3652 = vmatpush1.msra.mxu0 %v3590_v21  ;;  %v8994_v21 = vld [vmem:[#allocation7 + $0x368] sm:$0xff] }
 0xe04   :  { %6560 = vmatpush3.msra.mxu1 %v3592_v20  ;;  %3653 = vmatprep.subr.mxu0 %v3588_v22  ;;  %v8990_v20 = vld [vmem:[#allocation7 + $0x388] sm:$0xff]  ;;  %v8998_v22 = vld [vmem:[#allocation7 + $0x360] sm:$0xff] }
 0xe05   :  { %6561 = vmatprep.subr.mxu1 %v3589_v2  ;;  %3654 = vmatpush1.msra.mxu0 %v3587_v37  ;;  %v9004_v37 = vld [vmem:[#allocation7 + $0x350] sm:$0xff] }
 0xe06   :  { %6562 = vmatpush3.msra.mxu1 %v3589_v2  ;;  %3655 = vmatprep.subr.mxu0 %v3585_v34  ;;  %v9000_v2 = vld [vmem:[#allocation7 + $0x370] sm:$0xff]  ;;  %v9008_v34 = vld [vmem:[#allocation7 + $0x348] sm:$0xff] }
 0xe07   :  { %6563 = vmatprep.subr.mxu1 %v3586_v48  ;;  %3656 = vmatpush1.msra.mxu0 %v3584_v38  ;;  %v9014_v38 = vld [vmem:[#allocation7 + $0x338] sm:$0xff] }
 0xe08   :  { %6564 = vmatpush3.msra.mxu1 %v3586_v48  ;;  %3657 = vmatprep.subr.mxu0 %v3582_v1  ;;  %v9010_v48 = vld [vmem:[#allocation7 + $0x358] sm:$0xff]  ;;  %v9018_v1 = vld [vmem:[#allocation7 + $0x330] sm:$0xff] }
 0xe09   :  { %6565 = vmatprep.subr.mxu1 %v3583_v12  ;;  %3658 = vmatpush1.msra.mxu0 %v3581_v53  ;;  %v9024_v53 = vld [vmem:[#allocation7 + $0x320] sm:$0xff] }
 0xe0a   :  { %6566 = vmatpush3.msra.mxu1 %v3583_v12  ;;  %3659 = vmatprep.subr.mxu0 %v3579_v45  ;;  %v9020_v12 = vld [vmem:[#allocation7 + $0x340] sm:$0xff]  ;;  %9967 = vst [vmem:[#allocation21_spill] sm:$0xff] %v9024_v53  ;;  %v9028_v45 = vld [vmem:[#allocation7 + $0x318] sm:$0xff] }
 0xe0b   :  { %6567 = vmatprep.subr.mxu1 %v3580_v51  ;;  %3660 = vmatpush1.msra.mxu0 %v3578_v50  ;;  %9966 = vst [vmem:[#allocation13_spill] sm:$0xff] %v9020_v12  ;;  %9968 = vst [vmem:[#allocation28_spill] sm:$0xff] %v9028_v45  ;;  %v9034_v50 = vld [vmem:[#allocation7 + $0x308] sm:$0xff] }
 0xe0c   :  { %6568 = vmatpush3.msra.mxu1 %v3580_v51  ;;  %3661 = vmatprep.subr.mxu0 %v3576_v46  ;;  %v9030_v51 = vld [vmem:[#allocation7 + $0x328] sm:$0xff]  ;;  %9970 = vst [vmem:[#allocation32_spill] sm:$0xff] %v9034_v50  ;;  %v9038_v46 = vld [vmem:[#allocation7 + $0x300] sm:$0xff] }
 0xe0d   :  { %6569 = vmatprep.subr.mxu1 %v3577_v47  ;;  %3662 = vmatpush1.msra.mxu0 %v3575_v55  ;;  %9969 = vst [vmem:[#allocation29_spill] sm:$0xff] %v9030_v51  ;;  %9971 = vst [vmem:[#allocation30_spill] sm:$0xff] %v9038_v46  ;;  %v9973_v55 = vld [vmem:[#allocation40_spill] sm:$0xff] }
 0xe0e   :  { %6570 = vmatpush3.msra.mxu1 %v3577_v47  ;;  %3663 = vmatprep.subr.mxu0 %v3573_v44  ;;  %v9040_v47 = vld [vmem:[#allocation7 + $0x310] sm:$0xff]  ;;  %v1940_v44 = vadd.f32 %v9973_v55, %v9950_v29 }
 0xe0f   :  { %6571 = vmatprep.subr.mxu1 %v3574_v52  ;;  %3664 = vmatpush1.msra.mxu0 %v3572_v41  ;;  %9972 = vst [vmem:[#allocation31_spill] sm:$0xff] %v9040_v47  ;;  %v5553_v29 = vld [vmem:[%s9741_s4 + $0x6] sm:$0x7] }
 0xe10   :  { %6572 = vmatpush3.msra.mxu1 %v3574_v52  ;;  %3665 = vmatprep.subr.mxu0 %v3570_v43 }
 0xe11   :  { %6573 = vmatprep.subr.mxu1 %v3571_v15  ;;  %3666 = vmatpush1.msra.mxu0 %v3569_v5 }
 0xe12   :  { %3699 = vmatprep.mubr.f32.mxu0 %v9857_v0  ;;  %6574 = vmatpush3.msra.mxu1 %v3571_v15 }
 0xe13   :  { %3700 = vmatmul.mubr.f32.vlgmr.msra.gmra.mxu0 %v9961_v13  ;;  %6576 = vmatmul.mubr.f32.vlgmr.msra.gmra.mxu1 %v9962_v35  ;;  %v8937_v13 = vld [vmem:[#allocation7 + $0x3f8] sm:$0xff] }
 0xe14   :  { %6578 = vmatprep.mubr.f32.mxu1 %v9963_v23  ;;  %3705 = vmatprep.mubr.f32.mxu0 %v9857_v0 }
 0xe15   :  { %6587 = vmatprep.subr.mxu1 %v9857_v0  ;;  %3928 = vmatprep.subr.mxu0 %v8889_v36 }
 0xe16   :  { %3929 = vmatpush1.msra.mxu0 %v8892_v63  ;;  %6588 = vmatpush3.msra.mxu1 %v8894_v39 }
 0xe17   :  { %3706 = vmatmul.mubr.f32.gmra.mxu0 %v9962_v35  ;;  %6579 = vmatmul.mubr.f32.gmra.mxu1 %v9964_v32 }
 0xe18   :  { %6581 = vmatprep.mubr.f32.mxu1 %v8701_v18  ;;  %3711 = vmatprep.mubr.f32.mxu0 %v9857_v0 }
 0xe19   :  { %6589 = vmatprep.subr.mxu1 %v9857_v0 }
 0xe1a   :  { %6590 = vmatpush3.msra.mxu1 %v8904_v42 }
 0xe1b   :  { %3712 = vmatmul.mubr.f32.gmra.mxu0 %v9963_v23  ;;  %6582 = vmatmul.mubr.f32.gmra.mxu1 %v8785_v58  ;;  %v9974_v23 = vld [vmem:[#allocation42_spill] sm:$0xff] }
 0xe1c   :  { %6584 = vmatprep.mubr.f32.mxu1 %v8862_v60  ;;  %3717 = vmatprep.mubr.f32.mxu0 %v9857_v0 }
 0xe1d   :  { %6591 = vmatprep.subr.mxu1 %v9857_v0 }
 0xe1e   :  { %6592 = vmatpush3.msra.mxu1 %v8914_v61 }
 0xe1f   :  { %3718 = vmatmul.mubr.f32.gmra.mxu0 %v9964_v32  ;;  %6593 = vmatprep.subr.mxu1 %v9857_v0  ;;  %v1942_v32 = vadd.f32 %v9974_v23, %v8235_v49 }
 0xe20   :  { %3723 = vmatprep.mubr.f32.mxu0 %v9857_v0  ;;  %6594 = vmatpush3.msra.mxu1 %v8924_v8 }
 0xe21   :  { %6595 = vmatprep.subr.mxu1 %v9857_v0 }
 0xe22   :  { %6596 = vmatpush3.msra.mxu1 %v8934_v11 }
 0xe23   :  { %3724 = vmatmul.mubr.f32.gmra.mxu0 %v8701_v18  ;;  %v8897_v18 = vld [vmem:[#allocation7 + $0x458] sm:$0xff]  ;;  %6597 = vmatprep.subr.mxu1 %v9857_v0 }
 0xe24   :  { %3729 = vmatprep.mubr.f32.mxu0 %v9857_v0  ;;  %3930 = vmatprep.subr.mxu0 %v8897_v18 }
 0xe25   :  { %6598 = vmatpush3.msra.mxu1 %v8944_v54 }
 0xe26   :  { %6599 = vmatprep.subr.mxu1 %v9857_v0 }
 0xe27   :  { %3730 = vmatmul.mubr.f32.gmra.mxu0 %v8785_v58  ;;  %v8901_v58 = vld [vmem:[#allocation7 + $0x450] sm:$0xff]  ;;  %6600 = vmatpush3.msra.mxu1 %v8954_v33 }
 0xe28   :  { %3735 = vmatprep.mubr.f32.mxu0 %v9857_v0  ;;  %3931 = vmatpush1.msra.mxu0 %v8901_v58 }
 0xe29   :  { %3932 = vmatprep.subr.mxu0 %v8907_v56  ;;  %6601 = vmatprep.subr.mxu1 %v9857_v0 }
 0xe2a   :  { %3933 = vmatpush1.msra.mxu0 %v8911_v57  ;;  %6602 = vmatpush3.msra.mxu1 %v8964_v59 }
 0xe2b   :  { %3736 = vmatmul.mubr.f32.gmra.mxu0 %v8862_v60  ;;  %3934 = vmatprep.subr.mxu0 %v8917_v6 }
 0xe2c   :  { %3741 = vmatprep.mubr.f32.mxu0 %v9857_v0  ;;  %3935 = vmatpush1.msra.mxu0 %v8921_v7 }
 0xe2d   :  { %3936 = vmatprep.subr.mxu0 %v8927_v9  ;;  %6603 = vmatprep.subr.mxu1 %v9857_v0 }
 0xe2e   :  { %3937 = vmatpush1.msra.mxu0 %v8931_v10  ;;  %6604 = vmatpush3.msra.mxu1 %v8976_v14 }
 0xe2f   :  { %3938 = vmatprep.subr.mxu0 %v8937_v13  ;;  %6605 = vmatprep.subr.mxu1 %v9857_v0 }
 0xe30   :  { %3939 = vmatpush1.msra.mxu0 %v8941_v3  ;;  %6606 = vmatpush3.msra.mxu1 %v8984_v17 }
 0xe31   :  { %3940 = vmatprep.subr.mxu0 %v8947_v28  ;;  %6607 = vmatprep.subr.mxu1 %v9857_v0 }
 0xe32   :  { %3941 = vmatpush1.msra.mxu0 %v8951_v26  ;;  %6608 = vmatpush3.msra.mxu1 %v8990_v20 }
 0xe33   :  { %3942 = vmatprep.subr.mxu0 %v8957_v25  ;;  %6609 = vmatprep.subr.mxu1 %v9857_v0 }
 0xe34   :  { %3943 = vmatpush1.msra.mxu0 %v8961_v27  ;;  %6610 = vmatpush3.msra.mxu1 %v9000_v2 }
 0xe35   :  { %3944 = vmatprep.subr.mxu0 %v8967_v30  ;;  %6611 = vmatprep.subr.mxu1 %v9857_v0 }
 0xe36   :  { %3945 = vmatpush1.msra.mxu0 %v8971_v31  ;;  %6612 = vmatpush3.msra.mxu1 %v9010_v48 }
 0xe37   :  { %3946 = vmatprep.subr.mxu0 %v8974_v16  ;;  %6613 = vmatprep.subr.mxu1 %v9857_v0 }
 0xe38   :  { %3947 = vmatpush1.msra.mxu0 %v8980_v40  ;;  %6614 = vmatpush3.msra.mxu1 %v9020_v12 }
 0xe39   :  { %3948 = vmatprep.subr.mxu0 %v8982_v62  ;;  %6615 = vmatprep.subr.mxu1 %v9857_v0 }
 0xe3a   :  { %3949 = vmatpush1.msra.mxu0 %v8988_v19  ;;  %6616 = vmatpush3.msra.mxu1 %v9030_v51  ;;  %v9975_v51 = vld [vmem:[#allocation16_spill] sm:$0xff] }
 0xe3b   :  { %3950 = vmatprep.subr.mxu0 %v8994_v21  ;;  %6617 = vmatprep.subr.mxu1 %v9857_v0 }
 0xe3c   :  { %3951 = vmatpush1.msra.mxu0 %v8998_v22  ;;  %6618 = vmatpush3.msra.mxu1 %v9040_v47 }
 0xe3d   :  { %3952 = vmatprep.subr.mxu0 %v9004_v37  ;;  %6622 = vmatprep.subr.mxu1 %v9857_v0 }
 0xe3e   :  { %3953 = vmatpush1.msra.mxu0 %v9008_v34 }
 0xe3f   :  { %3954 = vmatprep.subr.mxu0 %v9014_v38 }
 0xe40   :  { %3955 = vmatpush1.msra.mxu0 %v9018_v1 }
 0xe41   :  { %3956 = vmatprep.subr.mxu0 %v9024_v53 }
 0xe42   :  { %3957 = vmatpush1.msra.mxu0 %v9028_v45 }
 0xe43   :  { %3958 = vmatprep.subr.mxu0 %v9034_v50 }
 0xe44   :  { %3959 = vmatpush1.msra.mxu0 %v9038_v46 }
 0xe45   :  { %4140 = vmatprep.subr.mxu0 %v8889_v36 }
 0xeb2   :  { %v3462_v52 = vpop.f32.mrf.mxu0  ;;  %v3533_v41 = vpop.f32.mrf.mxu1 }
 0xeb3   :  { %v3537_v43 = vadd.f32 %v3462_v52, %v1940_v44  ;;  %v9058_v44 = vrot.slane %v5553_v29, %v9975_v51 }
 0xeb4   :  { %v6542_v15 = vpop.f32.mrf.mxu1  ;;  %v3464_v35 = vpop.f32.mrf.mxu0 }
 0xeb5   :  { %v5551_v5 = vmul.f32 -1.442695, %v3537_v43  ;;  %v3544_v46 = vadd.f32 %v3464_v35, %v1942_v32  ;;  %9976 = vst [vmem:[#allocation38_spill] sm:$0xff] %v9058_v44  ;;  %v3551_v43 = vadd.f32 %v8779_v24, %v3533_v41 }
 0xeb7   :  { %7036 = vpow2.f32 %v5551_v5  ;;  %v5552_v50 = vmul.f32 -1.442695, %v3544_v46 }
 0xeb9   :  { %7038 = vpow2.f32 %v5552_v50  ;;  %v9977_v50 = vld [vmem:[#allocation41_spill] sm:$0xff] }
 0xeba   :  { %v2046_v46 = vadd.f32 %v9977_v50, %v8251_v4 }
 0xec4   :  { %v7037_v47 = vpop.eup %7036 }
 0xec5   :  { %v3541_v36 = vadd.f32 1.0, %v7037_v47 }
 0xec6   :  { %v7039_v55 = vpop.eup %7038 }
 0xec7   :  { %7040 = vrcp.f32 %v3541_v36  ;;  %v3548_v52 = vadd.f32 1.0, %v7039_v55  ;;  %v9978_v36 = vld [vmem:[#allocation17_spill] sm:$0xff] }
 0xec8   :  { %v9065_v35 = vrot.slane %v5553_v29, %v9978_v36 }
 0xec9   :  { %7042 = vrcp.f32 %v3548_v52 }
 0xed3   :  { %v3701_v15 = vpop.f32.mrf.mxu0 }
 0xed4   :  { %v7041_v49 = vpop.eup %7040  ;;  %v3702_v5 = vadd.f32 %v3701_v15, %v9058_v44 }
 0xed5   :  { %v3552_v47 = vmul.f32 %v7041_v49, %v3551_v43  ;;  %v3703_v45 = vpop.f32.mrf.mxu0  ;;  %v9072_v49 = vpop.f32.mrf.mxu1 }
 0xed6   :  { %v5556_v23 = vmul.f32 -1.442695, %v3702_v5  ;;  %v3704_v51 = vadd.f32 %v3703_v45, %v9065_v35  ;;  %v7043_v41 = vpop.eup %7042 }
 0xed7   :  { %v3553_v32 = vadd.f32 %v3552_v47, %v2046_v46  ;;  %v3555_v15 = vsub.f32 1.0, %v7043_v41  ;;  %v3557_v52 = vmul.f32 %v7043_v41, %v8862_v60  ;;  %v3814_v50 = vpop.f32.mrf.mxu1  ;;  %v9979_v60 = vld [vmem:[#allocation19_spill] sm:$0xff] }
 0xed8   :  { %7044 = vpow2.f32 %v5556_v23  ;;  %v5557_v24 = vmul.f32 -1.442695, %v3704_v51 }
 0xed9   :  { %7046 = vtanh.f32 %v3553_v32 }
 0xeda   :  { %7048 = vpow2.f32 %v5557_v24 }
 0xee5   :  { %v7045_v55 = vpop.eup %7044 }
 0xee6   :  { %v7047_v44 = vpop.eup %7046  ;;  %v3864_v53 = vadd.f32 1.0, %v7045_v55  ;;  %v9982_v55 = vld [vmem:[#allocation28_spill] sm:$0xff] }
 0xee7   :  { %v3556_v4 = vmul.f32 %v7047_v44, %v3555_v15  ;;  %v7049_v45 = vpop.eup %7048  ;;  %v9077_v44 = vld [vmem:[%s9742_s5 + $0x2] ss:$0 sm:$0xff]  ;;  %v9983_v15 = vld [vmem:[#allocation29_spill] sm:$0xff] }
 0xee8   :  { %7050 = vrcp.f32 %v3864_v53  ;;  %v3870_v5 = vadd.f32 1.0, %v7049_v45  ;;  %v9080_v53 = vrot.slane %v5553_v29, %v9979_v60  ;;  %v9981_v29 = vld [vmem:[#allocation21_spill] sm:$0xff]  ;;  %v9987_v45 = vld [vmem:[#allocation23_spill] sm:$0xff] }
 0xee9   :  { %v3558_v43 = vadd.f32 %v3557_v52, %v3556_v4  ;;  %v9984_v4 = vld [vmem:[#allocation32_spill] sm:$0xff]  ;;  %v9985_v52 = vld [vmem:[#allocation30_spill] sm:$0xff] }
 0xeea   :  { %7052 = vrcp.f32 %v3870_v5  ;;  %v3815_v47 = vadd.f32 %v3814_v50, %v9080_v53  ;;  %v3707_v5 = vpop.f32.mrf.mxu0 }
 0xeeb   :  { %3742 = vmatmul.mubr.f32.gmra.mxu0 %v3558_v43  ;;  %6585 = vmatmul.mubr.f32.gmra.mxu1 %v3558_v43  ;;  %v9986_v43 = vld [vmem:[#allocation31_spill] sm:$0xff] }
 0xeec   :  { %3992 = vmatprep.mubr.f32.mxu0 %v9857_v0  ;;  %6619 = vmatprep.mubr.msk.f32.mxu1 %vm7224_vm1, %v9857_v0  ;;  %v3709_v50 = vpop.f32.mrf.mxu0 }
 0xeee   :  { %v9155_v60 = vpop.f32.mrf.mxu0 }
 0xeef   :  { %9988 = vst [vmem:[#allocation15_spill] sm:$0xff] %v9155_v60 }
 0xef5   :  { %v7051_v46 = vpop.eup %7050 }
 0xef6   :  { %v3873_v36 = vmul.f32 %v7051_v46, %v9077_v44  ;;  %v9157_v46 = vpop.f32.mrf.mxu0 }
 0xef7   :  { %v7053_v32 = vpop.eup %7052  ;;  %9989 = vst [vmem:[#allocation24_spill] sm:$0xff] %v9157_v46 }
 0xef8   :  { %v3874_v23 = vadd.f32 %v3873_v36, %v3815_v47  ;;  %v3876_v51 = vsub.f32 1.0, %v7053_v32  ;;  %v9159_v47 = vpop.f32.mrf.mxu0 }
 0xef9   :  { %9990 = vst [vmem:[#allocation33_spill] sm:$0xff] %v9159_v47 }
 0xefa   :  { %7054 = vtanh.f32 %v3874_v23  ;;  %v9161_v36 = vpop.f32.mrf.mxu0 }
 0xefb   :  { %9991 = vst [vmem:[#allocation35_spill] sm:$0xff] %v9161_v36 }
 0xefc   :  { %v9163_v23 = vpop.f32.mrf.mxu0 }
 0xefd   :  { %9992 = vst [vmem:[#allocation36_spill] sm:$0xff] %v9163_v23 }
 0xefe   :  { %v9165_v32 = vpop.f32.mrf.mxu0 }
 0xeff   :  { %9993 = vst [vmem:[#allocation27_spill] sm:$0xff] %v9165_v32 }
 0xf07   :  { %v7055_v24 = vpop.eup %7054 }
 0xf08   :  { %v9084_v41 = vmul.f32 %v7055_v24, %v3876_v51  ;;  %v9167_v51 = vpop.f32.mrf.mxu1  ;;  %v9169_v24 = vpop.f32.mrf.mxu0 }
 0xf09   :  { %9994 = vst [vmem:[#allocation34_spill] sm:$0xff] %v9167_v51  ;;  %9995 = vst [vmem:[#allocation14_spill] sm:$0xff] %v9169_v24  ;;  %v10006_v24 = vld [vmem:[#allocation38_spill] sm:$0xff] }
 0xf0a   :  { %9980 = vst [vmem:[#allocation26_spill] sm:$0xff] %v9084_v41  ;;  %3993 = vmatmul.mubr.f32.vlgmr.msra.gmra.mxu0 %v9084_v41  ;;  %6620 = vmatmul.mubr.f32.vlgmr.msra.gmra.mxu1 %v9084_v41 }
 0xf0b   :  { %4141 = vmatpush1.msra.mxu0 %v8892_v63  ;;  %6623 = vmatpush3.msra.mxu1 %v8894_v39 }
 0xf0c   :  { %4142 = vmatprep.subr.mxu0 %v8897_v18  ;;  %6624 = vmatprep.subr.mxu1 %v9857_v0 }
 0xf0d   :  { %4143 = vmatpush1.msra.mxu0 %v8901_v58  ;;  %6625 = vmatpush3.msra.mxu1 %v8904_v42 }
 0xf0e   :  { %4144 = vmatprep.subr.mxu0 %v8907_v56  ;;  %6626 = vmatprep.subr.mxu1 %v9857_v0 }
 0xf0f   :  { %4145 = vmatpush1.msra.mxu0 %v8911_v57  ;;  %6627 = vmatpush3.msra.mxu1 %v8914_v61 }
 0xf10   :  { %4146 = vmatprep.subr.mxu0 %v8917_v6  ;;  %6628 = vmatprep.subr.mxu1 %v9857_v0 }
 0xf11   :  { %4147 = vmatpush1.msra.mxu0 %v8921_v7  ;;  %6629 = vmatpush3.msra.mxu1 %v8924_v8 }
 0xf12   :  { %4148 = vmatprep.subr.mxu0 %v8927_v9  ;;  %6630 = vmatprep.subr.mxu1 %v9857_v0 }
 0xf13   :  { %4149 = vmatpush1.msra.mxu0 %v8931_v10  ;;  %6631 = vmatpush3.msra.mxu1 %v8934_v11 }
 0xf14   :  { %4150 = vmatprep.subr.mxu0 %v8937_v13  ;;  %6632 = vmatprep.subr.mxu1 %v9857_v0 }
 0xf15   :  { %4151 = vmatpush1.msra.mxu0 %v8941_v3  ;;  %6633 = vmatpush3.msra.mxu1 %v8944_v54 }
 0xf16   :  { %4152 = vmatprep.subr.mxu0 %v8947_v28  ;;  %6634 = vmatprep.subr.mxu1 %v9857_v0 }
 0xf17   :  { %4153 = vmatpush1.msra.mxu0 %v8951_v26  ;;  %6635 = vmatpush3.msra.mxu1 %v8954_v33 }
 0xf18   :  { %4154 = vmatprep.subr.mxu0 %v8957_v25  ;;  %6636 = vmatprep.subr.mxu1 %v9857_v0 }
 0xf19   :  { %4155 = vmatpush1.msra.mxu0 %v8961_v27  ;;  %6637 = vmatpush3.msra.mxu1 %v8964_v59 }
 0xf1a   :  { %4156 = vmatprep.subr.mxu0 %v8967_v30  ;;  %6638 = vmatprep.subr.mxu1 %v9857_v0 }
 0xf1b   :  { %4157 = vmatpush1.msra.mxu0 %v8971_v31  ;;  %6639 = vmatpush3.msra.mxu1 %v8976_v14 }
 0xf1c   :  { %4158 = vmatprep.subr.mxu0 %v8974_v16  ;;  %6640 = vmatprep.subr.mxu1 %v9857_v0 }
 0xf1d   :  { %4159 = vmatpush1.msra.mxu0 %v8980_v40  ;;  %6641 = vmatpush3.msra.mxu1 %v8984_v17 }
 0xf1e   :  { %4160 = vmatprep.subr.mxu0 %v8982_v62  ;;  %6642 = vmatprep.subr.mxu1 %v9857_v0 }
 0xf1f   :  { %4161 = vmatpush1.msra.mxu0 %v8988_v19  ;;  %6643 = vmatpush3.msra.mxu1 %v8990_v20 }
 0xf20   :  { %4162 = vmatprep.subr.mxu0 %v8994_v21  ;;  %6644 = vmatprep.subr.mxu1 %v9857_v0 }
 0xf21   :  { %4163 = vmatpush1.msra.mxu0 %v8998_v22  ;;  %6645 = vmatpush3.msra.mxu1 %v9000_v2 }
 0xf22   :  { %4164 = vmatprep.subr.mxu0 %v9004_v37  ;;  %6646 = vmatprep.subr.mxu1 %v9857_v0 }
 0xf23   :  { %4165 = vmatpush1.msra.mxu0 %v9008_v34  ;;  %6647 = vmatpush3.msra.mxu1 %v9010_v48 }
 0xf24   :  { %4166 = vmatprep.subr.mxu0 %v9014_v38  ;;  %6648 = vmatprep.subr.mxu1 %v9857_v0 }
 0xf25   :  { %4167 = vmatpush1.msra.mxu0 %v9018_v1  ;;  %6649 = vmatpush3.msra.mxu1 %v9020_v12 }
 0xf26   :  { %4168 = vmatprep.subr.mxu0 %v9981_v29  ;;  %6650 = vmatprep.subr.mxu1 %v9857_v0 }
 0xf27   :  { %4169 = vmatpush1.msra.mxu0 %v9982_v55  ;;  %6651 = vmatpush3.msra.mxu1 %v9983_v15 }
 0xf28   :  { %4170 = vmatprep.subr.mxu0 %v9984_v4  ;;  %6652 = vmatprep.subr.mxu1 %v9857_v0 }
 0xf29   :  { %4171 = vmatpush1.msra.mxu0 %v9985_v52  ;;  %4204 = vmatprep.mubr.f32.mxu0 %v9857_v0 }
 0xf2a   :  { %6653 = vmatpush3.msra.mxu1 %v9986_v43  ;;  %6654 = vmatprep.mubr.msk.f32.mxu1 %vm7224_vm1, %v9857_v0  ;;  %v9173_v43 = vpop.f32.mrf.mxu0 }
 0xf2b   :  { %4352 = vmatprep.subr.mxu0 %v9987_v45  ;;  %6657 = vmatprep.subr.mxu1 %v9857_v0  ;;  %v9171_v45 = vpop.f32.mrf.mxu1  ;;  %9997 = vst [vmem:[#allocation37_spill] sm:$0xff] %v9173_v43 }
 0xf2c   :  { %9996 = vst [vmem:[#allocation20_spill] sm:$0xff] %v9171_v45  ;;  %v9177_v60 = vpop.f32.mrf.mxu0  ;;  %v3708_v45 = vadd.f32 %v3707_v5, %v10006_v24 }
 0xf2d   :  { %v9175_v52 = vpop.f32.mrf.mxu1  ;;  %9999 = vst [vmem:[#allocation43_spill] sm:$0xff] %v9177_v60 }
 0xf2e   :  { %9998 = vst [vmem:[#allocation39_spill] sm:$0xff] %v9175_v52  ;;  %v9181_v47 = vpop.f32.mrf.mxu0 }
 0xf2f   :  { %v9179_v46 = vpop.f32.mrf.mxu1  ;;  %10001 = vst [vmem:[#allocation44_spill] sm:$0xff] %v9181_v47 }
 0xf30   :  { %10000 = vst [vmem:[#allocation25_spill] sm:$0xff] %v9179_v46  ;;  %v3710_v46 = vadd.f32 %v3709_v50, %v9065_v35 }
 0xfab   :  { %v9183_v36 = vpop.f32.mrf.mxu0  ;;  %v9185_v23 = vpop.f32.mrf.mxu1 }
 0xfac   :  { %10002 = vst [vmem:[#allocation22_spill] sm:$0xff] %v9183_v36  ;;  %10003 = vst [vmem:[#allocation18_spill] sm:$0xff] %v9185_v23 }
 0xfad   :  { %v9187_v32 = vpop.f32.mrf.mxu0  ;;  %v9189_v51 = vpop.f32.mrf.mxu1 }
 0xfae   :  { %10004 = vst [vmem:[#allocation40_spill] sm:$0xff] %v9187_v32  ;;  %10005 = vst [vmem:[#allocation42_spill] sm:$0xff] %v9189_v51 }
 0xfca   :  { %v3994_v4 = vpop.f32.mrf.mxu0  ;;  %v4065_v43 = vpop.f32.mrf.mxu1 }
 0xfcb   :  { %v4069_v15 = vadd.f32 %v3994_v4, %v3708_v45  ;;  %v4083_v51 = vadd.f32 %v9077_v44, %v4065_v43  ;;  %v3820_v4 = vadd.f32 %v9072_v49, %v9080_v53  ;;  %v10009_v49 = vld [vmem:[#allocation21_spill] sm:$0xff]  ;;  %v10010_v43 = vld [vmem:[#allocation28_spill] sm:$0xff] }
 0xfcc   :  { %v6621_v52 = vpop.f32.mrf.mxu1  ;;  %v3996_v60 = vpop.f32.mrf.mxu0 }
 0xfcd   :  { %v5558_v55 = vmul.f32 -1.442695, %v4069_v15  ;;  %v4076_v47 = vadd.f32 %v3996_v60, %v3710_v46 }
 0xfcf   :  { %7056 = vpow2.f32 %v5558_v55  ;;  %v5559_v29 = vmul.f32 -1.442695, %v4076_v47  ;;  %v10011_v47 = vld [vmem:[#allocation29_spill] sm:$0xff] }
 0xfd1   :  { %7058 = vpow2.f32 %v5559_v29 }
 0xfdc   :  { %v7057_v36 = vpop.eup %7056 }
 0xfdd   :  { %v4073_v23 = vadd.f32 1.0, %v7057_v36  ;;  %v10012_v36 = vld [vmem:[#allocation32_spill] sm:$0xff] }
 0xfde   :  { %v7059_v32 = vpop.eup %7058 }
 0xfdf   :  { %7060 = vrcp.f32 %v4073_v23  ;;  %v4080_v12 = vadd.f32 1.0, %v7059_v32  ;;  %v10013_v23 = vld [vmem:[#allocation30_spill] sm:$0xff]  ;;  %v10014_v32 = vld [vmem:[#allocation31_spill] sm:$0xff] }
 0xfe1   :  { %7062 = vrcp.f32 %v4080_v12  ;;  %v10008_v12 = vld [vmem:[#allocation13_spill] sm:$0xff] }
 0xfec   :  { %v7061_v5 = vpop.eup %7060 }
 0xfed   :  { %v4084_v52 = vmul.f32 %v7061_v5, %v4083_v51  ;;  %v10015_v51 = vld [vmem:[#allocation23_spill] sm:$0xff] }
 0xfee   :  { %v7063_v45 = vpop.eup %7062  ;;  %v10016_v5 = vld [vmem:[#allocation15_spill] sm:$0xff] }
 0xfef   :  { %v4085_v15 = vadd.f32 %v4084_v52, %v3820_v4  ;;  %v4087_v55 = vsub.f32 1.0, %v7063_v45  ;;  %v4089_v29 = vmul.f32 %v7063_v45, %v9084_v41  ;;  %v3714_v4 = vadd.f32 %v10016_v5, %v10006_v24 }
 0xff1   :  { %7064 = vtanh.f32 %v4085_v15 }
 0xffe   :  { %v7065_v50 = vpop.eup %7064 }
 0xfff   :  { %v4088_v60 = vmul.f32 %v7065_v50, %v4087_v55 }
0x1001   :  { %v9197_v46 = vadd.f32 %v4089_v29, %v4088_v60  ;;  %v10017_v29 = vld [vmem:[#allocation24_spill] sm:$0xff] }
0x1002   :  { %v3716_v41 = vadd.f32 %v10017_v29, %v9065_v35 }
0x1003   :  { %10007 = vst [vmem:[#allocation16_spill] sm:$0xff] %v9197_v46  ;;  %4205 = vmatmul.mubr.f32.vlgmr.msra.gmra.mxu0 %v9197_v46  ;;  %6655 = vmatmul.mubr.f32.vlgmr.msra.gmra.mxu1 %v9197_v46 }
0x1004   :  { %4353 = vmatpush1.msra.mxu0 %v8892_v63  ;;  %6658 = vmatpush3.msra.mxu1 %v8894_v39 }
0x1005   :  { %4354 = vmatprep.subr.mxu0 %v8897_v18  ;;  %6659 = vmatprep.subr.mxu1 %v9857_v0 }
0x1006   :  { %4355 = vmatpush1.msra.mxu0 %v8901_v58  ;;  %6660 = vmatpush3.msra.mxu1 %v8904_v42 }
0x1007   :  { %4356 = vmatprep.subr.mxu0 %v8907_v56  ;;  %6661 = vmatprep.subr.mxu1 %v9857_v0 }
0x1008   :  { %4357 = vmatpush1.msra.mxu0 %v8911_v57  ;;  %6662 = vmatpush3.msra.mxu1 %v8914_v61 }
0x1009   :  { %4358 = vmatprep.subr.mxu0 %v8917_v6  ;;  %6663 = vmatprep.subr.mxu1 %v9857_v0 }
0x100a   :  { %4359 = vmatpush1.msra.mxu0 %v8921_v7  ;;  %6664 = vmatpush3.msra.mxu1 %v8924_v8 }
0x100b   :  { %4360 = vmatprep.subr.mxu0 %v8927_v9  ;;  %6665 = vmatprep.subr.mxu1 %v9857_v0 }
0x100c   :  { %4361 = vmatpush1.msra.mxu0 %v8931_v10  ;;  %6666 = vmatpush3.msra.mxu1 %v8934_v11 }
0x100d   :  { %4362 = vmatprep.subr.mxu0 %v8937_v13  ;;  %6667 = vmatprep.subr.mxu1 %v9857_v0 }
0x100e   :  { %4363 = vmatpush1.msra.mxu0 %v8941_v3  ;;  %6668 = vmatpush3.msra.mxu1 %v8944_v54 }
0x100f   :  { %4364 = vmatprep.subr.mxu0 %v8947_v28  ;;  %6669 = vmatprep.subr.mxu1 %v9857_v0 }
0x1010   :  { %4365 = vmatpush1.msra.mxu0 %v8951_v26  ;;  %6670 = vmatpush3.msra.mxu1 %v8954_v33 }
0x1011   :  { %4366 = vmatprep.subr.mxu0 %v8957_v25  ;;  %6671 = vmatprep.subr.mxu1 %v9857_v0 }
0x1012   :  { %4367 = vmatpush1.msra.mxu0 %v8961_v27  ;;  %6672 = vmatpush3.msra.mxu1 %v8964_v59 }
0x1013   :  { %4368 = vmatprep.subr.mxu0 %v8967_v30  ;;  %6673 = vmatprep.subr.mxu1 %v9857_v0 }
0x1014   :  { %4369 = vmatpush1.msra.mxu0 %v8971_v31  ;;  %6674 = vmatpush3.msra.mxu1 %v8976_v14 }
0x1015   :  { %4370 = vmatprep.subr.mxu0 %v8974_v16  ;;  %6675 = vmatprep.subr.mxu1 %v9857_v0 }
0x1016   :  { %4371 = vmatpush1.msra.mxu0 %v8980_v40  ;;  %6676 = vmatpush3.msra.mxu1 %v8984_v17 }
0x1017   :  { %4372 = vmatprep.subr.mxu0 %v8982_v62  ;;  %6677 = vmatprep.subr.mxu1 %v9857_v0 }
0x1018   :  { %4373 = vmatpush1.msra.mxu0 %v8988_v19  ;;  %6678 = vmatpush3.msra.mxu1 %v8990_v20 }
0x1019   :  { %4374 = vmatprep.subr.mxu0 %v8994_v21  ;;  %6679 = vmatprep.subr.mxu1 %v9857_v0 }
0x101a   :  { %4375 = vmatpush1.msra.mxu0 %v8998_v22  ;;  %6680 = vmatpush3.msra.mxu1 %v9000_v2 }
0x101b   :  { %4376 = vmatprep.subr.mxu0 %v9004_v37  ;;  %6681 = vmatprep.subr.mxu1 %v9857_v0 }
0x101c   :  { %4377 = vmatpush1.msra.mxu0 %v9008_v34  ;;  %6682 = vmatpush3.msra.mxu1 %v9010_v48 }
0x101d   :  { %4378 = vmatprep.subr.mxu0 %v9014_v38  ;;  %6683 = vmatprep.subr.mxu1 %v9857_v0 }
0x101e   :  { %4379 = vmatpush1.msra.mxu0 %v9018_v1  ;;  %6684 = vmatpush3.msra.mxu1 %v10008_v12 }
0x101f   :  { %4380 = vmatprep.subr.mxu0 %v10009_v49  ;;  %6685 = vmatprep.subr.mxu1 %v9857_v0 }
0x1020   :  { %4381 = vmatpush1.msra.mxu0 %v10010_v43  ;;  %6686 = vmatpush3.msra.mxu1 %v10011_v47 }
0x1021   :  { %4382 = vmatprep.subr.mxu0 %v10012_v36  ;;  %6687 = vmatprep.subr.mxu1 %v9857_v0 }
0x1022   :  { %4383 = vmatpush1.msra.mxu0 %v10013_v23  ;;  %4416 = vmatprep.mubr.f32.mxu0 %v9857_v0 }
0x1023   :  { %6688 = vmatpush3.msra.mxu1 %v10014_v32  ;;  %6689 = vmatprep.mubr.msk.f32.mxu1 %vm7224_vm1, %v9857_v0 }
0x1024   :  { %4564 = vmatprep.subr.mxu0 %v10015_v51  ;;  %6692 = vmatprep.subr.mxu1 %v9857_v0 }
0x10c3   :  { %v4206_v52 = vpop.f32.mrf.mxu0  ;;  %v4277_v15 = vpop.f32.mrf.mxu1 }
0x10c4   :  { %v4281_v45 = vadd.f32 %v4206_v52, %v3714_v4  ;;  %v4295_v5 = vadd.f32 %v9077_v44, %v4277_v15  ;;  %v10018_v4 = vld [vmem:[#allocation20_spill] sm:$0xff]  ;;  %v9396_v15 = vld [vmem:[#allocation7 + $0x430] sm:$0xff] }
0x10c5   :  { %v6656_v55 = vpop.f32.mrf.mxu1  ;;  %v4208_v60 = vpop.f32.mrf.mxu0  ;;  %v3825_v52 = vadd.f32 %v10018_v4, %v9080_v53  ;;  %v9410_v4 = vld [vmem:[#allocation7 + $0x3f8] sm:$0xff] }
0x10c6   :  { %v5560_v50 = vmul.f32 -1.442695, %v4281_v45  ;;  %v4288_v32 = vadd.f32 %v4208_v60, %v3716_v41  ;;  %v9400_v60 = vld [vmem:[#allocation7 + $0x410] sm:$0xff] }
0x10c8   :  { %7066 = vpow2.f32 %v5560_v50  ;;  %v5561_v23 = vmul.f32 -1.442695, %v4288_v32 }
0x10ca   :  { %7068 = vpow2.f32 %v5561_v23 }
0x10d5   :  { %v7067_v36 = vpop.eup %7066 }
0x10d6   :  { %v4285_v51 = vadd.f32 1.0, %v7067_v36 }
0x10d7   :  { %v7069_v47 = vpop.eup %7068 }
0x10d8   :  { %7070 = vrcp.f32 %v4285_v51  ;;  %v4292_v43 = vadd.f32 1.0, %v7069_v47  ;;  %v9394_v47 = vld [vmem:[#allocation7 + $0x420] sm:$0xff]  ;;  %v9404_v51 = vld [vmem:[#allocation7 + $0x408] sm:$0xff] }
0x10da   :  { %7072 = vrcp.f32 %v4292_v43  ;;  %v9390_v43 = vld [vmem:[#allocation7 + $0x428] sm:$0xff] }
0x10e5   :  { %v7071_v24 = vpop.eup %7070 }
0x10e6   :  { %v4296_v45 = vmul.f32 %v7071_v24, %v4295_v5  ;;  %v9380_v24 = vld [vmem:[#allocation7 + $0x440] sm:$0xff]  ;;  %v9406_v5 = vld [vmem:[#allocation7 + $0x418] sm:$0xff] }
0x10e7   :  { %v7073_v29 = vpop.eup %7072 }
0x10e8   :  { %v4297_v55 = vadd.f32 %v4296_v45, %v3825_v52  ;;  %v4299_v50 = vsub.f32 1.0, %v7073_v29  ;;  %v4301_v23 = vmul.f32 %v7073_v29, %v9197_v46  ;;  %v9414_v52 = vld [vmem:[#allocation7 + $0x3f0] sm:$0xff]  ;;  %v9416_v45 = vld [vmem:[#allocation7 + $0x400] sm:$0xff]  ;;  %v9424_v29 = vld [vmem:[#allocation7 + $0x3d8] sm:$0xff] }
0x10ea   :  { %7074 = vtanh.f32 %v4297_v55  ;;  %v9420_v55 = vld [vmem:[#allocation7 + $0x3e0] sm:$0xff] }
0x10f7   :  { %v7075_v41 = vpop.eup %7074 }
0x10f8   :  { %v4300_v32 = vmul.f32 %v7075_v41, %v4299_v50  ;;  %v9426_v50 = vld [vmem:[#allocation7 + $0x3e8] sm:$0xff] }
0x10f9   :  { %v9430_v41 = vld [vmem:[#allocation7 + $0x3c8] sm:$0xff] }
0x10fa   :  { %v9276_v36 = vadd.f32 %v4301_v23, %v4300_v32  ;;  %v9434_v32 = vld [vmem:[#allocation7 + $0x3c0] sm:$0xff]  ;;  %v9436_v23 = vld [vmem:[#allocation7 + $0x3d0] sm:$0xff] }
0x10fc   :  { %10019 = vst [vmem:[#allocation41_spill] sm:$0xff] %v9276_v36  ;;  %4417 = vmatmul.mubr.f32.vlgmr.msra.gmra.mxu0 %v9276_v36  ;;  %6690 = vmatmul.mubr.f32.vlgmr.msra.gmra.mxu1 %v9276_v36 }
0x10fd   :  { %4565 = vmatpush1.msra.mxu0 %v8892_v63  ;;  %6693 = vmatpush3.msra.mxu1 %v8894_v39  ;;  %v10020_v63 = vld [vmem:[#allocation28_spill] sm:$0xff]  ;;  %v10021_v39 = vld [vmem:[#allocation29_spill] sm:$0xff] }
0x10fe   :  { %4566 = vmatprep.subr.mxu0 %v8897_v18  ;;  %6694 = vmatprep.subr.mxu1 %v9857_v0  ;;  %v10022_v18 = vld [vmem:[#allocation32_spill] sm:$0xff] }
0x10ff   :  { %4567 = vmatpush1.msra.mxu0 %v8901_v58  ;;  %6695 = vmatpush3.msra.mxu1 %v8904_v42  ;;  %v10023_v58 = vld [vmem:[#allocation30_spill] sm:$0xff]  ;;  %v10024_v42 = vld [vmem:[#allocation31_spill] sm:$0xff] }
0x1100   :  { %4568 = vmatprep.subr.mxu0 %v8907_v56  ;;  %6696 = vmatprep.subr.mxu1 %v9857_v0  ;;  %v10025_v56 = vld [vmem:[#allocation38_spill] sm:$0xff] }
0x1101   :  { %4569 = vmatpush1.msra.mxu0 %v8911_v57  ;;  %6697 = vmatpush3.msra.mxu1 %v8914_v61  ;;  %v10026_v57 = vld [vmem:[#allocation33_spill] sm:$0xff] }
0x1102   :  { %4570 = vmatprep.subr.mxu0 %v8917_v6  ;;  %6698 = vmatprep.subr.mxu1 %v9857_v0  ;;  %v3720_v61 = vadd.f32 %v10026_v57, %v10025_v56  ;;  %v9452_v57 = vld [vmem:[#allocation7 + $0x3a0] sm:$0xff] }
0x1103   :  { %4571 = vmatpush1.msra.mxu0 %v8921_v7  ;;  %6699 = vmatpush3.msra.mxu1 %v8924_v8 }
0x1104   :  { %4572 = vmatprep.subr.mxu0 %v8927_v9  ;;  %6700 = vmatprep.subr.mxu1 %v9857_v0 }
0x1105   :  { %4573 = vmatpush1.msra.mxu0 %v8931_v10  ;;  %6701 = vmatpush3.msra.mxu1 %v8934_v11 }
0x1106   :  { %4574 = vmatprep.subr.mxu0 %v8937_v13  ;;  %6702 = vmatprep.subr.mxu1 %v9857_v0  ;;  %v10027_v13 = vld [vmem:[#allocation35_spill] sm:$0xff] }
0x1107   :  { %4575 = vmatpush1.msra.mxu0 %v8941_v3  ;;  %6703 = vmatpush3.msra.mxu1 %v8944_v54  ;;  %v3722_v3 = vadd.f32 %v10027_v13, %v9065_v35  ;;  %v9480_v13 = vld [vmem:[#allocation7 + $0x348] sm:$0xff] }
0x1108   :  { %4576 = vmatprep.subr.mxu0 %v8947_v28  ;;  %6704 = vmatprep.subr.mxu1 %v9857_v0 }
0x1109   :  { %4577 = vmatpush1.msra.mxu0 %v8951_v26  ;;  %6705 = vmatpush3.msra.mxu1 %v8954_v33 }
0x110a   :  { %4578 = vmatprep.subr.mxu0 %v8957_v25  ;;  %6706 = vmatprep.subr.mxu1 %v9857_v0 }
0x110b   :  { %4579 = vmatpush1.msra.mxu0 %v8961_v27  ;;  %6707 = vmatpush3.msra.mxu1 %v8964_v59 }
0x110c   :  { %4580 = vmatprep.subr.mxu0 %v8967_v30  ;;  %6708 = vmatprep.subr.mxu1 %v9857_v0 }
0x110d   :  { %4581 = vmatpush1.msra.mxu0 %v8971_v31  ;;  %6709 = vmatpush3.msra.mxu1 %v8976_v14  ;;  %v10028_v31 = vld [vmem:[#allocation34_spill] sm:$0xff] }
0x110e   :  { %4582 = vmatprep.subr.mxu0 %v8974_v16  ;;  %6710 = vmatprep.subr.mxu1 %v9857_v0  ;;  %v3830_v16 = vadd.f32 %v10028_v31, %v9080_v53  ;;  %v9512_v31 = vld [vmem:[#allocation7 + $0x310] sm:$0xff] }
0x110f   :  { %4583 = vmatpush1.msra.mxu0 %v8980_v40  ;;  %6711 = vmatpush3.msra.mxu1 %v8984_v17  ;;  %10035 = vst [vmem:[#allocation24_spill] sm:$0xff] %v9512_v31 }
0x1110   :  { %4584 = vmatprep.subr.mxu0 %v8982_v62  ;;  %6712 = vmatprep.subr.mxu1 %v9857_v0 }
0x1111   :  { %4585 = vmatpush1.msra.mxu0 %v8988_v19  ;;  %6713 = vmatpush3.msra.mxu1 %v8990_v20 }
0x1112   :  { %4586 = vmatprep.subr.mxu0 %v8994_v21  ;;  %6714 = vmatprep.subr.mxu1 %v9857_v0 }
0x1113   :  { %4587 = vmatpush1.msra.mxu0 %v8998_v22  ;;  %6715 = vmatpush3.msra.mxu1 %v9000_v2  ;;  %v9361_v2 = vld [vmem:[#allocation7 + $0x470] sm:$0xff] }
0x1114   :  { %4588 = vmatprep.subr.mxu0 %v9004_v37  ;;  %6716 = vmatprep.subr.mxu1 %v9857_v0  ;;  %10030 = vst [vmem:[#allocation19_spill] sm:$0xff] %v9361_v2  ;;  %v9364_v37 = vld [vmem:[#allocation7 + $0x468] sm:$0xff] }
0x1115   :  { %4589 = vmatpush1.msra.mxu0 %v9008_v34  ;;  %6717 = vmatpush3.msra.mxu1 %v9010_v48  ;;  %v9366_v34 = vld [vmem:[#allocation7 + $0x478] sm:$0xff] }
0x1116   :  { %4590 = vmatprep.subr.mxu0 %v9014_v38  ;;  %6718 = vmatprep.subr.mxu1 %v9857_v0  ;;  %v9370_v48 = vld [vmem:[#allocation7 + $0x458] sm:$0xff]  ;;  %v9374_v38 = vld [vmem:[#allocation7 + $0x450] sm:$0xff] }
0x1117   :  { %4591 = vmatpush1.msra.mxu0 %v9018_v1  ;;  %6719 = vmatpush3.msra.mxu1 %v10008_v12  ;;  %v9376_v1 = vld [vmem:[#allocation7 + $0x460] sm:$0xff]  ;;  %v9384_v12 = vld [vmem:[#allocation7 + $0x438] sm:$0xff] }
0x1118   :  { %4592 = vmatprep.subr.mxu0 %v10009_v49  ;;  %6720 = vmatprep.subr.mxu1 %v9857_v0  ;;  %v9386_v49 = vld [vmem:[#allocation7 + $0x448] sm:$0xff] }
0x1119   :  { %4593 = vmatpush1.msra.mxu0 %v10020_v63  ;;  %6721 = vmatpush3.msra.mxu1 %v10021_v39  ;;  %v9438_v63 = vld [vmem:[#allocation7 + $0x3b0] sm:$0xff]  ;;  %v9442_v39 = vld [vmem:[#allocation7 + $0x3a8] sm:$0xff] }
0x111a   :  { %4594 = vmatprep.subr.mxu0 %v10022_v18  ;;  %6722 = vmatprep.subr.mxu1 %v9857_v0  ;;  %v9444_v18 = vld [vmem:[#allocation7 + $0x3b8] sm:$0xff] }
0x111b   :  { %4595 = vmatpush1.msra.mxu0 %v10023_v58  ;;  %4628 = vmatprep.mubr.f32.mxu0 %v9857_v0  ;;  %v9446_v58 = vld [vmem:[#allocation7 + $0x398] sm:$0xff] }
0x111c   :  { %6723 = vmatpush3.msra.mxu1 %v10024_v42  ;;  %6724 = vmatprep.mubr.msk.f32.mxu1 %vm7224_vm1, %v9857_v0  ;;  %v9450_v42 = vld [vmem:[#allocation7 + $0x390] sm:$0xff] }
0x111d   :  { %6727 = vmatprep.subr.mxu1 %v9857_v0  ;;  %4776 = vmatprep.subr.mxu0 %v9361_v2 }
0x11bc   :  { %v4418_v6 = vpop.f32.mrf.mxu0  ;;  %v4489_v7 = vpop.f32.mrf.mxu1 }
0x11bd   :  { %v4493_v8 = vadd.f32 %v4418_v6, %v3720_v61  ;;  %v4507_v59 = vadd.f32 %v9077_v44, %v4489_v7  ;;  %v9456_v61 = vld [vmem:[#allocation7 + $0x380] sm:$0xff]  ;;  %v9460_v6 = vld [vmem:[#allocation7 + $0x378] sm:$0xff]  ;;  %v9462_v7 = vld [vmem:[#allocation7 + $0x388] sm:$0xff] }
0x11be   :  { %v6691_v9 = vpop.f32.mrf.mxu1  ;;  %v4420_v11 = vpop.f32.mrf.mxu0 }
0x11bf   :  { %v5562_v10 = vmul.f32 -1.442695, %v4493_v8  ;;  %v4500_v54 = vadd.f32 %v4420_v11, %v3722_v3  ;;  %v9466_v8 = vld [vmem:[#allocation7 + $0x368] sm:$0xff]  ;;  %v9470_v9 = vld [vmem:[#allocation7 + $0x360] sm:$0xff]  ;;  %v9476_v11 = vld [vmem:[#allocation7 + $0x350] sm:$0xff] }
0x11c0   :  { %v9482_v3 = vld [vmem:[#allocation7 + $0x358] sm:$0xff] }
0x11c1   :  { %7076 = vpow2.f32 %v5562_v10  ;;  %v5563_v28 = vmul.f32 -1.442695, %v4500_v54  ;;  %v9472_v10 = vld [vmem:[#allocation7 + $0x370] sm:$0xff]  ;;  %v9486_v54 = vld [vmem:[#allocation7 + $0x338] sm:$0xff] }
0x11c3   :  { %7078 = vpow2.f32 %v5563_v28  ;;  %v9490_v28 = vld [vmem:[#allocation7 + $0x330] sm:$0xff] }
0x11ce   :  { %v7077_v26 = vpop.eup %7076 }
0x11cf   :  { %v4497_v33 = vadd.f32 1.0, %v7077_v26  ;;  %v9492_v26 = vld [vmem:[#allocation7 + $0x340] sm:$0xff] }
0x11d0   :  { %v7079_v25 = vpop.eup %7078 }
0x11d1   :  { %7080 = vrcp.f32 %v4497_v33  ;;  %v4504_v27 = vadd.f32 1.0, %v7079_v25  ;;  %v9496_v33 = vld [vmem:[#allocation7 + $0x320] sm:$0xff]  ;;  %v9500_v25 = vld [vmem:[#allocation7 + $0x318] sm:$0xff] }
0x11d2   :  { %10031 = vst [vmem:[#allocation13_spill] sm:$0xff] %v9500_v25 }
0x11d3   :  { %7082 = vrcp.f32 %v4504_v27  ;;  %v9502_v27 = vld [vmem:[#allocation7 + $0x328] sm:$0xff] }
0x11d4   :  { %10032 = vst [vmem:[#allocation21_spill] sm:$0xff] %v9502_v27 }
0x11de   :  { %v7081_v30 = vpop.eup %7080 }
0x11df   :  { %v4508_v14 = vmul.f32 %v7081_v30, %v4507_v59  ;;  %v9506_v59 = vld [vmem:[#allocation7 + $0x308] sm:$0xff]  ;;  %v9510_v30 = vld [vmem:[#allocation7 + $0x300] sm:$0xff] }
0x11e0   :  { %v7083_v62 = vpop.eup %7082  ;;  %10033 = vst [vmem:[#allocation23_spill] sm:$0xff] %v9506_v59  ;;  %10034 = vst [vmem:[#allocation15_spill] sm:$0xff] %v9510_v30 }
0x11e1   :  { %v4509_v40 = vadd.f32 %v4508_v14, %v3830_v16  ;;  %v4511_v17 = vsub.f32 1.0, %v7083_v62  ;;  %v4513_v21 = vmul.f32 %v7083_v62, %v9276_v36  ;;  %v10036_v16 = vld [vmem:[#allocation36_spill] sm:$0xff]  ;;  %v10037_v36 = vld [vmem:[#allocation27_spill] sm:$0xff] }
0x11e2   :  { %v3726_v14 = vadd.f32 %v10036_v16, %v10025_v56  ;;  %v3728_v46 = vadd.f32 %v10037_v36, %v9065_v35 }
0x11e3   :  { %7084 = vtanh.f32 %v4509_v40 }
0x11f0   :  { %v7085_v19 = vpop.eup %7084 }
0x11f1   :  { %v4512_v20 = vmul.f32 %v7085_v19, %v4511_v17 }
0x11f3   :  { %v9354_v22 = vadd.f32 %v4513_v21, %v4512_v20 }
0x11f5   :  { %10029 = vst [vmem:[#allocation17_spill] sm:$0xff] %v9354_v22  ;;  %4629 = vmatmul.mubr.f32.vlgmr.msra.gmra.mxu0 %v9354_v22  ;;  %6725 = vmatmul.mubr.f32.vlgmr.msra.gmra.mxu1 %v9354_v22 }
0x11f6   :  { %4840 = vmatprep.mubr.f32.mxu0 %v9857_v0  ;;  %6759 = vmatprep.mubr.msk.f32.mxu1 %vm7224_vm1, %v9857_v0 }
0x11f7   :  { %4777 = vmatpush1.msra.mxu0 %v9364_v37  ;;  %6728 = vmatpush3.msra.mxu1 %v9366_v34 }
0x11f8   :  { %4778 = vmatprep.subr.mxu0 %v9370_v48  ;;  %6729 = vmatprep.subr.mxu1 %v9857_v0 }
0x11f9   :  { %4779 = vmatpush1.msra.mxu0 %v9374_v38  ;;  %6730 = vmatpush3.msra.mxu1 %v9376_v1 }
0x11fa   :  { %4780 = vmatprep.subr.mxu0 %v9380_v24  ;;  %6731 = vmatprep.subr.mxu1 %v9857_v0 }
0x11fb   :  { %4781 = vmatpush1.msra.mxu0 %v9384_v12  ;;  %6732 = vmatpush3.msra.mxu1 %v9386_v49 }
0x11fc   :  { %4782 = vmatprep.subr.mxu0 %v9390_v43  ;;  %6733 = vmatprep.subr.mxu1 %v9857_v0 }
0x11fd   :  { %4783 = vmatpush1.msra.mxu0 %v9394_v47  ;;  %6734 = vmatpush3.msra.mxu1 %v9396_v15 }
0x11fe   :  { %4784 = vmatprep.subr.mxu0 %v9400_v60  ;;  %6735 = vmatprep.subr.mxu1 %v9857_v0 }
0x11ff   :  { %4785 = vmatpush1.msra.mxu0 %v9404_v51  ;;  %6736 = vmatpush3.msra.mxu1 %v9406_v5 }
0x1200   :  { %4786 = vmatprep.subr.mxu0 %v9410_v4  ;;  %6737 = vmatprep.subr.mxu1 %v9857_v0 }
0x1201   :  { %4787 = vmatpush1.msra.mxu0 %v9414_v52  ;;  %6738 = vmatpush3.msra.mxu1 %v9416_v45 }
0x1202   :  { %4788 = vmatprep.subr.mxu0 %v9420_v55  ;;  %6739 = vmatprep.subr.mxu1 %v9857_v0 }
0x1203   :  { %4789 = vmatpush1.msra.mxu0 %v9424_v29  ;;  %6740 = vmatpush3.msra.mxu1 %v9426_v50 }
0x1204   :  { %4790 = vmatprep.subr.mxu0 %v9430_v41  ;;  %6741 = vmatprep.subr.mxu1 %v9857_v0 }
0x1205   :  { %4791 = vmatpush1.msra.mxu0 %v9434_v32  ;;  %6742 = vmatpush3.msra.mxu1 %v9436_v23 }
0x1206   :  { %4792 = vmatprep.subr.mxu0 %v9438_v63  ;;  %6743 = vmatprep.subr.mxu1 %v9857_v0 }
0x1207   :  { %4793 = vmatpush1.msra.mxu0 %v9442_v39  ;;  %6744 = vmatpush3.msra.mxu1 %v9444_v18 }
0x1208   :  { %4794 = vmatprep.subr.mxu0 %v9446_v58  ;;  %6745 = vmatprep.subr.mxu1 %v9857_v0 }
0x1209   :  { %4795 = vmatpush1.msra.mxu0 %v9450_v42  ;;  %6746 = vmatpush3.msra.mxu1 %v9452_v57 }
0x120a   :  { %4796 = vmatprep.subr.mxu0 %v9456_v61  ;;  %6747 = vmatprep.subr.mxu1 %v9857_v0 }
0x120b   :  { %4797 = vmatpush1.msra.mxu0 %v9460_v6  ;;  %6748 = vmatpush3.msra.mxu1 %v9462_v7 }
0x120c   :  { %4798 = vmatprep.subr.mxu0 %v9466_v8  ;;  %6749 = vmatprep.subr.mxu1 %v9857_v0 }
0x120d   :  { %4799 = vmatpush1.msra.mxu0 %v9470_v9  ;;  %6750 = vmatpush3.msra.mxu1 %v9472_v10 }
0x120e   :  { %4800 = vmatprep.subr.mxu0 %v9476_v11  ;;  %6751 = vmatprep.subr.mxu1 %v9857_v0 }
0x120f   :  { %4801 = vmatpush1.msra.mxu0 %v9480_v13  ;;  %6752 = vmatpush3.msra.mxu1 %v9482_v3 }
0x1210   :  { %4802 = vmatprep.subr.mxu0 %v9486_v54  ;;  %6753 = vmatprep.subr.mxu1 %v9857_v0 }
0x1211   :  { %4803 = vmatpush1.msra.mxu0 %v9490_v28  ;;  %6754 = vmatpush3.msra.mxu1 %v9492_v26 }
0x1212   :  { %4804 = vmatprep.subr.mxu0 %v9496_v33  ;;  %6755 = vmatprep.subr.mxu1 %v9857_v0 }
0x1213   :  { %4805 = vmatpush1.msra.mxu0 %v9500_v25  ;;  %6756 = vmatpush3.msra.mxu1 %v9502_v27 }
0x1214   :  { %4806 = vmatprep.subr.mxu0 %v9506_v59  ;;  %6757 = vmatprep.subr.mxu1 %v9857_v0 }
0x1215   :  { %4807 = vmatpush1.msra.mxu0 %v9510_v30  ;;  %6758 = vmatpush3.msra.mxu1 %v9512_v31 }
0x1216   :  { %4988 = vmatprep.subr.mxu0 %v9361_v2  ;;  %6762 = vmatprep.subr.mxu1 %v9857_v0 }
0x12b5   :  { %v4630_v40 = vpop.f32.mrf.mxu0  ;;  %v4701_v62 = vpop.f32.mrf.mxu1 }
0x12b6   :  { %v4705_v17 = vadd.f32 %v4630_v40, %v3726_v14  ;;  %v4719_v16 = vadd.f32 %v9077_v44, %v4701_v62  ;;  %v10038_v14 = vld [vmem:[#allocation25_spill] sm:$0xff]  ;;  %v10044_v62 = vld [vmem:[#allocation19_spill] sm:$0xff] }
0x12b7   :  { %v6726_v19 = vpop.f32.mrf.mxu1  ;;  %v4632_v21 = vpop.f32.mrf.mxu0  ;;  %v3835_v40 = vadd.f32 %v10038_v14, %v9080_v53  ;;  %v10039_v44 = vld [vmem:[#allocation13_spill] sm:$0xff] }
0x12b8   :  { %v5564_v20 = vmul.f32 -1.442695, %v4705_v17  ;;  %v4712_v30 = vadd.f32 %v4632_v21, %v3728_v46  ;;  %v10045_v21 = vld [vmem:[#allocation38_spill] sm:$0xff] }
0x12ba   :  { %7086 = vpow2.f32 %v5564_v20  ;;  %v5565_v59 = vmul.f32 -1.442695, %v4712_v30 }
0x12bc   :  { %7088 = vpow2.f32 %v5565_v59 }
0x12c7   :  { %v7087_v31 = vpop.eup %7086 }
0x12c8   :  { %v4709_v2 = vadd.f32 1.0, %v7087_v31 }
0x12c9   :  { %v7089_v27 = vpop.eup %7088 }
0x12ca   :  { %7090 = vrcp.f32 %v4709_v2  ;;  %v4716_v25 = vadd.f32 1.0, %v7089_v27  ;;  %v10041_v2 = vld [vmem:[#allocation23_spill] sm:$0xff]  ;;  %v10043_v27 = vld [vmem:[#allocation24_spill] sm:$0xff] }
0x12cc   :  { %7092 = vrcp.f32 %v4716_v25  ;;  %v10042_v25 = vld [vmem:[#allocation15_spill] sm:$0xff] }
0x12d7   :  { %v7091_v56 = vpop.eup %7090 }
0x12d8   :  { %v4720_v17 = vmul.f32 %v7091_v56, %v4719_v16  ;;  %v10040_v56 = vld [vmem:[#allocation21_spill] sm:$0xff]  ;;  %v10046_v16 = vld [vmem:[#allocation14_spill] sm:$0xff] }
0x12d9   :  { %v7093_v36 = vpop.eup %7092  ;;  %v3732_v14 = vadd.f32 %v10046_v16, %v10045_v21  ;;  %v9608_v16 = vld [vmem:[%s9742_s5 + $0x2] ss:$0 sm:$0xff] }
0x12da   :  { %v4721_v19 = vadd.f32 %v4720_v17, %v3835_v40  ;;  %v4723_v20 = vsub.f32 1.0, %v7093_v36  ;;  %v4725_v59 = vmul.f32 %v7093_v36, %v9354_v22 }
0x12dc   :  { %7094 = vtanh.f32 %v4721_v19 }
0x12e9   :  { %v7095_v46 = vpop.eup %7094 }
0x12ea   :  { %v4724_v30 = vmul.f32 %v7095_v46, %v4723_v20 }
0x12ec   :  { %v9530_v31 = vadd.f32 %v4725_v59, %v4724_v30  ;;  %v10047_v30 = vld [vmem:[#allocation37_spill] sm:$0xff] }
0x12ed   :  { %v3734_v59 = vadd.f32 %v10047_v30, %v9065_v35 }
0x12ee   :  { %4841 = vmatmul.mubr.f32.vlgmr.msra.gmra.mxu0 %v9530_v31  ;;  %6760 = vmatmul.mubr.f32.vlgmr.msra.gmra.mxu1 %v9530_v31 }
0x12ef   :  { %4989 = vmatpush1.msra.mxu0 %v9364_v37  ;;  %6763 = vmatpush3.msra.mxu1 %v9366_v34 }
0x12f0   :  { %4990 = vmatprep.subr.mxu0 %v9370_v48  ;;  %6764 = vmatprep.subr.mxu1 %v9857_v0 }
0x12f1   :  { %4991 = vmatpush1.msra.mxu0 %v9374_v38  ;;  %6765 = vmatpush3.msra.mxu1 %v9376_v1 }
0x12f2   :  { %4992 = vmatprep.subr.mxu0 %v9380_v24  ;;  %6766 = vmatprep.subr.mxu1 %v9857_v0 }
0x12f3   :  { %4993 = vmatpush1.msra.mxu0 %v9384_v12  ;;  %6767 = vmatpush3.msra.mxu1 %v9386_v49 }
0x12f4   :  { %4994 = vmatprep.subr.mxu0 %v9390_v43  ;;  %6768 = vmatprep.subr.mxu1 %v9857_v0 }
0x12f5   :  { %4995 = vmatpush1.msra.mxu0 %v9394_v47  ;;  %6769 = vmatpush3.msra.mxu1 %v9396_v15 }
0x12f6   :  { %4996 = vmatprep.subr.mxu0 %v9400_v60  ;;  %6770 = vmatprep.subr.mxu1 %v9857_v0 }
0x12f7   :  { %4997 = vmatpush1.msra.mxu0 %v9404_v51  ;;  %6771 = vmatpush3.msra.mxu1 %v9406_v5 }
0x12f8   :  { %4998 = vmatprep.subr.mxu0 %v9410_v4  ;;  %6772 = vmatprep.subr.mxu1 %v9857_v0 }
0x12f9   :  { %4999 = vmatpush1.msra.mxu0 %v9414_v52  ;;  %6773 = vmatpush3.msra.mxu1 %v9416_v45 }
0x12fa   :  { %5000 = vmatprep.subr.mxu0 %v9420_v55  ;;  %6774 = vmatprep.subr.mxu1 %v9857_v0 }
0x12fb   :  { %5001 = vmatpush1.msra.mxu0 %v9424_v29  ;;  %6775 = vmatpush3.msra.mxu1 %v9426_v50 }
0x12fc   :  { %5002 = vmatprep.subr.mxu0 %v9430_v41  ;;  %6776 = vmatprep.subr.mxu1 %v9857_v0 }
0x12fd   :  { %5003 = vmatpush1.msra.mxu0 %v9434_v32  ;;  %6777 = vmatpush3.msra.mxu1 %v9436_v23 }
0x12fe   :  { %5004 = vmatprep.subr.mxu0 %v9438_v63  ;;  %6778 = vmatprep.subr.mxu1 %v9857_v0 }
0x12ff   :  { %5005 = vmatpush1.msra.mxu0 %v9442_v39  ;;  %6779 = vmatpush3.msra.mxu1 %v9444_v18 }
0x1300   :  { %5006 = vmatprep.subr.mxu0 %v9446_v58  ;;  %6780 = vmatprep.subr.mxu1 %v9857_v0 }
0x1301   :  { %5007 = vmatpush1.msra.mxu0 %v9450_v42  ;;  %6781 = vmatpush3.msra.mxu1 %v9452_v57 }
0x1302   :  { %5008 = vmatprep.subr.mxu0 %v9456_v61  ;;  %6782 = vmatprep.subr.mxu1 %v9857_v0 }
0x1303   :  { %5009 = vmatpush1.msra.mxu0 %v9460_v6  ;;  %6783 = vmatpush3.msra.mxu1 %v9462_v7 }
0x1304   :  { %5010 = vmatprep.subr.mxu0 %v9466_v8  ;;  %6784 = vmatprep.subr.mxu1 %v9857_v0 }
0x1305   :  { %5011 = vmatpush1.msra.mxu0 %v9470_v9  ;;  %6785 = vmatpush3.msra.mxu1 %v9472_v10 }
0x1306   :  { %5012 = vmatprep.subr.mxu0 %v9476_v11  ;;  %6786 = vmatprep.subr.mxu1 %v9857_v0 }
0x1307   :  { %5013 = vmatpush1.msra.mxu0 %v9480_v13  ;;  %6787 = vmatpush3.msra.mxu1 %v9482_v3 }
0x1308   :  { %5014 = vmatprep.subr.mxu0 %v9486_v54  ;;  %6788 = vmatprep.subr.mxu1 %v9857_v0 }
0x1309   :  { %5015 = vmatpush1.msra.mxu0 %v9490_v28  ;;  %6789 = vmatpush3.msra.mxu1 %v9492_v26 }
0x130a   :  { %5016 = vmatprep.subr.mxu0 %v9496_v33  ;;  %6790 = vmatprep.subr.mxu1 %v9857_v0 }
0x130b   :  { %5017 = vmatpush1.msra.mxu0 %v10039_v44  ;;  %6791 = vmatpush3.msra.mxu1 %v10040_v56 }
0x130c   :  { %5018 = vmatprep.subr.mxu0 %v10041_v2  ;;  %6792 = vmatprep.subr.mxu1 %v9857_v0 }
0x130d   :  { %5019 = vmatpush1.msra.mxu0 %v10042_v25  ;;  %5052 = vmatprep.mubr.f32.mxu0 %v9857_v0 }
0x130e   :  { %6793 = vmatpush3.msra.mxu1 %v10043_v27  ;;  %6794 = vmatprep.mubr.msk.f32.mxu1 %vm7224_vm1, %v9857_v0 }
0x130f   :  { %5200 = vmatprep.subr.mxu0 %v10044_v62  ;;  %6797 = vmatprep.subr.mxu1 %v9857_v0 }
0x13ae   :  { %v4842_v40 = vpop.f32.mrf.mxu0  ;;  %v4913_v17 = vpop.f32.mrf.mxu1 }
0x13af   :  { %v4917_v19 = vadd.f32 %v4842_v40, %v3732_v14  ;;  %v4931_v14 = vadd.f32 %v9608_v16, %v4913_v17  ;;  %v5375_v17 = vld [vmem:[#allocation8 + $0x18] sm:$0xff] }
0x13b0   :  { %v6761_v36 = vpop.f32.mrf.mxu1  ;;  %v4844_v46 = vpop.f32.mrf.mxu0 }
0x13b1   :  { %v5566_v20 = vmul.f32 -1.442695, %v4917_v19  ;;  %v4924_v22 = vadd.f32 %v4844_v46, %v3734_v59  ;;  %v10048_v19 = vld [vmem:[#allocation39_spill] sm:$0xff] }
0x13b2   :  { %v3840_v36 = vadd.f32 %v10048_v19, %v9080_v53  ;;  %v10057_v19 = vld [vmem:[#allocation16_spill] sm:$0xff] }
0x13b3   :  { %7096 = vpow2.f32 %v5566_v20  ;;  %v5567_v27 = vmul.f32 -1.442695, %v4924_v22 }
0x13b5   :  { %7098 = vpow2.f32 %v5567_v27 }
0x13c0   :  { %v7097_v25 = vpop.eup %7096 }
0x13c1   :  { %v4921_v62 = vadd.f32 1.0, %v7097_v25 }
0x13c2   :  { %v7099_v2 = vpop.eup %7098 }
0x13c3   :  { %7100 = vrcp.f32 %v4921_v62  ;;  %v4928_v56 = vadd.f32 1.0, %v7099_v2  ;;  %v5374_v62 = vld [vmem:[#allocation8 + $0x10] sm:$0xff] }
0x13c5   :  { %7102 = vrcp.f32 %v4928_v56  ;;  %v5376_v56 = vld [vmem:[#allocation8 + $0x20] sm:$0xff] }
0x13d0   :  { %v7101_v40 = vpop.eup %7100 }
0x13d1   :  { %v4932_v20 = vmul.f32 %v7101_v40, %v4931_v14  ;;  %v5373_v14 = vld [vmem:[#allocation8 + $0x8] sm:$0xff]  ;;  %v5372_v40 = vld [vmem:[#allocation8] sm:$0xff] }
0x13d2   :  { %v7103_v27 = vpop.eup %7102 }
0x13d3   :  { %v4933_v22 = vadd.f32 %v4932_v20, %v3840_v36  ;;  %v4935_v25 = vsub.f32 1.0, %v7103_v27  ;;  %v4937_v2 = vmul.f32 %v7103_v27, %v9530_v31  ;;  %v10058_v36 = vld [vmem:[#allocation41_spill] sm:$0xff] }
0x13d4   :  { %v10059_v20 = vld [vmem:[#allocation17_spill] sm:$0xff] }
0x13d5   :  { %7104 = vtanh.f32 %v4933_v22  ;;  %v10060_v22 = vld [vmem:[#allocation22_spill] sm:$0xff] }
0x13d6   :  { %v3744_v27 = vadd.f32 %v10060_v22, %v10045_v21 }
0x13e2   :  { %v7105_v46 = vpop.eup %7104 }
0x13e3   :  { %v4936_v30 = vmul.f32 %v7105_v46, %v4935_v25 }
0x13e5   :  { %v9614_v59 = vadd.f32 %v4937_v2, %v4936_v30 }
0x13e7   :  { %5053 = vmatmul.mubr.f32.vlgmr.msra.gmra.mxu0 %v9614_v59  ;;  %6795 = vmatmul.mubr.f32.vlgmr.msra.gmra.mxu1 %v9614_v59 }
0x13e8   :  { %5201 = vmatpush1.msra.mxu0 %v9364_v37  ;;  %6798 = vmatpush3.msra.mxu1 %v9366_v34  ;;  %v10049_v37 = vld [vmem:[#allocation21_spill] sm:$0xff]  ;;  %v10050_v34 = vld [vmem:[#allocation23_spill] sm:$0xff] }
0x13e9   :  { %5202 = vmatprep.subr.mxu0 %v9370_v48  ;;  %6799 = vmatprep.subr.mxu1 %v9857_v0  ;;  %v10051_v48 = vld [vmem:[#allocation15_spill] sm:$0xff] }
0x13ea   :  { %5203 = vmatpush1.msra.mxu0 %v9374_v38  ;;  %6800 = vmatpush3.msra.mxu1 %v9376_v1  ;;  %v10052_v38 = vld [vmem:[#allocation24_spill] sm:$0xff] }
0x13eb   :  { %5204 = vmatprep.subr.mxu0 %v9380_v24  ;;  %6801 = vmatprep.subr.mxu1 %v9857_v0  ;;  %v5387_v1 = vld [vmem:[#allocation8 + $0x78] sm:$0xff]  ;;  %v10053_v24 = vld [vmem:[#allocation43_spill] sm:$0xff] }
0x13ec   :  { %5205 = vmatpush1.msra.mxu0 %v9384_v12  ;;  %6802 = vmatpush3.msra.mxu1 %v9386_v49  ;;  %v3738_v12 = vadd.f32 %v10053_v24, %v10045_v21  ;;  %v5572_v21 = vld [vmem:[%s9744_s7] ss:$0 sm:$0xff] }
0x13ed   :  { %5206 = vmatprep.subr.mxu0 %v9390_v43  ;;  %6803 = vmatprep.subr.mxu1 %v9857_v0 }
0x13ee   :  { %5207 = vmatpush1.msra.mxu0 %v9394_v47  ;;  %6804 = vmatpush3.msra.mxu1 %v9396_v15 }
0x13ef   :  { %5208 = vmatprep.subr.mxu0 %v9400_v60  ;;  %6805 = vmatprep.subr.mxu1 %v9857_v0 }
0x13f0   :  { %5209 = vmatpush1.msra.mxu0 %v9404_v51  ;;  %6806 = vmatpush3.msra.mxu1 %v9406_v5  ;;  %v10054_v5 = vld [vmem:[#allocation44_spill] sm:$0xff] }
0x13f1   :  { %5210 = vmatprep.subr.mxu0 %v9410_v4  ;;  %6807 = vmatprep.subr.mxu1 %v9857_v0  ;;  %v3740_v4 = vadd.f32 %v10054_v5, %v9065_v35 }
0x13f2   :  { %5211 = vmatpush1.msra.mxu0 %v9414_v52  ;;  %6808 = vmatpush3.msra.mxu1 %v9416_v45 }
0x13f3   :  { %5212 = vmatprep.subr.mxu0 %v9420_v55  ;;  %6809 = vmatprep.subr.mxu1 %v9857_v0 }
0x13f4   :  { %5213 = vmatpush1.msra.mxu0 %v9424_v29  ;;  %6810 = vmatpush3.msra.mxu1 %v9426_v50 }
0x13f5   :  { %5214 = vmatprep.subr.mxu0 %v9430_v41  ;;  %6811 = vmatprep.subr.mxu1 %v9857_v0 }
0x13f6   :  { %5215 = vmatpush1.msra.mxu0 %v9434_v32  ;;  %6812 = vmatpush3.msra.mxu1 %v9436_v23  ;;  %v10055_v23 = vld [vmem:[#allocation42_spill] sm:$0xff] }
0x13f7   :  { %5216 = vmatprep.subr.mxu0 %v9438_v63  ;;  %6813 = vmatprep.subr.mxu1 %v9857_v0  ;;  %v3845_v63 = vadd.f32 %v10055_v23, %v9080_v53 }
0x13f8   :  { %5217 = vmatpush1.msra.mxu0 %v9442_v39  ;;  %6814 = vmatpush3.msra.mxu1 %v9444_v18 }
0x13f9   :  { %5218 = vmatprep.subr.mxu0 %v9446_v58  ;;  %6815 = vmatprep.subr.mxu1 %v9857_v0 }
0x13fa   :  { %5219 = vmatpush1.msra.mxu0 %v9450_v42  ;;  %6816 = vmatpush3.msra.mxu1 %v9452_v57 }
0x13fb   :  { %5220 = vmatprep.subr.mxu0 %v9456_v61  ;;  %6817 = vmatprep.subr.mxu1 %v9857_v0 }
0x13fc   :  { %5221 = vmatpush1.msra.mxu0 %v9460_v6  ;;  %6818 = vmatpush3.msra.mxu1 %v9462_v7 }
0x13fd   :  { %5222 = vmatprep.subr.mxu0 %v9466_v8  ;;  %6819 = vmatprep.subr.mxu1 %v9857_v0  ;;  %v5386_v8 = vld [vmem:[#allocation8 + $0x70] sm:$0xff] }
0x13fe   :  { %5223 = vmatpush1.msra.mxu0 %v9470_v9  ;;  %6820 = vmatpush3.msra.mxu1 %v9472_v10  ;;  %v10056_v9 = vld [vmem:[#allocation26_spill] sm:$0xff] }
0x13ff   :  { %5224 = vmatprep.subr.mxu0 %v9476_v11  ;;  %6821 = vmatprep.subr.mxu1 %v9857_v0  ;;  %v5385_v10 = vld [vmem:[#allocation8 + $0x68] sm:$0xff]  ;;  %v5384_v11 = vld [vmem:[#allocation8 + $0x60] sm:$0xff] }
0x1400   :  { %5225 = vmatpush1.msra.mxu0 %v9480_v13  ;;  %6822 = vmatpush3.msra.mxu1 %v9482_v3  ;;  %v5383_v13 = vld [vmem:[#allocation8 + $0x58] sm:$0xff]  ;;  %v5382_v3 = vld [vmem:[#allocation8 + $0x50] sm:$0xff] }
0x1401   :  { %5226 = vmatprep.subr.mxu0 %v9486_v54  ;;  %6823 = vmatprep.subr.mxu1 %v9857_v0  ;;  %v5381_v54 = vld [vmem:[#allocation8 + $0x48] sm:$0xff] }
0x1402   :  { %5227 = vmatpush1.msra.mxu0 %v9490_v28  ;;  %6824 = vmatpush3.msra.mxu1 %v9492_v26  ;;  %v5380_v28 = vld [vmem:[#allocation8 + $0x40] sm:$0xff]  ;;  %v5379_v26 = vld [vmem:[#allocation8 + $0x38] sm:$0xff] }
0x1403   :  { %5228 = vmatprep.subr.mxu0 %v9496_v33  ;;  %6825 = vmatprep.subr.mxu1 %v9857_v0  ;;  %v5378_v33 = vld [vmem:[#allocation8 + $0x30] sm:$0xff] }
0x1404   :  { %5229 = vmatpush1.msra.mxu0 %v10039_v44  ;;  %6826 = vmatpush3.msra.mxu1 %v10049_v37  ;;  %v5377_v44 = vld [vmem:[#allocation8 + $0x28] sm:$0xff] }
0x1405   :  { %5230 = vmatprep.subr.mxu0 %v10050_v34  ;;  %6827 = vmatprep.subr.mxu1 %v9857_v0 }
0x1406   :  { %5231 = vmatpush1.msra.mxu0 %v10051_v48  ;;  %5264 = vmatprep.mubr.f32.mxu0 %v9857_v0  ;;  %v10061_v48 = vld [vmem:[#allocation40_spill] sm:$0xff] }
0x1407   :  { %6828 = vmatpush3.msra.mxu1 %v10052_v38  ;;  %6829 = vmatprep.mubr.msk.f32.mxu1 %vm7224_vm1, %v9857_v0  ;;  %v3746_v38 = vadd.f32 %v10061_v48, %v9065_v35  ;;  %v10062_v35 = vld [vmem:[#allocation18_spill] sm:$0xff] }
0x1408   :  { %6832 = vmatprep.subr.mxu0 %v5387_v1  ;;  %v3850_v5 = vadd.f32 %v10062_v35, %v9080_v53 }
0x14a7   :  { %v5054_v49 = vpop.f32.mrf.mxu0  ;;  %v5125_v43 = vpop.f32.mrf.mxu1 }
0x14a8   :  { %v5129_v47 = vadd.f32 %v5054_v49, %v3738_v12  ;;  %v5143_v41 = vadd.f32 %v9608_v16, %v5125_v43 }
0x14a9   :  { %v6796_v15 = vpop.f32.mrf.mxu1  ;;  %v5056_v51 = vpop.f32.mrf.mxu0 }
0x14aa   :  { %v5568_v60 = vmul.f32 -1.442695, %v5129_v47  ;;  %v5136_v52 = vadd.f32 %v5056_v51, %v3740_v4 }
0x14ac   :  { %7106 = vpow2.f32 %v5568_v60  ;;  %v5569_v45 = vmul.f32 -1.442695, %v5136_v52 }
0x14ae   :  { %7108 = vpow2.f32 %v5569_v45 }
0x14b9   :  { %v7107_v55 = vpop.eup %7106 }
0x14ba   :  { %v5133_v0 = vadd.f32 1.0, %v7107_v55 }
0x14bb   :  { %v7109_v29 = vpop.eup %7108 }
0x14bc   :  { %7110 = vrcp.f32 %v5133_v0  ;;  %v5140_v50 = vadd.f32 1.0, %v7109_v29 }
0x14be   :  { %7112 = vrcp.f32 %v5140_v50 }
0x14c9   :  { %v7111_v32 = vpop.eup %7110 }
0x14ca   :  { %v5144_v39 = vmul.f32 %v7111_v32, %v5143_v41 }
0x14cb   :  { %v7113_v58 = vpop.eup %7112 }
0x14cc   :  { %v5145_v18 = vadd.f32 %v5144_v39, %v3845_v63  ;;  %v5147_v42 = vsub.f32 1.0, %v7113_v58  ;;  %v5149_v6 = vmul.f32 %v7113_v58, %v9614_v59 }
0x14ce   :  { %7114 = vtanh.f32 %v5145_v18 }
0x14db   :  { %v7115_v57 = vpop.eup %7114 }
0x14dc   :  { %v5148_v61 = vmul.f32 %v7115_v57, %v5147_v42 }
0x14de   :  { %v9691_v7 = vadd.f32 %v5149_v6, %v5148_v61 }
0x14e0   :  { %5265 = vmatmul.mubr.f32.vlgmr.msra.gmra.mxu0 %v9691_v7  ;;  %6830 = vmatmul.mubr.f32.vlgmr.msra.gmra.mxu1 %v9691_v7 }
0x14e1   :  { %6833 = vmatpush3.msra.mxu0 %v5387_v1  ;;  %6864 = vmatprep.mubr.f32.mxu0 %v10056_v9 }
0x14e2   :  { %6834 = vmatprep.subr.mxu0 %v5386_v8 }
0x14e3   :  { %6835 = vmatpush3.msra.mxu0 %v5386_v8 }
0x14e4   :  { %6836 = vmatprep.subr.mxu0 %v5385_v10 }
0x14e5   :  { %6837 = vmatpush3.msra.mxu0 %v5385_v10 }
0x14e6   :  { %6838 = vmatprep.subr.mxu0 %v5384_v11 }
0x14e7   :  { %6839 = vmatpush3.msra.mxu0 %v5384_v11 }
0x14e8   :  { %6840 = vmatprep.subr.mxu0 %v5383_v13 }
0x14e9   :  { %6841 = vmatpush3.msra.mxu0 %v5383_v13 }
0x14ea   :  { %6842 = vmatprep.subr.mxu0 %v5382_v3 }
0x14eb   :  { %6843 = vmatpush3.msra.mxu0 %v5382_v3 }
0x14ec   :  { %6844 = vmatprep.subr.mxu0 %v5381_v54 }
0x14ed   :  { %6845 = vmatpush3.msra.mxu0 %v5381_v54 }
0x14ee   :  { %6846 = vmatprep.subr.mxu0 %v5380_v28 }
0x14ef   :  { %6847 = vmatpush3.msra.mxu0 %v5380_v28 }
0x14f0   :  { %6848 = vmatprep.subr.mxu0 %v5379_v26 }
0x14f1   :  { %6849 = vmatpush3.msra.mxu0 %v5379_v26 }
0x14f2   :  { %6850 = vmatprep.subr.mxu0 %v5378_v33 }
0x14f3   :  { %6851 = vmatpush3.msra.mxu0 %v5378_v33 }
0x14f4   :  { %6852 = vmatprep.subr.mxu0 %v5377_v44 }
0x14f5   :  { %6853 = vmatpush3.msra.mxu0 %v5377_v44 }
0x14f6   :  { %6854 = vmatprep.subr.mxu0 %v5376_v56 }
0x14f7   :  { %6855 = vmatpush3.msra.mxu0 %v5376_v56 }
0x14f8   :  { %6856 = vmatprep.subr.mxu0 %v5375_v17 }
0x14f9   :  { %6857 = vmatpush3.msra.mxu0 %v5375_v17 }
0x14fa   :  { %6858 = vmatprep.subr.mxu0 %v5374_v62 }
0x14fb   :  { %6859 = vmatpush3.msra.mxu0 %v5374_v62 }
0x14fc   :  { %6860 = vmatprep.subr.mxu0 %v5373_v14 }
0x14fd   :  { %6861 = vmatpush3.msra.mxu0 %v5373_v14 }
0x14fe   :  { %6862 = vmatprep.subr.mxu0 %v5372_v40 }
0x14ff   :  { %6863 = vmatpush3.msra.mxu0 %v5372_v40 }
0x1500   :  { %6865 = vmatmul.mubr.f32.vlgmr.msra.gmra.mxu0 %v10057_v19 }
0x1501   :  { %6867 = vmatprep.mubr.f32.mxu0 %v10058_v36 }
0x1504   :  { %6868 = vmatmul.mubr.f32.gmra.mxu0 %v10059_v20 }
0x1505   :  { %6870 = vmatprep.mubr.f32.mxu0 %v9530_v31 }
0x1508   :  { %6871 = vmatmul.mubr.f32.gmra.mxu0 %v9614_v59 }
0x1509   :  { %6873 = vmatprep.mubr.f32.mxu0 %v9691_v7 }
0x15a0   :  { %v5266_v25 = vpop.f32.mrf.mxu0  ;;  %v5337_v46 = vpop.f32.mrf.mxu1 }
0x15a1   :  { %v5341_v30 = vadd.f32 %v5266_v25, %v3744_v27  ;;  %v5355_v47 = vadd.f32 %v9608_v16, %v5337_v46 }
0x15a2   :  { %v6831_v2 = vpop.f32.mrf.mxu1  ;;  %v5268_v34 = vpop.f32.mrf.mxu0 }
0x15a3   :  { %v5570_v37 = vmul.f32 -1.442695, %v5341_v30  ;;  %v5348_v1 = vadd.f32 %v5268_v34, %v3746_v38 }
0x15a5   :  { %7116 = vpow2.f32 %v5570_v37  ;;  %v5571_v24 = vmul.f32 -1.442695, %v5348_v1 }
0x15a7   :  { %7118 = vpow2.f32 %v5571_v24 }
0x15b2   :  { %v7117_v31 = vpop.eup %7116 }
0x15b3   :  { %v5345_v59 = vadd.f32 1.0, %v7117_v31 }
0x15b4   :  { %v7119_v12 = vpop.eup %7118 }
0x15b5   :  { %7120 = vrcp.f32 %v5345_v59  ;;  %v5352_v49 = vadd.f32 1.0, %v7119_v12 }
0x15b7   :  { %7122 = vrcp.f32 %v5352_v49 }
0x15c0   :  { %v6866_v43 = vpop.f32.mrf.mxu0 }
0x15c1   :  { %v5467_v15 = vadd.f32 %v6866_v43, %v5572_v21 }
0x15c2   :  { %v7121_v60 = vpop.eup %7120  ;;  %v5461_v51 = vpop.f32.mrf.mxu0 }
0x15c3   :  { %v5356_v4 = vmul.f32 %v7121_v60, %v5355_v47  ;;  %5501 = vst [vmem:[%s9745_s8 + $0x8] sm:$0xff] %v5467_v15  ;;  %v5462_v52 = vadd.f32 %v5572_v21, %v5461_v51 }
0x15c4   :  { %v6869_v45 = vpop.f32.mrf.mxu0  ;;  %v7123_v23 = vpop.eup %7122 }
0x15c5   :  { %v5357_v55 = vadd.f32 %v5356_v4, %v3850_v5  ;;  %5500 = vst [vmem:[%s9745_s8] sm:$0xff] %v5462_v52  ;;  %v5477_v16 = vadd.f32 %v6869_v45, %v5572_v21  ;;  %v5359_v63 = vsub.f32 1.0, %v7123_v23  ;;  %v5361_v58 = vmul.f32 %v7123_v23, %v9691_v7 }
0x15c6   :  { %v5471_v0 = vpop.f32.mrf.mxu0 }
0x15c7   :  { %7124 = vtanh.f32 %v5357_v55  ;;  %5503 = vst [vmem:[%s9745_s8 + $0x18] sm:$0xff] %v5477_v16  ;;  %v5472_v53 = vadd.f32 %v5572_v21, %v5471_v0 }
0x15c8   :  { %v6872_v29 = vpop.f32.mrf.mxu0 }
0x15c9   :  { %5502 = vst [vmem:[%s9745_s8 + $0x10] sm:$0xff] %v5472_v53  ;;  %v5487_v50 = vadd.f32 %v6872_v29, %v5572_v21 }
0x15ca   :  { %v5481_v41 = vpop.f32.mrf.mxu0 }
0x15cb   :  { %5505 = vst [vmem:[%s9745_s8 + $0x28] sm:$0xff] %v5487_v50  ;;  %v5482_v32 = vadd.f32 %v5572_v21, %v5481_v41 }
0x15cd   :  { %5504 = vst [vmem:[%s9745_s8 + $0x20] sm:$0xff] %v5482_v32 }
0x15d4   :  { %v7125_v39 = vpop.eup %7124 }
0x15d5   :  { %v5360_v18 = vmul.f32 %v7125_v39, %v5359_v63 }
0x15d7   :  { %v5362_v42 = vadd.f32 %v5361_v58, %v5360_v18 }
0x15d9   :  { %6874 = vmatmul.mubr.f32.gmra.mxu0 %v5362_v42 }
0x1699   :  { %v6875_v57 = vpop.f32.mrf.mxu0 }
0x169a   :  { %v5497_v61 = vadd.f32 %v6875_v57, %v5572_v21 }
0x169b   :  { %v5491_v6 = vpop.f32.mrf.mxu0 }
0x169c   :  { %5507 = vst [vmem:[%s9745_s8 + $0x38] sm:$0xff] %v5497_v61  ;;  %v5492_v8 = vadd.f32 %v5572_v21, %v5491_v6 }
0x169e   :  { %5506 = vst [vmem:[%s9745_s8 + $0x30] sm:$0xff] %v5492_v8 }
0x169f   :  { %5512 = vsyncpa [#allocation4], 1 }
0x16a0   :  { %5513 = vsyncpa [#allocation6], 1 }
0x16a1   :  { %5514 = vsyncpa [#allocation9], 1 }

</bundles_post_ra>
